<compile_context>
chip_gen: v7x
topology: tpu7x:2x2x1
jax: 0.10.0
libtpu: 0.0.40
codegen_flags: <defaults>
</compile_context>

<pallas_src>
import math
import functools

import jax
import jax.numpy as jnp
from jax import lax
from jax.experimental import pallas as pl
from jax.experimental.pallas import tpu as pltpu


_LN_EPS = 1e-5                      # PyTorch nn.LayerNorm default eps
_GELU_C = math.sqrt(2.0 / math.pi)


def _layer_norm(x, gamma, beta):
    mu = jnp.mean(x, axis=-1, keepdims=True)
    xc = x - mu
    var = jnp.mean(xc * xc, axis=-1, keepdims=True)
    return xc * lax.rsqrt(var + _LN_EPS) * gamma + beta


def _gelu_tanh(x):
    return 0.5 * x * (1.0 + jnp.tanh(_GELU_C * (x + 0.044715 * x * x * x)))


def _transformer_block_kernel(
        x_ref,                                   # (G*S, D)
        w_qkv_ref, b_qkv_ref,                    # (D, 3D), (1, 3D)
        wo_ref, bo_ref,                          # (D, D), (1, D)
        g1_ref, be1_ref, g2_ref, be2_ref,        # (1, D) each
        w1_ref, b1_ref, w2_ref, b2_ref,          # (D, M), (1, M), (M, D), (1, D)
        out_ref, attn_ref,                       # (G*S, D), (G*H, S, S)
        qkv_scr, ctx_scr,                        # VMEM (3, G*H, S, dk), (G*S, D)
        *, n_batch: int, seq: int, n_heads: int, d_k: int):
    """One grid step = `n_batch` batch elements; whole transformer block."""
    G, S, H = n_batch, seq, n_heads
    D = H * d_k

    x = x_ref[...]                               # (G*S, D)

    # ---------------- LayerNorm 1 ----------------
    nx = _layer_norm(x, g1_ref[...], be1_ref[...])

    # -------- fused lane-dense QKV projection: ONE (G*S,D)@(D,3D) matmul ----
    qkv2d = jnp.dot(nx, w_qkv_ref[...],
                    preferred_element_type=jnp.float32) + b_qkv_ref[...]   # (G*S, 3D)

    # Head split via tiny static-slice scratch stores (no lane<->sublane
    # reshapes in-kernel).
    for c in range(3):                           # 0:q  1:k  2:v
        for g in range(G):
            for h in range(H):
                col = (c * H + h) * d_k
                qkv_scr[c, g * H + h] = qkv2d[g * S:(g + 1) * S, col:col + d_k]

    q = qkv_scr[0] * (1.0 / math.sqrt(d_k))      # scale q, not scores
    k = qkv_scr[1]
    v = qkv_scr[2]                               # (G*H, S, dk)

    # ------------- scaled dot-product attention, all (b,h) at once ---------
    scores = jnp.einsum("hqd,hkd->hqk", q, k,
                        preferred_element_type=jnp.float32)                # (G*H,S,S)
    m = jnp.max(scores, axis=-1, keepdims=True)
    e = jnp.exp(scores - m)
    denom = jnp.sum(e, axis=-1, keepdims=True)
    w = e * pl.reciprocal(denom, approx=True)                              # (G*H,S,S)

    attn_ref[...] = w.astype(attn_ref.dtype)     # one store for all (b,h)

    ctx = jnp.einsum("hqk,hkd->hqd", w, v,
                     preferred_element_type=jnp.float32)                   # (G*H,S,dk)

    # ---- merge heads to (G*S, D), then ONE (G*S,D)@(D,D) output projection ----
    for g in range(G):
        for h in range(H):
            ctx_scr[g * S:(g + 1) * S, h * d_k:(h + 1) * d_k] = ctx[g * H + h]
    attn_out = jnp.dot(ctx_scr[...], wo_ref[...],
                       preferred_element_type=jnp.float32) + bo_ref[...]   # (G*S, D)

    # ------------- residual + LayerNorm 2 + MLP + residual -----------------
    x1 = x + attn_out
    hid = _layer_norm(x1, g2_ref[...], be2_ref[...])
    hid = jnp.dot(hid, w1_ref[...], preferred_element_type=jnp.float32) + b1_ref[...]
    hid = _gelu_tanh(hid)
    hid = jnp.dot(hid, w2_ref[...], preferred_element_type=jnp.float32) + b2_ref[...]

    out_ref[...] = (x1 + hid).astype(out_ref.dtype)


def _single_tensorcore() -> bool:
    """True on chips exposing one TensorCore per device (v5e / v6e)."""
    try:
        kind = jax.devices()[0].device_kind.lower()
    except Exception:
        return True
    # v7x / v4 / v5p expose 2 TensorCores per device (megacore).
    return not any(tag in kind for tag in ("v7", "v4", "v5p"))


def transformer_block(x, params, *, n_heads: int, batch_per_step=None):
    """x: (B, S, D) f32.  Weights stored as (in, out) (i.e. PyTorch W.T).

    Returns (out (B, S, D), attn_weights (B, H, S, S)).
    """
    B, S, D = x.shape
    d_k = D // n_heads
    mlp_dim = params["w1"].shape[1]

    # Generation-aware grid: fold the whole batch into one step on single-TC
    # chips; keep one batch element per step (parallel across cores) otherwise.
    if batch_per_step is None:
        batch_per_step = B if _single_tensorcore() else 1
    G = batch_per_step
    assert B % G == 0
    n_steps = B // G

    # Wrapper-side weight packing (plain JAX, outside the kernel).
    w_qkv = jnp.concatenate([params["wq"], params["wk"], params["wv"]],
                            axis=1)                                   # (D, 3D)
    b_qkv = jnp.concatenate([params["bq"], params["bk"],
                             params["bv"]]).reshape(1, 3 * D)         # (1, 3D)

    row = lambda vv: vv.reshape(1, -1)
    x2d = x.reshape(B * S, D)

    kernel = functools.partial(_transformer_block_kernel,
                               n_batch=G, seq=S, n_heads=n_heads, d_k=d_k)

    def full(shape):
        n = len(shape)
        return pl.BlockSpec(shape, lambda i, _n=n: (0,) * _n)

    out2d, attn3d = pl.pallas_call(
        kernel,
        out_shape=(
            jax.ShapeDtypeStruct((B * S, D), x.dtype),
            jax.ShapeDtypeStruct((B * n_heads, S, S), jnp.float32),
        ),
        grid_spec=pltpu.PrefetchScalarGridSpec(
            num_scalar_prefetch=0,
            grid=(n_steps,),
            in_specs=[
                pl.BlockSpec((G * S, D), lambda i: (i, 0)),
                full((D, 3 * D)), full((1, 3 * D)),
                full((D, D)), full((1, D)),
                full((1, D)), full((1, D)), full((1, D)), full((1, D)),
                full((D, mlp_dim)), full((1, mlp_dim)),
                full((mlp_dim, D)), full((1, D)),
            ],
            out_specs=[
                pl.BlockSpec((G * S, D), lambda i: (i, 0)),
                pl.BlockSpec((G * n_heads, S, S), lambda i: (i, 0, 0)),
            ],
            scratch_shapes=[
                pltpu.VMEM((3, G * n_heads, S, d_k), jnp.float32),
                pltpu.VMEM((G * S, D), jnp.float32),
            ],
        ),
        compiler_params=pltpu.CompilerParams(
            dimension_semantics=("parallel",),
        ),
    )(x2d,
      w_qkv, b_qkv, params["wo"], row(params["bo"]),
      row(params["ln1_g"]), row(params["ln1_b"]),
      row(params["ln2_g"]), row(params["ln2_b"]),
      params["w1"], row(params["b1"]),
      params["w2"], row(params["b2"]))

    return out2d.reshape(B, S, D), attn3d.reshape(B, n_heads, S, S)


def _reference_block(x, params, *, n_heads: int):
    """Pure-JAX reference mirroring the PyTorch forward (eval mode)."""
    B, S, D = x.shape
    d_k = D // n_heads

    def ln(v, g, b):
        mu = v.mean(-1, keepdims=True)
        var = ((v - mu) ** 2).mean(-1, keepdims=True)
        return (v - mu) / jnp.sqrt(var + _LN_EPS) * g + b

    nx = ln(x, params["ln1_g"], params["ln1_b"])

    def split_heads(w, b):
        return (nx @ w + b).reshape(B, S, n_heads, d_k).transpose(0, 2, 1, 3)

    Q = split_heads(params["wq"], params["bq"])
    K = split_heads(params["wk"], params["bk"])
    V = split_heads(params["wv"], params["bv"])

    scores = jnp.einsum("bhqd,bhkd->bhqk", Q, K) / math.sqrt(d_k)
    w = jax.nn.softmax(scores, axis=-1)
    ao = jnp.einsum("bhqk,bhkd->bhqd", w, V).transpose(0, 2, 1, 3).reshape(B, S, D)
    attn_out = ao @ params["wo"] + params["bo"]

    x = x + attn_out
    h = ln(x, params["ln2_g"], params["ln2_b"])
    h = _gelu_tanh(h @ params["w1"] + params["b1"])
    mlp = h @ params["w2"] + params["b2"]
    return x + mlp, w


if __name__ == "__main__":
    B, S, D, H = 2, 16, 64, 8          # embed_dim=64, n_heads=8 -> d_k=8
    MLP = 4 * D                        # mlp_ratio=4.0

    key0 = jax.random.PRNGKey(0)
    ks = jax.random.split(key0, 18)
    bound = 1.0 / math.sqrt(D)         # nn.Linear default init scale
    bound_m = 1.0 / math.sqrt(MLP)

    params = {
        "wq": jax.random.uniform(ks[0], (D, D), jnp.float32, -bound, bound),
        "bq": jax.random.uniform(ks[1], (D,), jnp.float32, -bound, bound),
        "wk": jax.random.uniform(ks[2], (D, D), jnp.float32, -bound, bound),
        "bk": jax.random.uniform(ks[3], (D,), jnp.float32, -bound, bound),
        "wv": jax.random.uniform(ks[4], (D, D), jnp.float32, -bound, bound),
        "bv": jax.random.uniform(ks[5], (D,), jnp.float32, -bound, bound),
        "wo": jax.random.uniform(ks[6], (D, D), jnp.float32, -bound, bound),
        "bo": jax.random.uniform(ks[7], (D,), jnp.float32, -bound, bound),
        "w1": jax.random.uniform(ks[8], (D, MLP), jnp.float32, -bound, bound),
        "b1": jax.random.uniform(ks[9], (MLP,), jnp.float32, -bound, bound),
        "w2": jax.random.uniform(ks[10], (MLP, D), jnp.float32, -bound_m, bound_m),
        "b2": jax.random.uniform(ks[11], (D,), jnp.float32, -bound_m, bound_m),
        "ln1_g": 1.0 + 0.1 * jax.random.normal(ks[12], (D,), jnp.float32),
        "ln1_b": 0.1 * jax.random.normal(ks[13], (D,), jnp.float32),
        "ln2_g": 1.0 + 0.1 * jax.random.normal(ks[14], (D,), jnp.float32),
        "ln2_b": 0.1 * jax.random.normal(ks[15], (D,), jnp.float32),
    }

    x = jax.random.normal(ks[16], (B, S, D), jnp.float32)

    out, attn = transformer_block(x, params, n_heads=H)
    out = jax.block_until_ready(out)
    attn = jax.block_until_ready(attn)

    ref_out, ref_attn = _reference_block(x, params, n_heads=H)

    assert out.shape == (B, S, D)
    assert attn.shape == (B, H, S, S)
    assert jnp.allclose(attn, ref_attn, atol=2e-3, rtol=2e-3), \
        float(jnp.max(jnp.abs(attn - ref_attn)))
    assert jnp.allclose(out, ref_out, atol=5e-3, rtol=5e-3), \
        float(jnp.max(jnp.abs(out - ref_out)))

    print("KERNEL_OK")
</pallas_src>

<mosaic_0001>
module attributes {stable_mosaic.version = 11 : i64} {
  func.func @_transformer_block_kernel(%arg0: i32, %arg1: memref<32x64xf32, #tpu.memory_space<vmem>>, %arg2: memref<64x192xf32, #tpu.memory_space<vmem>>, %arg3: memref<1x192xf32, #tpu.memory_space<vmem>>, %arg4: memref<64x64xf32, #tpu.memory_space<vmem>>, %arg5: memref<1x64xf32, #tpu.memory_space<vmem>>, %arg6: memref<1x64xf32, #tpu.memory_space<vmem>>, %arg7: memref<1x64xf32, #tpu.memory_space<vmem>>, %arg8: memref<1x64xf32, #tpu.memory_space<vmem>>, %arg9: memref<1x64xf32, #tpu.memory_space<vmem>>, %arg10: memref<64x256xf32, #tpu.memory_space<vmem>>, %arg11: memref<1x256xf32, #tpu.memory_space<vmem>>, %arg12: memref<256x64xf32, #tpu.memory_space<vmem>>, %arg13: memref<1x64xf32, #tpu.memory_space<vmem>>, %arg14: memref<32x64xf32, #tpu.memory_space<vmem>>, %arg15: memref<16x16x16xf32, #tpu.memory_space<vmem>>, %arg16: memref<3x16x16x8xf32, #tpu.memory_space<vmem>>, %arg17: memref<32x64xf32, #tpu.memory_space<vmem>>) attributes {dimension_semantics = [#tpu.dimension_semantics<parallel>], iteration_bounds = array<i64: 1>, scalar_prefetch = 0 : i64, scratch_operands = 2 : i64, tpu.core_type = #tpu.core_type<tc>, window_params = [{transform_indices = @transform_0, window_bounds = array<i64: 32, 64>}, {pipeline_mode = #tpu.pipeline_mode<synchronous>, transform_indices = @transform_1, window_bounds = array<i64: 64, 192>}, {pipeline_mode = #tpu.pipeline_mode<synchronous>, transform_indices = @transform_2, window_bounds = array<i64: 1, 192>}, {pipeline_mode = #tpu.pipeline_mode<synchronous>, transform_indices = @transform_3, window_bounds = array<i64: 64, 64>}, {pipeline_mode = #tpu.pipeline_mode<synchronous>, transform_indices = @transform_4, window_bounds = array<i64: 1, 64>}, {pipeline_mode = #tpu.pipeline_mode<synchronous>, transform_indices = @transform_5, window_bounds = array<i64: 1, 64>}, {pipeline_mode = #tpu.pipeline_mode<synchronous>, transform_indices = @transform_6, window_bounds = array<i64: 1, 64>}, {pipeline_mode = #tpu.pipeline_mode<synchronous>, transform_indices = @transform_7, window_bounds = array<i64: 1, 64>}, {pipeline_mode = #tpu.pipeline_mode<synchronous>, transform_indices = @transform_8, window_bounds = array<i64: 1, 64>}, {pipeline_mode = #tpu.pipeline_mode<synchronous>, transform_indices = @transform_9, window_bounds = array<i64: 64, 256>}, {pipeline_mode = #tpu.pipeline_mode<synchronous>, transform_indices = @transform_10, window_bounds = array<i64: 1, 256>}, {pipeline_mode = #tpu.pipeline_mode<synchronous>, transform_indices = @transform_11, window_bounds = array<i64: 256, 64>}, {pipeline_mode = #tpu.pipeline_mode<synchronous>, transform_indices = @transform_12, window_bounds = array<i64: 1, 64>}, {transform_indices = @transform_13, window_bounds = array<i64: 32, 64>}, {transform_indices = @transform_14, window_bounds = array<i64: 16, 16, 16>}]} {
    %c0 = arith.constant 0 : index
    %c0_0 = arith.constant 0 : index
    %0 = vector.load %arg1[%c0, %c0_0] : memref<32x64xf32, #tpu.memory_space<vmem>>, vector<32x64xf32>
    %c0_1 = arith.constant 0 : index
    %c0_2 = arith.constant 0 : index
    %1 = vector.load %arg6[%c0_1, %c0_2] : memref<1x64xf32, #tpu.memory_space<vmem>>, vector<1x64xf32>
    %c0_3 = arith.constant 0 : index
    %c0_4 = arith.constant 0 : index
    %2 = vector.load %arg7[%c0_3, %c0_4] : memref<1x64xf32, #tpu.memory_space<vmem>>, vector<1x64xf32>
    %cst = arith.constant dense<0.000000e+00> : vector<32xf32>
    %3 = vector.multi_reduction <add>, %0, %cst [1] : vector<32x64xf32> to vector<32xf32>
    %4 = vector.shape_cast %3 : vector<32xf32> to vector<32x1xf32>
    %cst_5 = arith.constant 6.400000e+01 : f32
    %5 = vector.broadcast %cst_5 : f32 to vector<32x1xf32>
    %6 = arith.divf %4, %5 : vector<32x1xf32>
    %7 = vector.broadcast %6 : vector<32x1xf32> to vector<32x64xf32>
    %8 = arith.subf %0, %7 : vector<32x64xf32>
    %9 = arith.mulf %8, %8 : vector<32x64xf32>
    %cst_6 = arith.constant dense<0.000000e+00> : vector<32xf32>
    %10 = vector.multi_reduction <add>, %9, %cst_6 [1] : vector<32x64xf32> to vector<32xf32>
    %11 = vector.shape_cast %10 : vector<32xf32> to vector<32x1xf32>
    %cst_7 = arith.constant 6.400000e+01 : f32
    %12 = vector.broadcast %cst_7 : f32 to vector<32x1xf32>
    %13 = arith.divf %11, %12 : vector<32x1xf32>
    %cst_8 = arith.constant 9.99999974E-6 : f32
    %14 = vector.broadcast %cst_8 : f32 to vector<32x1xf32>
    %15 = arith.addf %13, %14 : vector<32x1xf32>
    %16 = math.rsqrt %15 : vector<32x1xf32>
    %17 = vector.broadcast %16 : vector<32x1xf32> to vector<32x64xf32>
    %18 = arith.mulf %8, %17 : vector<32x64xf32>
    %19 = vector.broadcast %1 : vector<1x64xf32> to vector<32x64xf32>
    %20 = arith.mulf %18, %19 : vector<32x64xf32>
    %21 = vector.broadcast %2 : vector<1x64xf32> to vector<32x64xf32>
    %22 = arith.addf %20, %21 : vector<32x64xf32>
    %c0_9 = arith.constant 0 : index
    %c0_10 = arith.constant 0 : index
    %23 = vector.load %arg2[%c0_9, %c0_10] : memref<64x192xf32, #tpu.memory_space<vmem>>, vector<64x192xf32>
    %cst_11 = arith.constant dense<0.000000e+00> : vector<32x192xf32>
    %24 = tpu.matmul %22, %23, %cst_11 {dimension_numbers = #tpu.dot_dimension_numbers<[1], [0], [0], [1], [0, 0, 1, 1], [], []>} : vector<32x64xf32>, vector<64x192xf32>, vector<32x192xf32> -> vector<32x192xf32>
    %c0_12 = arith.constant 0 : index
    %c0_13 = arith.constant 0 : index
    %25 = vector.load %arg3[%c0_12, %c0_13] : memref<1x192xf32, #tpu.memory_space<vmem>>, vector<1x192xf32>
    %26 = vector.broadcast %25 : vector<1x192xf32> to vector<32x192xf32>
    %27 = arith.addf %24, %26 : vector<32x192xf32>
    %28 = vector.extract_strided_slice %27 {offsets = [0, 0], sizes = [16, 8], strides = [1, 1]} : vector<32x192xf32> to vector<16x8xf32>
    %c0_14 = arith.constant 0 : index
    %c0_15 = arith.constant 0 : index
    %c0_16 = arith.constant 0 : index
    %c0_17 = arith.constant 0 : index
    %29 = vector.load %arg16[%c0_14, %c0_15, %c0_16, %c0_17] : memref<3x16x16x8xf32, #tpu.memory_space<vmem>>, vector<1x1x16x8xf32>
    %30 = vector.shape_cast %29 : vector<1x1x16x8xf32> to vector<16x8xf32>
    %31 = vector.shape_cast %28 : vector<16x8xf32> to vector<1x1x16x8xf32>
    tpu.vector_store %arg16[%c0_14, %c0_15, %c0_16, %c0_17], %31 {strides = array<i32>} : memref<3x16x16x8xf32, #tpu.memory_space<vmem>>, vector<1x1x16x8xf32>,
    %32 = vector.extract_strided_slice %27 {offsets = [0, 8], sizes = [16, 8], strides = [1, 1]} : vector<32x192xf32> to vector<16x8xf32>
    %c0_18 = arith.constant 0 : index
    %c1 = arith.constant 1 : index
    %c0_19 = arith.constant 0 : index
    %c0_20 = arith.constant 0 : index
    %33 = vector.load %arg16[%c0_18, %c1, %c0_19, %c0_20] : memref<3x16x16x8xf32, #tpu.memory_space<vmem>>, vector<1x1x16x8xf32>
    %34 = vector.shape_cast %33 : vector<1x1x16x8xf32> to vector<16x8xf32>
    %35 = vector.shape_cast %32 : vector<16x8xf32> to vector<1x1x16x8xf32>
    tpu.vector_store %arg16[%c0_18, %c1, %c0_19, %c0_20], %35 {strides = array<i32>} : memref<3x16x16x8xf32, #tpu.memory_space<vmem>>, vector<1x1x16x8xf32>,
    %36 = vector.extract_strided_slice %27 {offsets = [0, 16], sizes = [16, 8], strides = [1, 1]} : vector<32x192xf32> to vector<16x8xf32>
    %c0_21 = arith.constant 0 : index
    %c2 = arith.constant 2 : index
    %c0_22 = arith.constant 0 : index
    %c0_23 = arith.constant 0 : index
    %37 = vector.load %arg16[%c0_21, %c2, %c0_22, %c0_23] : memref<3x16x16x8xf32, #tpu.memory_space<vmem>>, vector<1x1x16x8xf32>
    %38 = vector.shape_cast %37 : vector<1x1x16x8xf32> to vector<16x8xf32>
    %39 = vector.shape_cast %36 : vector<16x8xf32> to vector<1x1x16x8xf32>
    tpu.vector_store %arg16[%c0_21, %c2, %c0_22, %c0_23], %39 {strides = array<i32>} : memref<3x16x16x8xf32, #tpu.memory_space<vmem>>, vector<1x1x16x8xf32>,
    %40 = vector.extract_strided_slice %27 {offsets = [0, 24], sizes = [16, 8], strides = [1, 1]} : vector<32x192xf32> to vector<16x8xf32>
    %c0_24 = arith.constant 0 : index
    %c3 = arith.constant 3 : index
    %c0_25 = arith.constant 0 : index
    %c0_26 = arith.constant 0 : index
    %41 = vector.load %arg16[%c0_24, %c3, %c0_25, %c0_26] : memref<3x16x16x8xf32, #tpu.memory_space<vmem>>, vector<1x1x16x8xf32>
    %42 = vector.shape_cast %41 : vector<1x1x16x8xf32> to vector<16x8xf32>
    %43 = vector.shape_cast %40 : vector<16x8xf32> to vector<1x1x16x8xf32>
    tpu.vector_store %arg16[%c0_24, %c3, %c0_25, %c0_26], %43 {strides = array<i32>} : memref<3x16x16x8xf32, #tpu.memory_space<vmem>>, vector<1x1x16x8xf32>,
    %44 = vector.extract_strided_slice %27 {offsets = [0, 32], sizes = [16, 8], strides = [1, 1]} : vector<32x192xf32> to vector<16x8xf32>
    %c0_27 = arith.constant 0 : index
    %c4 = arith.constant 4 : index
    %c0_28 = arith.constant 0 : index
    %c0_29 = arith.constant 0 : index
    %45 = vector.load %arg16[%c0_27, %c4, %c0_28, %c0_29] : memref<3x16x16x8xf32, #tpu.memory_space<vmem>>, vector<1x1x16x8xf32>
    %46 = vector.shape_cast %45 : vector<1x1x16x8xf32> to vector<16x8xf32>
    %47 = vector.shape_cast %44 : vector<16x8xf32> to vector<1x1x16x8xf32>
    tpu.vector_store %arg16[%c0_27, %c4, %c0_28, %c0_29], %47 {strides = array<i32>} : memref<3x16x16x8xf32, #tpu.memory_space<vmem>>, vector<1x1x16x8xf32>,
    %48 = vector.extract_strided_slice %27 {offsets = [0, 40], sizes = [16, 8], strides = [1, 1]} : vector<32x192xf32> to vector<16x8xf32>
    %c0_30 = arith.constant 0 : index
    %c5 = arith.constant 5 : index
    %c0_31 = arith.constant 0 : index
    %c0_32 = arith.constant 0 : index
    %49 = vector.load %arg16[%c0_30, %c5, %c0_31, %c0_32] : memref<3x16x16x8xf32, #tpu.memory_space<vmem>>, vector<1x1x16x8xf32>
    %50 = vector.shape_cast %49 : vector<1x1x16x8xf32> to vector<16x8xf32>
    %51 = vector.shape_cast %48 : vector<16x8xf32> to vector<1x1x16x8xf32>
    tpu.vector_store %arg16[%c0_30, %c5, %c0_31, %c0_32], %51 {strides = array<i32>} : memref<3x16x16x8xf32, #tpu.memory_space<vmem>>, vector<1x1x16x8xf32>,
    %52 = vector.extract_strided_slice %27 {offsets = [0, 48], sizes = [16, 8], strides = [1, 1]} : vector<32x192xf32> to vector<16x8xf32>
    %c0_33 = arith.constant 0 : index
    %c6 = arith.constant 6 : index
    %c0_34 = arith.constant 0 : index
    %c0_35 = arith.constant 0 : index
    %53 = vector.load %arg16[%c0_33, %c6, %c0_34, %c0_35] : memref<3x16x16x8xf32, #tpu.memory_space<vmem>>, vector<1x1x16x8xf32>
    %54 = vector.shape_cast %53 : vector<1x1x16x8xf32> to vector<16x8xf32>
    %55 = vector.shape_cast %52 : vector<16x8xf32> to vector<1x1x16x8xf32>
    tpu.vector_store %arg16[%c0_33, %c6, %c0_34, %c0_35], %55 {strides = array<i32>} : memref<3x16x16x8xf32, #tpu.memory_space<vmem>>, vector<1x1x16x8xf32>,
    %56 = vector.extract_strided_slice %27 {offsets = [0, 56], sizes = [16, 8], strides = [1, 1]} : vector<32x192xf32> to vector<16x8xf32>
    %c0_36 = arith.constant 0 : index
    %c7 = arith.constant 7 : index
    %c0_37 = arith.constant 0 : index
    %c0_38 = arith.constant 0 : index
    %57 = vector.load %arg16[%c0_36, %c7, %c0_37, %c0_38] : memref<3x16x16x8xf32, #tpu.memory_space<vmem>>, vector<1x1x16x8xf32>
    %58 = vector.shape_cast %57 : vector<1x1x16x8xf32> to vector<16x8xf32>
    %59 = vector.shape_cast %56 : vector<16x8xf32> to vector<1x1x16x8xf32>
    tpu.vector_store %arg16[%c0_36, %c7, %c0_37, %c0_38], %59 {strides = array<i32>} : memref<3x16x16x8xf32, #tpu.memory_space<vmem>>, vector<1x1x16x8xf32>,
    %60 = vector.extract_strided_slice %27 {offsets = [16, 0], sizes = [16, 8], strides = [1, 1]} : vector<32x192xf32> to vector<16x8xf32>
    %c0_39 = arith.constant 0 : index
    %c8 = arith.constant 8 : index
    %c0_40 = arith.constant 0 : index
    %c0_41 = arith.constant 0 : index
    %61 = vector.load %arg16[%c0_39, %c8, %c0_40, %c0_41] : memref<3x16x16x8xf32, #tpu.memory_space<vmem>>, vector<1x1x16x8xf32>
    %62 = vector.shape_cast %61 : vector<1x1x16x8xf32> to vector<16x8xf32>
    %63 = vector.shape_cast %60 : vector<16x8xf32> to vector<1x1x16x8xf32>
    tpu.vector_store %arg16[%c0_39, %c8, %c0_40, %c0_41], %63 {strides = array<i32>} : memref<3x16x16x8xf32, #tpu.memory_space<vmem>>, vector<1x1x16x8xf32>,
    %64 = vector.extract_strided_slice %27 {offsets = [16, 8], sizes = [16, 8], strides = [1, 1]} : vector<32x192xf32> to vector<16x8xf32>
    %c0_42 = arith.constant 0 : index
    %c9 = arith.constant 9 : index
    %c0_43 = arith.constant 0 : index
    %c0_44 = arith.constant 0 : index
    %65 = vector.load %arg16[%c0_42, %c9, %c0_43, %c0_44] : memref<3x16x16x8xf32, #tpu.memory_space<vmem>>, vector<1x1x16x8xf32>
    %66 = vector.shape_cast %65 : vector<1x1x16x8xf32> to vector<16x8xf32>
    %67 = vector.shape_cast %64 : vector<16x8xf32> to vector<1x1x16x8xf32>
    tpu.vector_store %arg16[%c0_42, %c9, %c0_43, %c0_44], %67 {strides = array<i32>} : memref<3x16x16x8xf32, #tpu.memory_space<vmem>>, vector<1x1x16x8xf32>,
    %68 = vector.extract_strided_slice %27 {offsets = [16, 16], sizes = [16, 8], strides = [1, 1]} : vector<32x192xf32> to vector<16x8xf32>
    %c0_45 = arith.constant 0 : index
    %c10 = arith.constant 10 : index
    %c0_46 = arith.constant 0 : index
    %c0_47 = arith.constant 0 : index
    %69 = vector.load %arg16[%c0_45, %c10, %c0_46, %c0_47] : memref<3x16x16x8xf32, #tpu.memory_space<vmem>>, vector<1x1x16x8xf32>
    %70 = vector.shape_cast %69 : vector<1x1x16x8xf32> to vector<16x8xf32>
    %71 = vector.shape_cast %68 : vector<16x8xf32> to vector<1x1x16x8xf32>
    tpu.vector_store %arg16[%c0_45, %c10, %c0_46, %c0_47], %71 {strides = array<i32>} : memref<3x16x16x8xf32, #tpu.memory_space<vmem>>, vector<1x1x16x8xf32>,
    %72 = vector.extract_strided_slice %27 {offsets = [16, 24], sizes = [16, 8], strides = [1, 1]} : vector<32x192xf32> to vector<16x8xf32>
    %c0_48 = arith.constant 0 : index
    %c11 = arith.constant 11 : index
    %c0_49 = arith.constant 0 : index
    %c0_50 = arith.constant 0 : index
    %73 = vector.load %arg16[%c0_48, %c11, %c0_49, %c0_50] : memref<3x16x16x8xf32, #tpu.memory_space<vmem>>, vector<1x1x16x8xf32>
    %74 = vector.shape_cast %73 : vector<1x1x16x8xf32> to vector<16x8xf32>
    %75 = vector.shape_cast %72 : vector<16x8xf32> to vector<1x1x16x8xf32>
    tpu.vector_store %arg16[%c0_48, %c11, %c0_49, %c0_50], %75 {strides = array<i32>} : memref<3x16x16x8xf32, #tpu.memory_space<vmem>>, vector<1x1x16x8xf32>,
    %76 = vector.extract_strided_slice %27 {offsets = [16, 32], sizes = [16, 8], strides = [1, 1]} : vector<32x192xf32> to vector<16x8xf32>
    %c0_51 = arith.constant 0 : index
    %c12 = arith.constant 12 : index
    %c0_52 = arith.constant 0 : index
    %c0_53 = arith.constant 0 : index
    %77 = vector.load %arg16[%c0_51, %c12, %c0_52, %c0_53] : memref<3x16x16x8xf32, #tpu.memory_space<vmem>>, vector<1x1x16x8xf32>
    %78 = vector.shape_cast %77 : vector<1x1x16x8xf32> to vector<16x8xf32>
    %79 = vector.shape_cast %76 : vector<16x8xf32> to vector<1x1x16x8xf32>
    tpu.vector_store %arg16[%c0_51, %c12, %c0_52, %c0_53], %79 {strides = array<i32>} : memref<3x16x16x8xf32, #tpu.memory_space<vmem>>, vector<1x1x16x8xf32>,
    %80 = vector.extract_strided_slice %27 {offsets = [16, 40], sizes = [16, 8], strides = [1, 1]} : vector<32x192xf32> to vector<16x8xf32>
    %c0_54 = arith.constant 0 : index
    %c13 = arith.constant 13 : index
    %c0_55 = arith.constant 0 : index
    %c0_56 = arith.constant 0 : index
    %81 = vector.load %arg16[%c0_54, %c13, %c0_55, %c0_56] : memref<3x16x16x8xf32, #tpu.memory_space<vmem>>, vector<1x1x16x8xf32>
    %82 = vector.shape_cast %81 : vector<1x1x16x8xf32> to vector<16x8xf32>
    %83 = vector.shape_cast %80 : vector<16x8xf32> to vector<1x1x16x8xf32>
    tpu.vector_store %arg16[%c0_54, %c13, %c0_55, %c0_56], %83 {strides = array<i32>} : memref<3x16x16x8xf32, #tpu.memory_space<vmem>>, vector<1x1x16x8xf32>,
    %84 = vector.extract_strided_slice %27 {offsets = [16, 48], sizes = [16, 8], strides = [1, 1]} : vector<32x192xf32> to vector<16x8xf32>
    %c0_57 = arith.constant 0 : index
    %c14 = arith.constant 14 : index
    %c0_58 = arith.constant 0 : index
    %c0_59 = arith.constant 0 : index
    %85 = vector.load %arg16[%c0_57, %c14, %c0_58, %c0_59] : memref<3x16x16x8xf32, #tpu.memory_space<vmem>>, vector<1x1x16x8xf32>
    %86 = vector.shape_cast %85 : vector<1x1x16x8xf32> to vector<16x8xf32>
    %87 = vector.shape_cast %84 : vector<16x8xf32> to vector<1x1x16x8xf32>
    tpu.vector_store %arg16[%c0_57, %c14, %c0_58, %c0_59], %87 {strides = array<i32>} : memref<3x16x16x8xf32, #tpu.memory_space<vmem>>, vector<1x1x16x8xf32>,
    %88 = vector.extract_strided_slice %27 {offsets = [16, 56], sizes = [16, 8], strides = [1, 1]} : vector<32x192xf32> to vector<16x8xf32>
    %c0_60 = arith.constant 0 : index
    %c15 = arith.constant 15 : index
    %c0_61 = arith.constant 0 : index
    %c0_62 = arith.constant 0 : index
    %89 = vector.load %arg16[%c0_60, %c15, %c0_61, %c0_62] : memref<3x16x16x8xf32, #tpu.memory_space<vmem>>, vector<1x1x16x8xf32>
    %90 = vector.shape_cast %89 : vector<1x1x16x8xf32> to vector<16x8xf32>
    %91 = vector.shape_cast %88 : vector<16x8xf32> to vector<1x1x16x8xf32>
    tpu.vector_store %arg16[%c0_60, %c15, %c0_61, %c0_62], %91 {strides = array<i32>} : memref<3x16x16x8xf32, #tpu.memory_space<vmem>>, vector<1x1x16x8xf32>,
    %92 = vector.extract_strided_slice %27 {offsets = [0, 64], sizes = [16, 8], strides = [1, 1]} : vector<32x192xf32> to vector<16x8xf32>
    %c1_63 = arith.constant 1 : index
    %c0_64 = arith.constant 0 : index
    %c0_65 = arith.constant 0 : index
    %c0_66 = arith.constant 0 : index
    %93 = vector.load %arg16[%c1_63, %c0_64, %c0_65, %c0_66] : memref<3x16x16x8xf32, #tpu.memory_space<vmem>>, vector<1x1x16x8xf32>
    %94 = vector.shape_cast %93 : vector<1x1x16x8xf32> to vector<16x8xf32>
    %95 = vector.shape_cast %92 : vector<16x8xf32> to vector<1x1x16x8xf32>
    tpu.vector_store %arg16[%c1_63, %c0_64, %c0_65, %c0_66], %95 {strides = array<i32>} : memref<3x16x16x8xf32, #tpu.memory_space<vmem>>, vector<1x1x16x8xf32>,
    %96 = vector.extract_strided_slice %27 {offsets = [0, 72], sizes = [16, 8], strides = [1, 1]} : vector<32x192xf32> to vector<16x8xf32>
    %c1_67 = arith.constant 1 : index
    %c1_68 = arith.constant 1 : index
    %c0_69 = arith.constant 0 : index
    %c0_70 = arith.constant 0 : index
    %97 = vector.load %arg16[%c1_67, %c1_68, %c0_69, %c0_70] : memref<3x16x16x8xf32, #tpu.memory_space<vmem>>, vector<1x1x16x8xf32>
    %98 = vector.shape_cast %97 : vector<1x1x16x8xf32> to vector<16x8xf32>
    %99 = vector.shape_cast %96 : vector<16x8xf32> to vector<1x1x16x8xf32>
    tpu.vector_store %arg16[%c1_67, %c1_68, %c0_69, %c0_70], %99 {strides = array<i32>} : memref<3x16x16x8xf32, #tpu.memory_space<vmem>>, vector<1x1x16x8xf32>,
    %100 = vector.extract_strided_slice %27 {offsets = [0, 80], sizes = [16, 8], strides = [1, 1]} : vector<32x192xf32> to vector<16x8xf32>
    %c1_71 = arith.constant 1 : index
    %c2_72 = arith.constant 2 : index
    %c0_73 = arith.constant 0 : index
    %c0_74 = arith.constant 0 : index
    %101 = vector.load %arg16[%c1_71, %c2_72, %c0_73, %c0_74] : memref<3x16x16x8xf32, #tpu.memory_space<vmem>>, vector<1x1x16x8xf32>
    %102 = vector.shape_cast %101 : vector<1x1x16x8xf32> to vector<16x8xf32>
    %103 = vector.shape_cast %100 : vector<16x8xf32> to vector<1x1x16x8xf32>
    tpu.vector_store %arg16[%c1_71, %c2_72, %c0_73, %c0_74], %103 {strides = array<i32>} : memref<3x16x16x8xf32, #tpu.memory_space<vmem>>, vector<1x1x16x8xf32>,
    %104 = vector.extract_strided_slice %27 {offsets = [0, 88], sizes = [16, 8], strides = [1, 1]} : vector<32x192xf32> to vector<16x8xf32>
    %c1_75 = arith.constant 1 : index
    %c3_76 = arith.constant 3 : index
    %c0_77 = arith.constant 0 : index
    %c0_78 = arith.constant 0 : index
    %105 = vector.load %arg16[%c1_75, %c3_76, %c0_77, %c0_78] : memref<3x16x16x8xf32, #tpu.memory_space<vmem>>, vector<1x1x16x8xf32>
    %106 = vector.shape_cast %105 : vector<1x1x16x8xf32> to vector<16x8xf32>
    %107 = vector.shape_cast %104 : vector<16x8xf32> to vector<1x1x16x8xf32>
    tpu.vector_store %arg16[%c1_75, %c3_76, %c0_77, %c0_78], %107 {strides = array<i32>} : memref<3x16x16x8xf32, #tpu.memory_space<vmem>>, vector<1x1x16x8xf32>,
    %108 = vector.extract_strided_slice %27 {offsets = [0, 96], sizes = [16, 8], strides = [1, 1]} : vector<32x192xf32> to vector<16x8xf32>
    %c1_79 = arith.constant 1 : index
    %c4_80 = arith.constant 4 : index
    %c0_81 = arith.constant 0 : index
    %c0_82 = arith.constant 0 : index
    %109 = vector.load %arg16[%c1_79, %c4_80, %c0_81, %c0_82] : memref<3x16x16x8xf32, #tpu.memory_space<vmem>>, vector<1x1x16x8xf32>
    %110 = vector.shape_cast %109 : vector<1x1x16x8xf32> to vector<16x8xf32>
    %111 = vector.shape_cast %108 : vector<16x8xf32> to vector<1x1x16x8xf32>
    tpu.vector_store %arg16[%c1_79, %c4_80, %c0_81, %c0_82], %111 {strides = array<i32>} : memref<3x16x16x8xf32, #tpu.memory_space<vmem>>, vector<1x1x16x8xf32>,
    %112 = vector.extract_strided_slice %27 {offsets = [0, 104], sizes = [16, 8], strides = [1, 1]} : vector<32x192xf32> to vector<16x8xf32>
    %c1_83 = arith.constant 1 : index
    %c5_84 = arith.constant 5 : index
    %c0_85 = arith.constant 0 : index
    %c0_86 = arith.constant 0 : index
    %113 = vector.load %arg16[%c1_83, %c5_84, %c0_85, %c0_86] : memref<3x16x16x8xf32, #tpu.memory_space<vmem>>, vector<1x1x16x8xf32>
    %114 = vector.shape_cast %113 : vector<1x1x16x8xf32> to vector<16x8xf32>
    %115 = vector.shape_cast %112 : vector<16x8xf32> to vector<1x1x16x8xf32>
    tpu.vector_store %arg16[%c1_83, %c5_84, %c0_85, %c0_86], %115 {strides = array<i32>} : memref<3x16x16x8xf32, #tpu.memory_space<vmem>>, vector<1x1x16x8xf32>,
    %116 = vector.extract_strided_slice %27 {offsets = [0, 112], sizes = [16, 8], strides = [1, 1]} : vector<32x192xf32> to vector<16x8xf32>
    %c1_87 = arith.constant 1 : index
    %c6_88 = arith.constant 6 : index
    %c0_89 = arith.constant 0 : index
    %c0_90 = arith.constant 0 : index
    %117 = vector.load %arg16[%c1_87, %c6_88, %c0_89, %c0_90] : memref<3x16x16x8xf32, #tpu.memory_space<vmem>>, vector<1x1x16x8xf32>
    %118 = vector.shape_cast %117 : vector<1x1x16x8xf32> to vector<16x8xf32>
    %119 = vector.shape_cast %116 : vector<16x8xf32> to vector<1x1x16x8xf32>
    tpu.vector_store %arg16[%c1_87, %c6_88, %c0_89, %c0_90], %119 {strides = array<i32>} : memref<3x16x16x8xf32, #tpu.memory_space<vmem>>, vector<1x1x16x8xf32>,
    %120 = vector.extract_strided_slice %27 {offsets = [0, 120], sizes = [16, 8], strides = [1, 1]} : vector<32x192xf32> to vector<16x8xf32>
    %c1_91 = arith.constant 1 : index
    %c7_92 = arith.constant 7 : index
    %c0_93 = arith.constant 0 : index
    %c0_94 = arith.constant 0 : index
    %121 = vector.load %arg16[%c1_91, %c7_92, %c0_93, %c0_94] : memref<3x16x16x8xf32, #tpu.memory_space<vmem>>, vector<1x1x16x8xf32>
    %122 = vector.shape_cast %121 : vector<1x1x16x8xf32> to vector<16x8xf32>
    %123 = vector.shape_cast %120 : vector<16x8xf32> to vector<1x1x16x8xf32>
    tpu.vector_store %arg16[%c1_91, %c7_92, %c0_93, %c0_94], %123 {strides = array<i32>} : memref<3x16x16x8xf32, #tpu.memory_space<vmem>>, vector<1x1x16x8xf32>,
    %124 = vector.extract_strided_slice %27 {offsets = [16, 64], sizes = [16, 8], strides = [1, 1]} : vector<32x192xf32> to vector<16x8xf32>
    %c1_95 = arith.constant 1 : index
    %c8_96 = arith.constant 8 : index
    %c0_97 = arith.constant 0 : index
    %c0_98 = arith.constant 0 : index
    %125 = vector.load %arg16[%c1_95, %c8_96, %c0_97, %c0_98] : memref<3x16x16x8xf32, #tpu.memory_space<vmem>>, vector<1x1x16x8xf32>
    %126 = vector.shape_cast %125 : vector<1x1x16x8xf32> to vector<16x8xf32>
    %127 = vector.shape_cast %124 : vector<16x8xf32> to vector<1x1x16x8xf32>
    tpu.vector_store %arg16[%c1_95, %c8_96, %c0_97, %c0_98], %127 {strides = array<i32>} : memref<3x16x16x8xf32, #tpu.memory_space<vmem>>, vector<1x1x16x8xf32>,
    %128 = vector.extract_strided_slice %27 {offsets = [16, 72], sizes = [16, 8], strides = [1, 1]} : vector<32x192xf32> to vector<16x8xf32>
    %c1_99 = arith.constant 1 : index
    %c9_100 = arith.constant 9 : index
    %c0_101 = arith.constant 0 : index
    %c0_102 = arith.constant 0 : index
    %129 = vector.load %arg16[%c1_99, %c9_100, %c0_101, %c0_102] : memref<3x16x16x8xf32, #tpu.memory_space<vmem>>, vector<1x1x16x8xf32>
    %130 = vector.shape_cast %129 : vector<1x1x16x8xf32> to vector<16x8xf32>
    %131 = vector.shape_cast %128 : vector<16x8xf32> to vector<1x1x16x8xf32>
    tpu.vector_store %arg16[%c1_99, %c9_100, %c0_101, %c0_102], %131 {strides = array<i32>} : memref<3x16x16x8xf32, #tpu.memory_space<vmem>>, vector<1x1x16x8xf32>,
    %132 = vector.extract_strided_slice %27 {offsets = [16, 80], sizes = [16, 8], strides = [1, 1]} : vector<32x192xf32> to vector<16x8xf32>
    %c1_103 = arith.constant 1 : index
    %c10_104 = arith.constant 10 : index
    %c0_105 = arith.constant 0 : index
    %c0_106 = arith.constant 0 : index
    %133 = vector.load %arg16[%c1_103, %c10_104, %c0_105, %c0_106] : memref<3x16x16x8xf32, #tpu.memory_space<vmem>>, vector<1x1x16x8xf32>
    %134 = vector.shape_cast %133 : vector<1x1x16x8xf32> to vector<16x8xf32>
    %135 = vector.shape_cast %132 : vector<16x8xf32> to vector<1x1x16x8xf32>
    tpu.vector_store %arg16[%c1_103, %c10_104, %c0_105, %c0_106], %135 {strides = array<i32>} : memref<3x16x16x8xf32, #tpu.memory_space<vmem>>, vector<1x1x16x8xf32>,
    %136 = vector.extract_strided_slice %27 {offsets = [16, 88], sizes = [16, 8], strides = [1, 1]} : vector<32x192xf32> to vector<16x8xf32>
    %c1_107 = arith.constant 1 : index
    %c11_108 = arith.constant 11 : index
    %c0_109 = arith.constant 0 : index
    %c0_110 = arith.constant 0 : index
    %137 = vector.load %arg16[%c1_107, %c11_108, %c0_109, %c0_110] : memref<3x16x16x8xf32, #tpu.memory_space<vmem>>, vector<1x1x16x8xf32>
    %138 = vector.shape_cast %137 : vector<1x1x16x8xf32> to vector<16x8xf32>
    %139 = vector.shape_cast %136 : vector<16x8xf32> to vector<1x1x16x8xf32>
    tpu.vector_store %arg16[%c1_107, %c11_108, %c0_109, %c0_110], %139 {strides = array<i32>} : memref<3x16x16x8xf32, #tpu.memory_space<vmem>>, vector<1x1x16x8xf32>,
    %140 = vector.extract_strided_slice %27 {offsets = [16, 96], sizes = [16, 8], strides = [1, 1]} : vector<32x192xf32> to vector<16x8xf32>
    %c1_111 = arith.constant 1 : index
    %c12_112 = arith.constant 12 : index
    %c0_113 = arith.constant 0 : index
    %c0_114 = arith.constant 0 : index
    %141 = vector.load %arg16[%c1_111, %c12_112, %c0_113, %c0_114] : memref<3x16x16x8xf32, #tpu.memory_space<vmem>>, vector<1x1x16x8xf32>
    %142 = vector.shape_cast %141 : vector<1x1x16x8xf32> to vector<16x8xf32>
    %143 = vector.shape_cast %140 : vector<16x8xf32> to vector<1x1x16x8xf32>
    tpu.vector_store %arg16[%c1_111, %c12_112, %c0_113, %c0_114], %143 {strides = array<i32>} : memref<3x16x16x8xf32, #tpu.memory_space<vmem>>, vector<1x1x16x8xf32>,
    %144 = vector.extract_strided_slice %27 {offsets = [16, 104], sizes = [16, 8], strides = [1, 1]} : vector<32x192xf32> to vector<16x8xf32>
    %c1_115 = arith.constant 1 : index
    %c13_116 = arith.constant 13 : index
    %c0_117 = arith.constant 0 : index
    %c0_118 = arith.constant 0 : index
    %145 = vector.load %arg16[%c1_115, %c13_116, %c0_117, %c0_118] : memref<3x16x16x8xf32, #tpu.memory_space<vmem>>, vector<1x1x16x8xf32>
    %146 = vector.shape_cast %145 : vector<1x1x16x8xf32> to vector<16x8xf32>
    %147 = vector.shape_cast %144 : vector<16x8xf32> to vector<1x1x16x8xf32>
    tpu.vector_store %arg16[%c1_115, %c13_116, %c0_117, %c0_118], %147 {strides = array<i32>} : memref<3x16x16x8xf32, #tpu.memory_space<vmem>>, vector<1x1x16x8xf32>,
    %148 = vector.extract_strided_slice %27 {offsets = [16, 112], sizes = [16, 8], strides = [1, 1]} : vector<32x192xf32> to vector<16x8xf32>
    %c1_119 = arith.constant 1 : index
    %c14_120 = arith.constant 14 : index
    %c0_121 = arith.constant 0 : index
    %c0_122 = arith.constant 0 : index
    %149 = vector.load %arg16[%c1_119, %c14_120, %c0_121, %c0_122] : memref<3x16x16x8xf32, #tpu.memory_space<vmem>>, vector<1x1x16x8xf32>
    %150 = vector.shape_cast %149 : vector<1x1x16x8xf32> to vector<16x8xf32>
    %151 = vector.shape_cast %148 : vector<16x8xf32> to vector<1x1x16x8xf32>
    tpu.vector_store %arg16[%c1_119, %c14_120, %c0_121, %c0_122], %151 {strides = array<i32>} : memref<3x16x16x8xf32, #tpu.memory_space<vmem>>, vector<1x1x16x8xf32>,
    %152 = vector.extract_strided_slice %27 {offsets = [16, 120], sizes = [16, 8], strides = [1, 1]} : vector<32x192xf32> to vector<16x8xf32>
    %c1_123 = arith.constant 1 : index
    %c15_124 = arith.constant 15 : index
    %c0_125 = arith.constant 0 : index
    %c0_126 = arith.constant 0 : index
    %153 = vector.load %arg16[%c1_123, %c15_124, %c0_125, %c0_126] : memref<3x16x16x8xf32, #tpu.memory_space<vmem>>, vector<1x1x16x8xf32>
    %154 = vector.shape_cast %153 : vector<1x1x16x8xf32> to vector<16x8xf32>
    %155 = vector.shape_cast %152 : vector<16x8xf32> to vector<1x1x16x8xf32>
    tpu.vector_store %arg16[%c1_123, %c15_124, %c0_125, %c0_126], %155 {strides = array<i32>} : memref<3x16x16x8xf32, #tpu.memory_space<vmem>>, vector<1x1x16x8xf32>,
    %156 = vector.extract_strided_slice %27 {offsets = [0, 128], sizes = [16, 8], strides = [1, 1]} : vector<32x192xf32> to vector<16x8xf32>
    %c2_127 = arith.constant 2 : index
    %c0_128 = arith.constant 0 : index
    %c0_129 = arith.constant 0 : index
    %c0_130 = arith.constant 0 : index
    %157 = vector.load %arg16[%c2_127, %c0_128, %c0_129, %c0_130] : memref<3x16x16x8xf32, #tpu.memory_space<vmem>>, vector<1x1x16x8xf32>
    %158 = vector.shape_cast %157 : vector<1x1x16x8xf32> to vector<16x8xf32>
    %159 = vector.shape_cast %156 : vector<16x8xf32> to vector<1x1x16x8xf32>
    tpu.vector_store %arg16[%c2_127, %c0_128, %c0_129, %c0_130], %159 {strides = array<i32>} : memref<3x16x16x8xf32, #tpu.memory_space<vmem>>, vector<1x1x16x8xf32>,
    %160 = vector.extract_strided_slice %27 {offsets = [0, 136], sizes = [16, 8], strides = [1, 1]} : vector<32x192xf32> to vector<16x8xf32>
    %c2_131 = arith.constant 2 : index
    %c1_132 = arith.constant 1 : index
    %c0_133 = arith.constant 0 : index
    %c0_134 = arith.constant 0 : index
    %161 = vector.load %arg16[%c2_131, %c1_132, %c0_133, %c0_134] : memref<3x16x16x8xf32, #tpu.memory_space<vmem>>, vector<1x1x16x8xf32>
    %162 = vector.shape_cast %161 : vector<1x1x16x8xf32> to vector<16x8xf32>
    %163 = vector.shape_cast %160 : vector<16x8xf32> to vector<1x1x16x8xf32>
    tpu.vector_store %arg16[%c2_131, %c1_132, %c0_133, %c0_134], %163 {strides = array<i32>} : memref<3x16x16x8xf32, #tpu.memory_space<vmem>>, vector<1x1x16x8xf32>,
    %164 = vector.extract_strided_slice %27 {offsets = [0, 144], sizes = [16, 8], strides = [1, 1]} : vector<32x192xf32> to vector<16x8xf32>
    %c2_135 = arith.constant 2 : index
    %c2_136 = arith.constant 2 : index
    %c0_137 = arith.constant 0 : index
    %c0_138 = arith.constant 0 : index
    %165 = vector.load %arg16[%c2_135, %c2_136, %c0_137, %c0_138] : memref<3x16x16x8xf32, #tpu.memory_space<vmem>>, vector<1x1x16x8xf32>
    %166 = vector.shape_cast %165 : vector<1x1x16x8xf32> to vector<16x8xf32>
    %167 = vector.shape_cast %164 : vector<16x8xf32> to vector<1x1x16x8xf32>
    tpu.vector_store %arg16[%c2_135, %c2_136, %c0_137, %c0_138], %167 {strides = array<i32>} : memref<3x16x16x8xf32, #tpu.memory_space<vmem>>, vector<1x1x16x8xf32>,
    %168 = vector.extract_strided_slice %27 {offsets = [0, 152], sizes = [16, 8], strides = [1, 1]} : vector<32x192xf32> to vector<16x8xf32>
    %c2_139 = arith.constant 2 : index
    %c3_140 = arith.constant 3 : index
    %c0_141 = arith.constant 0 : index
    %c0_142 = arith.constant 0 : index
    %169 = vector.load %arg16[%c2_139, %c3_140, %c0_141, %c0_142] : memref<3x16x16x8xf32, #tpu.memory_space<vmem>>, vector<1x1x16x8xf32>
    %170 = vector.shape_cast %169 : vector<1x1x16x8xf32> to vector<16x8xf32>
    %171 = vector.shape_cast %168 : vector<16x8xf32> to vector<1x1x16x8xf32>
    tpu.vector_store %arg16[%c2_139, %c3_140, %c0_141, %c0_142], %171 {strides = array<i32>} : memref<3x16x16x8xf32, #tpu.memory_space<vmem>>, vector<1x1x16x8xf32>,
    %172 = vector.extract_strided_slice %27 {offsets = [0, 160], sizes = [16, 8], strides = [1, 1]} : vector<32x192xf32> to vector<16x8xf32>
    %c2_143 = arith.constant 2 : index
    %c4_144 = arith.constant 4 : index
    %c0_145 = arith.constant 0 : index
    %c0_146 = arith.constant 0 : index
    %173 = vector.load %arg16[%c2_143, %c4_144, %c0_145, %c0_146] : memref<3x16x16x8xf32, #tpu.memory_space<vmem>>, vector<1x1x16x8xf32>
    %174 = vector.shape_cast %173 : vector<1x1x16x8xf32> to vector<16x8xf32>
    %175 = vector.shape_cast %172 : vector<16x8xf32> to vector<1x1x16x8xf32>
    tpu.vector_store %arg16[%c2_143, %c4_144, %c0_145, %c0_146], %175 {strides = array<i32>} : memref<3x16x16x8xf32, #tpu.memory_space<vmem>>, vector<1x1x16x8xf32>,
    %176 = vector.extract_strided_slice %27 {offsets = [0, 168], sizes = [16, 8], strides = [1, 1]} : vector<32x192xf32> to vector<16x8xf32>
    %c2_147 = arith.constant 2 : index
    %c5_148 = arith.constant 5 : index
    %c0_149 = arith.constant 0 : index
    %c0_150 = arith.constant 0 : index
    %177 = vector.load %arg16[%c2_147, %c5_148, %c0_149, %c0_150] : memref<3x16x16x8xf32, #tpu.memory_space<vmem>>, vector<1x1x16x8xf32>
    %178 = vector.shape_cast %177 : vector<1x1x16x8xf32> to vector<16x8xf32>
    %179 = vector.shape_cast %176 : vector<16x8xf32> to vector<1x1x16x8xf32>
    tpu.vector_store %arg16[%c2_147, %c5_148, %c0_149, %c0_150], %179 {strides = array<i32>} : memref<3x16x16x8xf32, #tpu.memory_space<vmem>>, vector<1x1x16x8xf32>,
    %180 = vector.extract_strided_slice %27 {offsets = [0, 176], sizes = [16, 8], strides = [1, 1]} : vector<32x192xf32> to vector<16x8xf32>
    %c2_151 = arith.constant 2 : index
    %c6_152 = arith.constant 6 : index
    %c0_153 = arith.constant 0 : index
    %c0_154 = arith.constant 0 : index
    %181 = vector.load %arg16[%c2_151, %c6_152, %c0_153, %c0_154] : memref<3x16x16x8xf32, #tpu.memory_space<vmem>>, vector<1x1x16x8xf32>
    %182 = vector.shape_cast %181 : vector<1x1x16x8xf32> to vector<16x8xf32>
    %183 = vector.shape_cast %180 : vector<16x8xf32> to vector<1x1x16x8xf32>
    tpu.vector_store %arg16[%c2_151, %c6_152, %c0_153, %c0_154], %183 {strides = array<i32>} : memref<3x16x16x8xf32, #tpu.memory_space<vmem>>, vector<1x1x16x8xf32>,
    %184 = vector.extract_strided_slice %27 {offsets = [0, 184], sizes = [16, 8], strides = [1, 1]} : vector<32x192xf32> to vector<16x8xf32>
    %c2_155 = arith.constant 2 : index
    %c7_156 = arith.constant 7 : index
    %c0_157 = arith.constant 0 : index
    %c0_158 = arith.constant 0 : index
    %185 = vector.load %arg16[%c2_155, %c7_156, %c0_157, %c0_158] : memref<3x16x16x8xf32, #tpu.memory_space<vmem>>, vector<1x1x16x8xf32>
    %186 = vector.shape_cast %185 : vector<1x1x16x8xf32> to vector<16x8xf32>
    %187 = vector.shape_cast %184 : vector<16x8xf32> to vector<1x1x16x8xf32>
    tpu.vector_store %arg16[%c2_155, %c7_156, %c0_157, %c0_158], %187 {strides = array<i32>} : memref<3x16x16x8xf32, #tpu.memory_space<vmem>>, vector<1x1x16x8xf32>,
    %188 = vector.extract_strided_slice %27 {offsets = [16, 128], sizes = [16, 8], strides = [1, 1]} : vector<32x192xf32> to vector<16x8xf32>
    %c2_159 = arith.constant 2 : index
    %c8_160 = arith.constant 8 : index
    %c0_161 = arith.constant 0 : index
    %c0_162 = arith.constant 0 : index
    %189 = vector.load %arg16[%c2_159, %c8_160, %c0_161, %c0_162] : memref<3x16x16x8xf32, #tpu.memory_space<vmem>>, vector<1x1x16x8xf32>
    %190 = vector.shape_cast %189 : vector<1x1x16x8xf32> to vector<16x8xf32>
    %191 = vector.shape_cast %188 : vector<16x8xf32> to vector<1x1x16x8xf32>
    tpu.vector_store %arg16[%c2_159, %c8_160, %c0_161, %c0_162], %191 {strides = array<i32>} : memref<3x16x16x8xf32, #tpu.memory_space<vmem>>, vector<1x1x16x8xf32>,
    %192 = vector.extract_strided_slice %27 {offsets = [16, 136], sizes = [16, 8], strides = [1, 1]} : vector<32x192xf32> to vector<16x8xf32>
    %c2_163 = arith.constant 2 : index
    %c9_164 = arith.constant 9 : index
    %c0_165 = arith.constant 0 : index
    %c0_166 = arith.constant 0 : index
    %193 = vector.load %arg16[%c2_163, %c9_164, %c0_165, %c0_166] : memref<3x16x16x8xf32, #tpu.memory_space<vmem>>, vector<1x1x16x8xf32>
    %194 = vector.shape_cast %193 : vector<1x1x16x8xf32> to vector<16x8xf32>
    %195 = vector.shape_cast %192 : vector<16x8xf32> to vector<1x1x16x8xf32>
    tpu.vector_store %arg16[%c2_163, %c9_164, %c0_165, %c0_166], %195 {strides = array<i32>} : memref<3x16x16x8xf32, #tpu.memory_space<vmem>>, vector<1x1x16x8xf32>,
    %196 = vector.extract_strided_slice %27 {offsets = [16, 144], sizes = [16, 8], strides = [1, 1]} : vector<32x192xf32> to vector<16x8xf32>
    %c2_167 = arith.constant 2 : index
    %c10_168 = arith.constant 10 : index
    %c0_169 = arith.constant 0 : index
    %c0_170 = arith.constant 0 : index
    %197 = vector.load %arg16[%c2_167, %c10_168, %c0_169, %c0_170] : memref<3x16x16x8xf32, #tpu.memory_space<vmem>>, vector<1x1x16x8xf32>
    %198 = vector.shape_cast %197 : vector<1x1x16x8xf32> to vector<16x8xf32>
    %199 = vector.shape_cast %196 : vector<16x8xf32> to vector<1x1x16x8xf32>
    tpu.vector_store %arg16[%c2_167, %c10_168, %c0_169, %c0_170], %199 {strides = array<i32>} : memref<3x16x16x8xf32, #tpu.memory_space<vmem>>, vector<1x1x16x8xf32>,
    %200 = vector.extract_strided_slice %27 {offsets = [16, 152], sizes = [16, 8], strides = [1, 1]} : vector<32x192xf32> to vector<16x8xf32>
    %c2_171 = arith.constant 2 : index
    %c11_172 = arith.constant 11 : index
    %c0_173 = arith.constant 0 : index
    %c0_174 = arith.constant 0 : index
    %201 = vector.load %arg16[%c2_171, %c11_172, %c0_173, %c0_174] : memref<3x16x16x8xf32, #tpu.memory_space<vmem>>, vector<1x1x16x8xf32>
    %202 = vector.shape_cast %201 : vector<1x1x16x8xf32> to vector<16x8xf32>
    %203 = vector.shape_cast %200 : vector<16x8xf32> to vector<1x1x16x8xf32>
    tpu.vector_store %arg16[%c2_171, %c11_172, %c0_173, %c0_174], %203 {strides = array<i32>} : memref<3x16x16x8xf32, #tpu.memory_space<vmem>>, vector<1x1x16x8xf32>,
    %204 = vector.extract_strided_slice %27 {offsets = [16, 160], sizes = [16, 8], strides = [1, 1]} : vector<32x192xf32> to vector<16x8xf32>
    %c2_175 = arith.constant 2 : index
    %c12_176 = arith.constant 12 : index
    %c0_177 = arith.constant 0 : index
    %c0_178 = arith.constant 0 : index
    %205 = vector.load %arg16[%c2_175, %c12_176, %c0_177, %c0_178] : memref<3x16x16x8xf32, #tpu.memory_space<vmem>>, vector<1x1x16x8xf32>
    %206 = vector.shape_cast %205 : vector<1x1x16x8xf32> to vector<16x8xf32>
    %207 = vector.shape_cast %204 : vector<16x8xf32> to vector<1x1x16x8xf32>
    tpu.vector_store %arg16[%c2_175, %c12_176, %c0_177, %c0_178], %207 {strides = array<i32>} : memref<3x16x16x8xf32, #tpu.memory_space<vmem>>, vector<1x1x16x8xf32>,
    %208 = vector.extract_strided_slice %27 {offsets = [16, 168], sizes = [16, 8], strides = [1, 1]} : vector<32x192xf32> to vector<16x8xf32>
    %c2_179 = arith.constant 2 : index
    %c13_180 = arith.constant 13 : index
    %c0_181 = arith.constant 0 : index
    %c0_182 = arith.constant 0 : index
    %209 = vector.load %arg16[%c2_179, %c13_180, %c0_181, %c0_182] : memref<3x16x16x8xf32, #tpu.memory_space<vmem>>, vector<1x1x16x8xf32>
    %210 = vector.shape_cast %209 : vector<1x1x16x8xf32> to vector<16x8xf32>
    %211 = vector.shape_cast %208 : vector<16x8xf32> to vector<1x1x16x8xf32>
    tpu.vector_store %arg16[%c2_179, %c13_180, %c0_181, %c0_182], %211 {strides = array<i32>} : memref<3x16x16x8xf32, #tpu.memory_space<vmem>>, vector<1x1x16x8xf32>,
    %212 = vector.extract_strided_slice %27 {offsets = [16, 176], sizes = [16, 8], strides = [1, 1]} : vector<32x192xf32> to vector<16x8xf32>
    %c2_183 = arith.constant 2 : index
    %c14_184 = arith.constant 14 : index
    %c0_185 = arith.constant 0 : index
    %c0_186 = arith.constant 0 : index
    %213 = vector.load %arg16[%c2_183, %c14_184, %c0_185, %c0_186] : memref<3x16x16x8xf32, #tpu.memory_space<vmem>>, vector<1x1x16x8xf32>
    %214 = vector.shape_cast %213 : vector<1x1x16x8xf32> to vector<16x8xf32>
    %215 = vector.shape_cast %212 : vector<16x8xf32> to vector<1x1x16x8xf32>
    tpu.vector_store %arg16[%c2_183, %c14_184, %c0_185, %c0_186], %215 {strides = array<i32>} : memref<3x16x16x8xf32, #tpu.memory_space<vmem>>, vector<1x1x16x8xf32>,
    %216 = vector.extract_strided_slice %27 {offsets = [16, 184], sizes = [16, 8], strides = [1, 1]} : vector<32x192xf32> to vector<16x8xf32>
    %c2_187 = arith.constant 2 : index
    %c15_188 = arith.constant 15 : index
    %c0_189 = arith.constant 0 : index
    %c0_190 = arith.constant 0 : index
    %217 = vector.load %arg16[%c2_187, %c15_188, %c0_189, %c0_190] : memref<3x16x16x8xf32, #tpu.memory_space<vmem>>, vector<1x1x16x8xf32>
    %218 = vector.shape_cast %217 : vector<1x1x16x8xf32> to vector<16x8xf32>
    %219 = vector.shape_cast %216 : vector<16x8xf32> to vector<1x1x16x8xf32>
    tpu.vector_store %arg16[%c2_187, %c15_188, %c0_189, %c0_190], %219 {strides = array<i32>} : memref<3x16x16x8xf32, #tpu.memory_space<vmem>>, vector<1x1x16x8xf32>,
    %c0_191 = arith.constant 0 : index
    %c0_192 = arith.constant 0 : index
    %c0_193 = arith.constant 0 : index
    %c0_194 = arith.constant 0 : index
    %220 = vector.load %arg16[%c0_191, %c0_192, %c0_193, %c0_194] : memref<3x16x16x8xf32, #tpu.memory_space<vmem>>, vector<1x16x16x8xf32>
    %221 = vector.shape_cast %220 : vector<1x16x16x8xf32> to vector<16x16x8xf32>
    %cst_195 = arith.constant 0.353553385 : f32
    %222 = vector.broadcast %cst_195 : f32 to vector<16x16x8xf32>
    %223 = arith.mulf %221, %222 : vector<16x16x8xf32>
    %c1_196 = arith.constant 1 : index
    %c0_197 = arith.constant 0 : index
    %c0_198 = arith.constant 0 : index
    %c0_199 = arith.constant 0 : index
    %224 = vector.load %arg16[%c1_196, %c0_197, %c0_198, %c0_199] : memref<3x16x16x8xf32, #tpu.memory_space<vmem>>, vector<1x16x16x8xf32>
    %225 = vector.shape_cast %224 : vector<1x16x16x8xf32> to vector<16x16x8xf32>
    %c2_200 = arith.constant 2 : index
    %c0_201 = arith.constant 0 : index
    %c0_202 = arith.constant 0 : index
    %c0_203 = arith.constant 0 : index
    %226 = vector.load %arg16[%c2_200, %c0_201, %c0_202, %c0_203] : memref<3x16x16x8xf32, #tpu.memory_space<vmem>>, vector<1x16x16x8xf32>
    %227 = vector.shape_cast %226 : vector<1x16x16x8xf32> to vector<16x16x8xf32>
    "tpu.trace_start"() <{level = 10 : i32, message = "hqd,hkd->hqk"}> : () -> ()
    %cst_204 = arith.constant dense<0.000000e+00> : vector<16x16x16xf32>
    %228 = tpu.matmul %223, %225, %cst_204 {dimension_numbers = #tpu.dot_dimension_numbers<[2], [2], [1], [1], [0, 0, 0, 1, 1, 1], [0], [0]>} : vector<16x16x8xf32>, vector<16x16x8xf32>, vector<16x16x16xf32> -> vector<16x16x16xf32>
    "tpu.trace_stop"() : () -> ()
    %cst_205 = arith.constant dense<0xFF800000> : vector<16x16xf32>
    %229 = vector.multi_reduction <maximumf>, %228, %cst_205 [2] : vector<16x16x16xf32> to vector<16x16xf32>
    %230 = vector.shape_cast %229 : vector<16x16xf32> to vector<16x16x1xf32>
    %231 = vector.broadcast %230 : vector<16x16x1xf32> to vector<16x16x16xf32>
    %232 = arith.subf %228, %231 : vector<16x16x16xf32>
    %233 = math.exp %232 : vector<16x16x16xf32>
    %cst_206 = arith.constant dense<0.000000e+00> : vector<16x16xf32>
    %234 = vector.multi_reduction <add>, %233, %cst_206 [2] : vector<16x16x16xf32> to vector<16x16xf32>
    %235 = vector.shape_cast %234 : vector<16x16xf32> to vector<16x16x1xf32>
    %236 = tpu.reciprocal %235 {approx = true} : vector<16x16x1xf32> -> vector<16x16x1xf32>
    %237 = vector.broadcast %236 : vector<16x16x1xf32> to vector<16x16x16xf32>
    %238 = arith.mulf %233, %237 : vector<16x16x16xf32>
    %c0_207 = arith.constant 0 : index
    %c0_208 = arith.constant 0 : index
    %c0_209 = arith.constant 0 : index
    %239 = vector.load %arg15[%c0_207, %c0_208, %c0_209] : memref<16x16x16xf32, #tpu.memory_space<vmem>>, vector<16x16x16xf32>
    tpu.vector_store %arg15[%c0_207, %c0_208, %c0_209], %238 {strides = array<i32>} : memref<16x16x16xf32, #tpu.memory_space<vmem>>, vector<16x16x16xf32>,
    "tpu.trace_start"() <{level = 10 : i32, message = "hqk,hkd->hqd"}> : () -> ()
    %cst_210 = arith.constant dense<0.000000e+00> : vector<16x16x8xf32>
    %240 = tpu.matmul %238, %227, %cst_210 {dimension_numbers = #tpu.dot_dimension_numbers<[2], [1], [1], [2], [0, 0, 0, 1, 1, 2], [0], [0]>} : vector<16x16x16xf32>, vector<16x16x8xf32>, vector<16x16x8xf32> -> vector<16x16x8xf32>
    "tpu.trace_stop"() : () -> ()
    %241 = vector.extract_strided_slice %240 {offsets = [0, 0, 0], sizes = [1, 16, 8], strides = [1, 1, 1]} : vector<16x16x8xf32> to vector<1x16x8xf32>
    %242 = vector.shape_cast %241 : vector<1x16x8xf32> to vector<16x8xf32>
    %c0_211 = arith.constant 0 : index
    %c0_212 = arith.constant 0 : index
    %243 = vector.load %arg17[%c0_211, %c0_212] : memref<32x64xf32, #tpu.memory_space<vmem>>, vector<16x8xf32>
    tpu.vector_store %arg17[%c0_211, %c0_212], %242 {strides = array<i32>} : memref<32x64xf32, #tpu.memory_space<vmem>>, vector<16x8xf32>,
    %244 = vector.extract_strided_slice %240 {offsets = [1, 0, 0], sizes = [1, 16, 8], strides = [1, 1, 1]} : vector<16x16x8xf32> to vector<1x16x8xf32>
    %245 = vector.shape_cast %244 : vector<1x16x8xf32> to vector<16x8xf32>
    %c0_213 = arith.constant 0 : index
    %c8_214 = arith.constant 8 : index
    %246 = vector.load %arg17[%c0_213, %c8_214] : memref<32x64xf32, #tpu.memory_space<vmem>>, vector<16x8xf32>
    tpu.vector_store %arg17[%c0_213, %c8_214], %245 {strides = array<i32>} : memref<32x64xf32, #tpu.memory_space<vmem>>, vector<16x8xf32>,
    %247 = vector.extract_strided_slice %240 {offsets = [2, 0, 0], sizes = [1, 16, 8], strides = [1, 1, 1]} : vector<16x16x8xf32> to vector<1x16x8xf32>
    %248 = vector.shape_cast %247 : vector<1x16x8xf32> to vector<16x8xf32>
    %c0_215 = arith.constant 0 : index
    %c16 = arith.constant 16 : index
    %249 = vector.load %arg17[%c0_215, %c16] : memref<32x64xf32, #tpu.memory_space<vmem>>, vector<16x8xf32>
    tpu.vector_store %arg17[%c0_215, %c16], %248 {strides = array<i32>} : memref<32x64xf32, #tpu.memory_space<vmem>>, vector<16x8xf32>,
    %250 = vector.extract_strided_slice %240 {offsets = [3, 0, 0], sizes = [1, 16, 8], strides = [1, 1, 1]} : vector<16x16x8xf32> to vector<1x16x8xf32>
    %251 = vector.shape_cast %250 : vector<1x16x8xf32> to vector<16x8xf32>
    %c0_216 = arith.constant 0 : index
    %c24 = arith.constant 24 : index
    %252 = vector.load %arg17[%c0_216, %c24] : memref<32x64xf32, #tpu.memory_space<vmem>>, vector<16x8xf32>
    tpu.vector_store %arg17[%c0_216, %c24], %251 {strides = array<i32>} : memref<32x64xf32, #tpu.memory_space<vmem>>, vector<16x8xf32>,
    %253 = vector.extract_strided_slice %240 {offsets = [4, 0, 0], sizes = [1, 16, 8], strides = [1, 1, 1]} : vector<16x16x8xf32> to vector<1x16x8xf32>
    %254 = vector.shape_cast %253 : vector<1x16x8xf32> to vector<16x8xf32>
    %c0_217 = arith.constant 0 : index
    %c32 = arith.constant 32 : index
    %255 = vector.load %arg17[%c0_217, %c32] : memref<32x64xf32, #tpu.memory_space<vmem>>, vector<16x8xf32>
    tpu.vector_store %arg17[%c0_217, %c32], %254 {strides = array<i32>} : memref<32x64xf32, #tpu.memory_space<vmem>>, vector<16x8xf32>,
    %256 = vector.extract_strided_slice %240 {offsets = [5, 0, 0], sizes = [1, 16, 8], strides = [1, 1, 1]} : vector<16x16x8xf32> to vector<1x16x8xf32>
    %257 = vector.shape_cast %256 : vector<1x16x8xf32> to vector<16x8xf32>
    %c0_218 = arith.constant 0 : index
    %c40 = arith.constant 40 : index
    %258 = vector.load %arg17[%c0_218, %c40] : memref<32x64xf32, #tpu.memory_space<vmem>>, vector<16x8xf32>
    tpu.vector_store %arg17[%c0_218, %c40], %257 {strides = array<i32>} : memref<32x64xf32, #tpu.memory_space<vmem>>, vector<16x8xf32>,
    %259 = vector.extract_strided_slice %240 {offsets = [6, 0, 0], sizes = [1, 16, 8], strides = [1, 1, 1]} : vector<16x16x8xf32> to vector<1x16x8xf32>
    %260 = vector.shape_cast %259 : vector<1x16x8xf32> to vector<16x8xf32>
    %c0_219 = arith.constant 0 : index
    %c48 = arith.constant 48 : index
    %261 = vector.load %arg17[%c0_219, %c48] : memref<32x64xf32, #tpu.memory_space<vmem>>, vector<16x8xf32>
    tpu.vector_store %arg17[%c0_219, %c48], %260 {strides = array<i32>} : memref<32x64xf32, #tpu.memory_space<vmem>>, vector<16x8xf32>,
    %262 = vector.extract_strided_slice %240 {offsets = [7, 0, 0], sizes = [1, 16, 8], strides = [1, 1, 1]} : vector<16x16x8xf32> to vector<1x16x8xf32>
    %263 = vector.shape_cast %262 : vector<1x16x8xf32> to vector<16x8xf32>
    %c0_220 = arith.constant 0 : index
    %c56 = arith.constant 56 : index
    %264 = vector.load %arg17[%c0_220, %c56] : memref<32x64xf32, #tpu.memory_space<vmem>>, vector<16x8xf32>
    tpu.vector_store %arg17[%c0_220, %c56], %263 {strides = array<i32>} : memref<32x64xf32, #tpu.memory_space<vmem>>, vector<16x8xf32>,
    %265 = vector.extract_strided_slice %240 {offsets = [8, 0, 0], sizes = [1, 16, 8], strides = [1, 1, 1]} : vector<16x16x8xf32> to vector<1x16x8xf32>
    %266 = vector.shape_cast %265 : vector<1x16x8xf32> to vector<16x8xf32>
    %c16_221 = arith.constant 16 : index
    %c0_222 = arith.constant 0 : index
    %267 = vector.load %arg17[%c16_221, %c0_222] : memref<32x64xf32, #tpu.memory_space<vmem>>, vector<16x8xf32>
    tpu.vector_store %arg17[%c16_221, %c0_222], %266 {strides = array<i32>} : memref<32x64xf32, #tpu.memory_space<vmem>>, vector<16x8xf32>,
    %268 = vector.extract_strided_slice %240 {offsets = [9, 0, 0], sizes = [1, 16, 8], strides = [1, 1, 1]} : vector<16x16x8xf32> to vector<1x16x8xf32>
    %269 = vector.shape_cast %268 : vector<1x16x8xf32> to vector<16x8xf32>
    %c16_223 = arith.constant 16 : index
    %c8_224 = arith.constant 8 : index
    %270 = vector.load %arg17[%c16_223, %c8_224] : memref<32x64xf32, #tpu.memory_space<vmem>>, vector<16x8xf32>
    tpu.vector_store %arg17[%c16_223, %c8_224], %269 {strides = array<i32>} : memref<32x64xf32, #tpu.memory_space<vmem>>, vector<16x8xf32>,
    %271 = vector.extract_strided_slice %240 {offsets = [10, 0, 0], sizes = [1, 16, 8], strides = [1, 1, 1]} : vector<16x16x8xf32> to vector<1x16x8xf32>
    %272 = vector.shape_cast %271 : vector<1x16x8xf32> to vector<16x8xf32>
    %c16_225 = arith.constant 16 : index
    %c16_226 = arith.constant 16 : index
    %273 = vector.load %arg17[%c16_225, %c16_226] : memref<32x64xf32, #tpu.memory_space<vmem>>, vector<16x8xf32>
    tpu.vector_store %arg17[%c16_225, %c16_226], %272 {strides = array<i32>} : memref<32x64xf32, #tpu.memory_space<vmem>>, vector<16x8xf32>,
    %274 = vector.extract_strided_slice %240 {offsets = [11, 0, 0], sizes = [1, 16, 8], strides = [1, 1, 1]} : vector<16x16x8xf32> to vector<1x16x8xf32>
    %275 = vector.shape_cast %274 : vector<1x16x8xf32> to vector<16x8xf32>
    %c16_227 = arith.constant 16 : index
    %c24_228 = arith.constant 24 : index
    %276 = vector.load %arg17[%c16_227, %c24_228] : memref<32x64xf32, #tpu.memory_space<vmem>>, vector<16x8xf32>
    tpu.vector_store %arg17[%c16_227, %c24_228], %275 {strides = array<i32>} : memref<32x64xf32, #tpu.memory_space<vmem>>, vector<16x8xf32>,
    %277 = vector.extract_strided_slice %240 {offsets = [12, 0, 0], sizes = [1, 16, 8], strides = [1, 1, 1]} : vector<16x16x8xf32> to vector<1x16x8xf32>
    %278 = vector.shape_cast %277 : vector<1x16x8xf32> to vector<16x8xf32>
    %c16_229 = arith.constant 16 : index
    %c32_230 = arith.constant 32 : index
    %279 = vector.load %arg17[%c16_229, %c32_230] : memref<32x64xf32, #tpu.memory_space<vmem>>, vector<16x8xf32>
    tpu.vector_store %arg17[%c16_229, %c32_230], %278 {strides = array<i32>} : memref<32x64xf32, #tpu.memory_space<vmem>>, vector<16x8xf32>,
    %280 = vector.extract_strided_slice %240 {offsets = [13, 0, 0], sizes = [1, 16, 8], strides = [1, 1, 1]} : vector<16x16x8xf32> to vector<1x16x8xf32>
    %281 = vector.shape_cast %280 : vector<1x16x8xf32> to vector<16x8xf32>
    %c16_231 = arith.constant 16 : index
    %c40_232 = arith.constant 40 : index
    %282 = vector.load %arg17[%c16_231, %c40_232] : memref<32x64xf32, #tpu.memory_space<vmem>>, vector<16x8xf32>
    tpu.vector_store %arg17[%c16_231, %c40_232], %281 {strides = array<i32>} : memref<32x64xf32, #tpu.memory_space<vmem>>, vector<16x8xf32>,
    %283 = vector.extract_strided_slice %240 {offsets = [14, 0, 0], sizes = [1, 16, 8], strides = [1, 1, 1]} : vector<16x16x8xf32> to vector<1x16x8xf32>
    %284 = vector.shape_cast %283 : vector<1x16x8xf32> to vector<16x8xf32>
    %c16_233 = arith.constant 16 : index
    %c48_234 = arith.constant 48 : index
    %285 = vector.load %arg17[%c16_233, %c48_234] : memref<32x64xf32, #tpu.memory_space<vmem>>, vector<16x8xf32>
    tpu.vector_store %arg17[%c16_233, %c48_234], %284 {strides = array<i32>} : memref<32x64xf32, #tpu.memory_space<vmem>>, vector<16x8xf32>,
    %286 = vector.extract_strided_slice %240 {offsets = [15, 0, 0], sizes = [1, 16, 8], strides = [1, 1, 1]} : vector<16x16x8xf32> to vector<1x16x8xf32>
    %287 = vector.shape_cast %286 : vector<1x16x8xf32> to vector<16x8xf32>
    %c16_235 = arith.constant 16 : index
    %c56_236 = arith.constant 56 : index
    %288 = vector.load %arg17[%c16_235, %c56_236] : memref<32x64xf32, #tpu.memory_space<vmem>>, vector<16x8xf32>
    tpu.vector_store %arg17[%c16_235, %c56_236], %287 {strides = array<i32>} : memref<32x64xf32, #tpu.memory_space<vmem>>, vector<16x8xf32>,
    %c0_237 = arith.constant 0 : index
    %c0_238 = arith.constant 0 : index
    %289 = vector.load %arg17[%c0_237, %c0_238] : memref<32x64xf32, #tpu.memory_space<vmem>>, vector<32x64xf32>
    %c0_239 = arith.constant 0 : index
    %c0_240 = arith.constant 0 : index
    %290 = vector.load %arg4[%c0_239, %c0_240] : memref<64x64xf32, #tpu.memory_space<vmem>>, vector<64x64xf32>
    %cst_241 = arith.constant dense<0.000000e+00> : vector<32x64xf32>
    %291 = tpu.matmul %289, %290, %cst_241 {dimension_numbers = #tpu.dot_dimension_numbers<[1], [0], [0], [1], [0, 0, 1, 1], [], []>} : vector<32x64xf32>, vector<64x64xf32>, vector<32x64xf32> -> vector<32x64xf32>
    %c0_242 = arith.constant 0 : index
    %c0_243 = arith.constant 0 : index
    %292 = vector.load %arg5[%c0_242, %c0_243] : memref<1x64xf32, #tpu.memory_space<vmem>>, vector<1x64xf32>
    %293 = vector.broadcast %292 : vector<1x64xf32> to vector<32x64xf32>
    %294 = arith.addf %291, %293 : vector<32x64xf32>
    %295 = arith.addf %0, %294 : vector<32x64xf32>
    %c0_244 = arith.constant 0 : index
    %c0_245 = arith.constant 0 : index
    %296 = vector.load %arg8[%c0_244, %c0_245] : memref<1x64xf32, #tpu.memory_space<vmem>>, vector<1x64xf32>
    %c0_246 = arith.constant 0 : index
    %c0_247 = arith.constant 0 : index
    %297 = vector.load %arg9[%c0_246, %c0_247] : memref<1x64xf32, #tpu.memory_space<vmem>>, vector<1x64xf32>
    %cst_248 = arith.constant dense<0.000000e+00> : vector<32xf32>
    %298 = vector.multi_reduction <add>, %295, %cst_248 [1] : vector<32x64xf32> to vector<32xf32>
    %299 = vector.shape_cast %298 : vector<32xf32> to vector<32x1xf32>
    %cst_249 = arith.constant 6.400000e+01 : f32
    %300 = vector.broadcast %cst_249 : f32 to vector<32x1xf32>
    %301 = arith.divf %299, %300 : vector<32x1xf32>
    %302 = vector.broadcast %301 : vector<32x1xf32> to vector<32x64xf32>
    %303 = arith.subf %295, %302 : vector<32x64xf32>
    %304 = arith.mulf %303, %303 : vector<32x64xf32>
    %cst_250 = arith.constant dense<0.000000e+00> : vector<32xf32>
    %305 = vector.multi_reduction <add>, %304, %cst_250 [1] : vector<32x64xf32> to vector<32xf32>
    %306 = vector.shape_cast %305 : vector<32xf32> to vector<32x1xf32>
    %cst_251 = arith.constant 6.400000e+01 : f32
    %307 = vector.broadcast %cst_251 : f32 to vector<32x1xf32>
    %308 = arith.divf %306, %307 : vector<32x1xf32>
    %cst_252 = arith.constant 9.99999974E-6 : f32
    %309 = vector.broadcast %cst_252 : f32 to vector<32x1xf32>
    %310 = arith.addf %308, %309 : vector<32x1xf32>
    %311 = math.rsqrt %310 : vector<32x1xf32>
    %312 = vector.broadcast %311 : vector<32x1xf32> to vector<32x64xf32>
    %313 = arith.mulf %303, %312 : vector<32x64xf32>
    %314 = vector.broadcast %296 : vector<1x64xf32> to vector<32x64xf32>
    %315 = arith.mulf %313, %314 : vector<32x64xf32>
    %316 = vector.broadcast %297 : vector<1x64xf32> to vector<32x64xf32>
    %317 = arith.addf %315, %316 : vector<32x64xf32>
    %c0_253 = arith.constant 0 : index
    %c0_254 = arith.constant 0 : index
    %318 = vector.load %arg10[%c0_253, %c0_254] : memref<64x256xf32, #tpu.memory_space<vmem>>, vector<64x256xf32>
    %cst_255 = arith.constant dense<0.000000e+00> : vector<32x256xf32>
    %319 = tpu.matmul %317, %318, %cst_255 {dimension_numbers = #tpu.dot_dimension_numbers<[1], [0], [0], [1], [0, 0, 1, 1], [], []>} : vector<32x64xf32>, vector<64x256xf32>, vector<32x256xf32> -> vector<32x256xf32>
    %c0_256 = arith.constant 0 : index
    %c0_257 = arith.constant 0 : index
    %320 = vector.load %arg11[%c0_256, %c0_257] : memref<1x256xf32, #tpu.memory_space<vmem>>, vector<1x256xf32>
    %321 = vector.broadcast %320 : vector<1x256xf32> to vector<32x256xf32>
    %322 = arith.addf %319, %321 : vector<32x256xf32>
    %cst_258 = arith.constant 5.000000e-01 : f32
    %323 = vector.broadcast %cst_258 : f32 to vector<32x256xf32>
    %324 = arith.mulf %323, %322 : vector<32x256xf32>
    %cst_259 = arith.constant 4.471500e-02 : f32
    %325 = vector.broadcast %cst_259 : f32 to vector<32x256xf32>
    %326 = arith.mulf %325, %322 : vector<32x256xf32>
    %327 = arith.mulf %326, %322 : vector<32x256xf32>
    %328 = arith.mulf %327, %322 : vector<32x256xf32>
    %329 = arith.addf %322, %328 : vector<32x256xf32>
    %cst_260 = arith.constant 0.797884583 : f32
    %330 = vector.broadcast %cst_260 : f32 to vector<32x256xf32>
    %331 = arith.mulf %330, %329 : vector<32x256xf32>
    %332 = math.tanh %331 : vector<32x256xf32>
    %cst_261 = arith.constant 1.000000e+00 : f32
    %333 = vector.broadcast %cst_261 : f32 to vector<32x256xf32>
    %334 = arith.addf %333, %332 : vector<32x256xf32>
    %335 = arith.mulf %324, %334 : vector<32x256xf32>
    %c0_262 = arith.constant 0 : index
    %c0_263 = arith.constant 0 : index
    %336 = vector.load %arg12[%c0_262, %c0_263] : memref<256x64xf32, #tpu.memory_space<vmem>>, vector<256x64xf32>
    %cst_264 = arith.constant dense<0.000000e+00> : vector<32x64xf32>
    %337 = tpu.matmul %335, %336, %cst_264 {dimension_numbers = #tpu.dot_dimension_numbers<[1], [0], [0], [1], [0, 0, 1, 1], [], []>} : vector<32x256xf32>, vector<256x64xf32>, vector<32x64xf32> -> vector<32x64xf32>
    %c0_265 = arith.constant 0 : index
    %c0_266 = arith.constant 0 : index
    %338 = vector.load %arg13[%c0_265, %c0_266] : memref<1x64xf32, #tpu.memory_space<vmem>>, vector<1x64xf32>
    %339 = vector.broadcast %338 : vector<1x64xf32> to vector<32x64xf32>
    %340 = arith.addf %337, %339 : vector<32x64xf32>
    %341 = arith.addf %295, %340 : vector<32x64xf32>
    %c0_267 = arith.constant 0 : index
    %c0_268 = arith.constant 0 : index
    %342 = vector.load %arg14[%c0_267, %c0_268] : memref<32x64xf32, #tpu.memory_space<vmem>>, vector<32x64xf32>
    tpu.vector_store %arg14[%c0_267, %c0_268], %341 {strides = array<i32>} : memref<32x64xf32, #tpu.memory_space<vmem>>, vector<32x64xf32>,
    return
  }
  func.func @transform_0(%arg0: i32) -> (i32, i32) {
    %c0_i32 = arith.constant 0 : i32
    %c0_i32_0 = arith.constant 0 : i32
    return %arg0, %c0_i32 : i32, i32
  }
  func.func @transform_1(%arg0: i32) -> (i32, i32) {
    %c0_i32 = arith.constant 0 : i32
    %c0_i32_0 = arith.constant 0 : i32
    %c0_i32_1 = arith.constant 0 : i32
    return %c0_i32, %c0_i32_0 : i32, i32
  }
  func.func @transform_2(%arg0: i32) -> (i32, i32) {
    %c0_i32 = arith.constant 0 : i32
    %c0_i32_0 = arith.constant 0 : i32
    %c0_i32_1 = arith.constant 0 : i32
    return %c0_i32, %c0_i32_0 : i32, i32
  }
  func.func @transform_3(%arg0: i32) -> (i32, i32) {
    %c0_i32 = arith.constant 0 : i32
    %c0_i32_0 = arith.constant 0 : i32
    %c0_i32_1 = arith.constant 0 : i32
    return %c0_i32, %c0_i32_0 : i32, i32
  }
  func.func @transform_4(%arg0: i32) -> (i32, i32) {
    %c0_i32 = arith.constant 0 : i32
    %c0_i32_0 = arith.constant 0 : i32
    %c0_i32_1 = arith.constant 0 : i32
    return %c0_i32, %c0_i32_0 : i32, i32
  }
  func.func @transform_5(%arg0: i32) -> (i32, i32) {
    %c0_i32 = arith.constant 0 : i32
    %c0_i32_0 = arith.constant 0 : i32
    %c0_i32_1 = arith.constant 0 : i32
    return %c0_i32, %c0_i32_0 : i32, i32
  }
  func.func @transform_6(%arg0: i32) -> (i32, i32) {
    %c0_i32 = arith.constant 0 : i32
    %c0_i32_0 = arith.constant 0 : i32
    %c0_i32_1 = arith.constant 0 : i32
    return %c0_i32, %c0_i32_0 : i32, i32
  }
  func.func @transform_7(%arg0: i32) -> (i32, i32) {
    %c0_i32 = arith.constant 0 : i32
    %c0_i32_0 = arith.constant 0 : i32
    %c0_i32_1 = arith.constant 0 : i32
    return %c0_i32, %c0_i32_0 : i32, i32
  }
  func.func @transform_8(%arg0: i32) -> (i32, i32) {
    %c0_i32 = arith.constant 0 : i32
    %c0_i32_0 = arith.constant 0 : i32
    %c0_i32_1 = arith.constant 0 : i32
    return %c0_i32, %c0_i32_0 : i32, i32
  }
  func.func @transform_9(%arg0: i32) -> (i32, i32) {
    %c0_i32 = arith.constant 0 : i32
    %c0_i32_0 = arith.constant 0 : i32
    %c0_i32_1 = arith.constant 0 : i32
    return %c0_i32, %c0_i32_0 : i32, i32
  }
  func.func @transform_10(%arg0: i32) -> (i32, i32) {
    %c0_i32 = arith.constant 0 : i32
    %c0_i32_0 = arith.constant 0 : i32
    %c0_i32_1 = arith.constant 0 : i32
    return %c0_i32, %c0_i32_0 : i32, i32
  }
  func.func @transform_11(%arg0: i32) -> (i32, i32) {
    %c0_i32 = arith.constant 0 : i32
    %c0_i32_0 = arith.constant 0 : i32
    %c0_i32_1 = arith.constant 0 : i32
    return %c0_i32, %c0_i32_0 : i32, i32
  }
  func.func @transform_12(%arg0: i32) -> (i32, i32) {
    %c0_i32 = arith.constant 0 : i32
    %c0_i32_0 = arith.constant 0 : i32
    %c0_i32_1 = arith.constant 0 : i32
    return %c0_i32, %c0_i32_0 : i32, i32
  }
  func.func @transform_13(%arg0: i32) -> (i32, i32) {
    %c0_i32 = arith.constant 0 : i32
    %c0_i32_0 = arith.constant 0 : i32
    return %arg0, %c0_i32 : i32, i32
  }
  func.func @transform_14(%arg0: i32) -> (i32, i32, i32) {
    %c0_i32 = arith.constant 0 : i32
    %c0_i32_0 = arith.constant 0 : i32
    %c0_i32_1 = arith.constant 0 : i32
    return %arg0, %c0_i32, %c0_i32_0 : i32, i32, i32
  }
}

</mosaic_0001>

<bundles_post_ra>
// kernel: tpu_custom_call.1
= control target key start
LH: loop header
LB: loop body
LE: loop exit
PB: predicated region body
PF: predicated region fallthrough
CT: control target
= control target key end

     0   :  { %20 = vsyncpa [#allocation5], 0  ;;  %vm54_vm0 = vcmask 523264   ;;  %s6909_s0 = inlined_call_operand.vmem [shape: f32[32,64], index: 0, kind: input, shape index: {}]   ;;  %s6910_s1 = inlined_call_operand.vmem [shape: f32[64,192], index: 1, kind: input, shape index: {}]   ;;  %s6911_s2 = inlined_call_operand.vmem [shape: f32[1,192], index: 2, kind: input, shape index: {}]   ;;  %s6912_s3 = inlined_call_operand.vmem [shape: f32[64,64], index: 3, kind: input, shape index: {}]   ;;  %s6913_s4 = inlined_call_operand.vmem [shape: f32[1,64], index: 4, kind: input, shape index: {}]   ;;  %s6914_s5 = inlined_call_operand.vmem [shape: f32[1,64], index: 5, kind: input, shape index: {}]   ;;  %s6915_s6 = inlined_call_operand.vmem [shape: f32[1,64], index: 6, kind: input, shape index: {}]   ;;  %s6916_s7 = inlined_call_operand.vmem [shape: f32[1,64], index: 7, kind: input, shape index: {}]   ;;  %s6917_s8 = inlined_call_operand.vmem [shape: f32[1,64], index: 8, kind: input, shape index: {}]   ;;  %s6918_s9 = inlined_call_operand.vmem [shape: f32[64,256], index: 9, kind: input, shape index: {}]   ;;  %s6919_s10 = inlined_call_operand.vmem [shape: f32[1,256], index: 10, kind: input, shape index: {}]   ;;  %s6920_s11 = inlined_call_operand.vmem [shape: f32[256,64], index: 11, kind: input, shape index: {}]   ;;  %s6921_s12 = inlined_call_operand.vmem [shape: f32[1,64], index: 12, kind: input, shape index: {}]   ;;  %s6922_s13 = inlined_call_operand.hbm [shape: f32[32,64], index: 13, kind: output, shape index: {0}]   ;;  %s6923_s14 = inlined_call_operand.hbm [shape: f32[16,16,16], index: 14, kind: output, shape index: {1}]  }
   0x1   :  { %v48_v0 = vld [vmem:[%s6909_s0] sm:$0xff]  ;;  %v50_v1 = vld [vmem:[%s6909_s0 + $0x10] sm:$0xff]  ;;  %v49_v2 = vld [vmem:[%s6909_s0 + $0x8] sm:$0xff] }
   0x2   :  { %v55_v3 = vsel %vm54_vm0, %v48_v0, 0.0  ;;  %v61_v4 = vsel %vm54_vm0, %v50_v1, 0.0  ;;  %v51_v5 = vld [vmem:[%s6909_s0 + $0x18] sm:$0xff] }
   0x3   :  { %21 = vsyncpa [#allocation7], 0  ;;  %56 = vadd.xlane.f32.xlu0 %v55_v3  ;;  %62 = vadd.xlane.f32.xlu1 %v61_v4  ;;  %v58_v6 = vsel %vm54_vm0, %v49_v2, 0.0  ;;  %v64_v7 = vsel %vm54_vm0, %v51_v5, 0.0  ;;  %v129_v28 = vld [vmem:[%s6910_s1 + $0x8] sm:$0xff]  ;;  %v131_v29 = vld [vmem:[%s6910_s1 + $0x18] sm:$0xff] }
   0x4   :  { %v5128_v30 = vpack.c.bf16 %v131_v29, %v129_v28  ;;  %v128_v31 = vld [vmem:[%s6910_s1] sm:$0xff]  ;;  %v130_v32 = vld [vmem:[%s6910_s1 + $0x10] sm:$0xff]  ;;  %v133_v34 = vld [vmem:[%s6910_s1 + $0x28] sm:$0xff]  ;;  %v5599_v50 = vmov 0.0   ;;  %vm257_vm1 = vcmask 64512   ;;  %s5600_s24 = smov 56  }
   0x5   :  { %v5130_v33 = vpack.c.bf16 %v130_v32, %v128_v31  ;;  %v135_v35 = vld [vmem:[%s6910_s1 + $0x38] sm:$0xff]  ;;  %v132_v37 = vld [vmem:[%s6910_s1 + $0x20] sm:$0xff]  ;;  %v134_v38 = vld [vmem:[%s6910_s1 + $0x30] sm:$0xff]  ;;  %232 = vmatprep.mubr.f32.mxu0 %v5599_v50  ;;  %s5602_s25 = smov 48   ;;  %s5603_s26 = smov 120   ;;  %vm2193_vm3 = vcmask 130048  }
   0x6   :  { %5129 = vmatprep.subr.bf16.mxu0 %v5128_v30  ;;  %v5132_v36 = vpack.c.bf16 %v135_v35, %v133_v34  ;;  %v5134_v39 = vpack.c.bf16 %v134_v38, %v132_v37  ;;  %v137_v40 = vld [vmem:[%s6910_s1 + $0x48] sm:$0xff]  ;;  %v139_v41 = vld [vmem:[%s6910_s1 + $0x58] sm:$0xff]  ;;  %v136_v43 = vld [vmem:[%s6910_s1 + $0x40] sm:$0xff]  ;;  %s5604_s27 = smov 32   ;;  %s5605_s28 = smov 40   ;;  %vm3884_vm4 = vcmask 130112  }
   0x7   :  { %59 = vadd.xlane.f32.xlu0 %v58_v6  ;;  %65 = vadd.xlane.f32.xlu1 %v64_v7  ;;  %v5136_v42 = vpack.c.bf16 %v139_v41, %v137_v40  ;;  %v138_v44 = vld [vmem:[%s6910_s1 + $0x50] sm:$0xff]  ;;  %v141_v45 = vld [vmem:[%s6910_s1 + $0x68] sm:$0xff]  ;;  %v143_v47 = vld [vmem:[%s6910_s1 + $0x78] sm:$0xff]  ;;  %s5606_s29 = smov 24   ;;  %s5607_s30 = smov 112   ;;  %vm3895_vm5 = vcmask 195712  }
   0x8   :  { %5131 = vmatpush1.bf16.msra.mxu0 %v5130_v33  ;;  %v5138_v46 = vpack.c.bf16 %v138_v44, %v136_v43  ;;  %v140_v48 = vld [vmem:[%s6910_s1 + $0x60] sm:$0xff]  ;;  %v142_v49 = vld [vmem:[%s6910_s1 + $0x70] sm:$0xff]  ;;  %v5140_v51 = vpack.c.bf16 %v143_v47, %v141_v45  ;;  %s5608_s15 = smov 16   ;;  %s5609_s16 = smov 104   ;;  %vm5970_vm2 = vmpackc.low %vm257_vm1, %vm257_vm1  ;;  %vm3906_vm6 = vcmask 261312   ;;  %vm3917_vm7 = vcmask 326912  }
   0x9   :  { %5133 = vmatprep.subr.bf16.mxu0 %v5132_v36  ;;  %v5142_v52 = vpack.c.bf16 %v142_v49, %v140_v48  ;;  %v4585_v4 = vld [vmem:[%s6915_s6] ss:$0 sm:$0xff]  ;;  %s5610_s17 = smov 8   ;;  %s5611_s18 = smov 96   ;;  %vm3928_vm8 = vcmask 392512   ;;  %vm3939_vm9 = vcmask 458112  }
   0xa   :  { %s5612_s19 = smov 88   ;;  %s5613_s20 = smov 80   ;;  %vm3950_vm10 = vcmask 523712  }
   0xb   :  { %s5614_s1 = smov 72  }
   0xc   :  { %5135 = vmatpush1.bf16.msra.mxu0 %v5134_v39 }
   0xd   :  { %5137 = vmatprep.subr.bf16.mxu0 %v5136_v42 }
  0x10   :  { %5139 = vmatpush1.bf16.msra.mxu0 %v5138_v46 }
  0x11   :  { %5141 = vmatprep.subr.bf16.mxu0 %v5140_v51 }
  0x14   :  { %5143 = vmatpush1.bf16.msra.mxu0 %v5142_v52 }
  0x90   :  { %v57_v8 = vpop.xlane.xlu0 %56  ;;  %v63_v9 = vpop.xlane.xlu1 %62 }
  0x91   :  { %v68_v10 = vmul.f32 0.015625, %v57_v8  ;;  %v70_v11 = vmul.f32 0.015625, %v63_v9 }
  0x93   :  { %v5709_v12 = vsub.f32 %v48_v0, %v68_v10  ;;  %v5711_v13 = vsub.f32 %v50_v1, %v70_v11 }
  0x94   :  { %v60_v14 = vpop.xlane.xlu0 %59  ;;  %v66_v15 = vpop.xlane.xlu1 %65 }
  0x95   :  { %v69_v16 = vmul.f32 0.015625, %v60_v14  ;;  %v71_v17 = vmul.f32 0.015625, %v66_v15  ;;  %v76_v18 = vmul.f32 %v5709_v12, %v5709_v12  ;;  %v78_v19 = vmul.f32 %v5711_v13, %v5711_v13 }
  0x97   :  { %v5717_v20 = vsub.f32 %v49_v2, %v69_v16  ;;  %v5719_v21 = vsub.f32 %v51_v5, %v71_v17  ;;  %v80_v22 = vsel %vm54_vm0, %v76_v18, 0.0  ;;  %v86_v23 = vsel %vm54_vm0, %v78_v19, 0.0  ;;  %v4584_v2 = vld [vmem:[%s6914_s5] ss:$0 sm:$0xff] }
  0x98   :  { %81 = vadd.xlane.f32.xlu0 %v80_v22  ;;  %v146_v19 = vlaneseq }
  0x99   :  { %v77_v24 = vmul.f32 %v5717_v20, %v5717_v20  ;;  %v79_v25 = vmul.f32 %v5719_v21, %v5719_v21 }
  0x9b   :  { %v83_v26 = vsel %vm54_vm0, %v77_v24, 0.0  ;;  %v89_v27 = vsel %vm54_vm0, %v79_v25, 0.0 }
  0x9c   :  { %87 = vadd.xlane.f32.xlu0 %v86_v23  ;;  %84 = vadd.xlane.f32.xlu1 %v83_v26 }
  0xa0   :  { %90 = vadd.xlane.f32.xlu1 %v89_v27 }
 0x125   :  { %v82_v53 = vpop.xlane.xlu0 %81 }
 0x126   :  { %v92_v54 = vmul.f32 0.015625, %v82_v53 }
 0x128   :  { %v96_v55 = vadd.f32 1e-05, %v92_v54 }
 0x129   :  { %v85_v56 = vpop.xlane.xlu1 %84  ;;  %v88_v57 = vpop.xlane.xlu0 %87 }
 0x12a   :  { %5387 = vrsqrt.f32 %v96_v55  ;;  %v93_v58 = vmul.f32 0.015625, %v85_v56  ;;  %v94_v59 = vmul.f32 0.015625, %v88_v57 }
 0x12c   :  { %v97_v60 = vadd.f32 1e-05, %v93_v58  ;;  %v98_v61 = vadd.f32 1e-05, %v94_v59 }
 0x12d   :  { %v91_v62 = vpop.xlane.xlu1 %90 }
 0x12e   :  { %5389 = vrsqrt.f32 %v97_v60  ;;  %v95_v63 = vmul.f32 0.015625, %v91_v62 }
 0x12f   :  { %5391 = vrsqrt.f32 %v98_v61 }
 0x130   :  { %v99_v0 = vadd.f32 1e-05, %v95_v63 }
 0x132   :  { %5393 = vrsqrt.f32 %v99_v0 }
 0x134   :  { %v5388_v1 = vpop.eup %5387 }
 0x135   :  { %v104_v3 = vmul.f32 %v5388_v1, %v5709_v12 }
 0x137   :  { %v114_v5 = vmul.f32 %v4584_v2, %v104_v3 }
 0x138   :  { %v5390_v6 = vpop.eup %5389 }
 0x139   :  { %v5392_v7 = vpop.eup %5391  ;;  %v124_v8 = vadd.f32 %v4585_v4, %v114_v5  ;;  %v105_v9 = vmul.f32 %v5390_v6, %v5717_v20  ;;  %v5795_v20 = vshrl.u32 %v146_v19, 7 }
 0x13a   :  { %v106_v10 = vmul.f32 %v5392_v7, %v5711_v13 }
 0x13b   :  { %4586 = vmatmul.mubr.msk.f32.vlgmr.msra.gmra.mrb[0].mxu0 %vm54_vm0, %v124_v8  ;;  %v115_v11 = vmul.f32 %v4584_v2, %v105_v9  ;;  %v148_v22 = vsub.s32 0, %v5795_v20  ;;  %v152_v23 = vsub.s32 1, %v5795_v20 }
 0x13c   :  { %v5394_v14 = vpop.eup %5393  ;;  %238 = vmatprep.mubr.f32.mxu0 %v5599_v50  ;;  %v116_v12 = vmul.f32 %v4584_v2, %v106_v10 }
 0x13d   :  { %v125_v15 = vadd.f32 %v4585_v4, %v115_v11  ;;  %v107_v16 = vmul.f32 %v5394_v14, %v5719_v21  ;;  %v144_v21 = vld [vmem:[%s6911_s2] sm:$0x3]  ;;  %s5601_s2 = smov 64  }
 0x13e   :  { %v126_v17 = vadd.f32 %v4585_v4, %v116_v12  ;;  %v149_v24 = vrot.slane %v144_v21, %v148_v22  ;;  %v153_v25 = vrot.slane %v144_v21, %v152_v23 }
 0x13f   :  { %4587 = vmatmul.mubr.msk.f32.gmra.mrb[2].mxu0 %vm54_vm0, %v125_v15  ;;  %v117_v18 = vmul.f32 %v4584_v2, %v107_v16 }
 0x140   :  { %244 = vmatprep.mubr.f32.mxu0 %v5599_v50 }
 0x141   :  { %v127_v13 = vadd.f32 %v4585_v4, %v117_v18 }
 0x143   :  { %4588 = vmatmul.mubr.msk.f32.gmra.mrb[4].mxu0 %vm54_vm0, %v126_v17 }
 0x144   :  { %250 = vmatprep.mubr.f32.mxu0 %v5599_v50 }
 0x147   :  { %4589 = vmatmul.mubr.msk.f32.gmra.mrb[6].mxu0 %vm54_vm0, %v127_v13 }
 0x20e   :  { %v234_v26 = vpop.f32.mrb[0].mxu0 }
 0x20f   :  { %v235_v27 = vadd.f32 %v234_v26, %v149_v24  ;;  %v236_v28 = vpop.f32.mrb[1].mxu0 }
 0x210   :  { %v5806_v29 = vadd.f32 %v236_v28, %v153_v25 }
 0x211   :  { %258 = vst.msk [vmem:[#allocation2] sm:$0xff] %vm257_vm1, %v235_v27  ;;  %402 = vrot.lane.b32.xlu1 %v235_v27, %s5600_s24  ;;  %393 = vrot.lane.b32.xlu0 %v235_v27, %s5601_s2 }
 0x212   :  { %538 = vst.msk [vmem:[#allocation2 + $0x200] sm:$0xff] %vm257_vm1, %v5806_v29  ;;  %v240_v30 = vpop.f32.mrb[2].mxu0 }
 0x213   :  { %v241_v31 = vadd.f32 %v240_v30, %v149_v24  ;;  %v242_v32 = vpop.f32.mrb[3].mxu0 }
 0x214   :  { %v5813_v33 = vadd.f32 %v242_v32, %v153_v25 }
 0x215   :  { %259 = vst.msk [vmem:[#allocation2 + $0x8] sm:$0xff] %vm257_vm1, %v241_v31  ;;  %411 = vrot.lane.b32.xlu1 %v235_v27, %s5602_s25  ;;  %262 = vrot.lane.b32.xlu0 %v235_v27, %s5603_s26 }
 0x216   :  { %539 = vst.msk [vmem:[#allocation2 + $0x208] sm:$0xff] %vm257_vm1, %v5813_v33  ;;  %v246_v34 = vpop.f32.mrb[4].mxu0 }
 0x217   :  { %v5820_v35 = vadd.f32 %v246_v34, %v149_v24  ;;  %v248_v36 = vpop.f32.mrb[5].mxu0 }
 0x218   :  { %v5822_v37 = vadd.f32 %v248_v36, %v153_v25  ;;  %v673_v38 = vld [vmem:[#allocation2] sm:$0xff] }
 0x219   :  { %326 = vst.msk [vmem:[#allocation2 + $0x80] sm:$0xff] %vm257_vm1, %v5820_v35  ;;  %429 = vrot.lane.b32.xlu1 %v235_v27, %s5604_s27  ;;  %420 = vrot.lane.b32.xlu0 %v235_v27, %s5605_s28  ;;  %v705_v39 = vmul.f32 0.35355338, %v673_v38 }
 0x21a   :  { %606 = vst.msk [vmem:[#allocation2 + $0x280] sm:$0xff] %vm257_vm1, %v5822_v37  ;;  %v252_v40 = vpop.f32.mrb[6].mxu0 }
 0x21b   :  { %v5830_v41 = vadd.f32 %v252_v40, %v149_v24  ;;  %v254_v42 = vpop.f32.mrb[7].mxu0  ;;  %4886 = vmatprep.mubr.msk.f32.mxu1 %vm257_vm1, %v705_v39 }
 0x21c   :  { %v5833_v43 = vadd.f32 %v254_v42, %v153_v25  ;;  %v674_v10 = vld [vmem:[#allocation2 + $0x8] sm:$0xff] }
 0x21d   :  { %327 = vst.msk [vmem:[#allocation2 + $0x88] sm:$0xff] %vm257_vm1, %v5830_v41  ;;  %438 = vrot.lane.b32.xlu1 %v235_v27, %s5606_s29  ;;  %271 = vrot.lane.b32.xlu0 %v235_v27, %s5607_s30  ;;  %v706_v12 = vmul.f32 0.35355338, %v674_v10 }
 0x21e   :  { %607 = vst.msk [vmem:[#allocation2 + $0x288] sm:$0xff] %vm257_vm1, %v5833_v43 }
 0x221   :  { %447 = vrot.lane.b32.xlu1 %v235_v27, %s5608_s15  ;;  %280 = vrot.lane.b32.xlu0 %v235_v27, %s5609_s16 }
 0x225   :  { %456 = vrot.lane.b32.xlu1 %v235_v27, %s5610_s17  ;;  %289 = vrot.lane.b32.xlu0 %v235_v27, %s5611_s18 }
 0x229   :  { %395 = vrot.lane.b32.xlu1 %v241_v31, %s5601_s2  ;;  %298 = vrot.lane.b32.xlu0 %v235_v27, %s5612_s19 }
 0x22d   :  { %404 = vrot.lane.b32.xlu1 %v241_v31, %s5600_s24  ;;  %307 = vrot.lane.b32.xlu0 %v235_v27, %s5613_s20 }
 0x231   :  { %264 = vrot.lane.b32.xlu1 %v241_v31, %s5603_s26  ;;  %316 = vrot.lane.b32.xlu0 %v235_v27, %s5614_s1 }
 0x235   :  { %422 = vrot.lane.b32.xlu1 %v241_v31, %s5605_s28  ;;  %413 = vrot.lane.b32.xlu0 %v241_v31, %s5602_s25 }
 0x239   :  { %273 = vrot.lane.b32.xlu1 %v241_v31, %s5607_s30  ;;  %431 = vrot.lane.b32.xlu0 %v241_v31, %s5604_s27 }
 0x23d   :  { %282 = vrot.lane.b32.xlu1 %v241_v31, %s5609_s16  ;;  %440 = vrot.lane.b32.xlu0 %v241_v31, %s5606_s29 }
 0x241   :  { %291 = vrot.lane.b32.xlu1 %v241_v31, %s5611_s18  ;;  %449 = vrot.lane.b32.xlu0 %v241_v31, %s5608_s15 }
 0x245   :  { %300 = vrot.lane.b32.xlu1 %v241_v31, %s5612_s19  ;;  %458 = vrot.lane.b32.xlu0 %v241_v31, %s5610_s17 }
 0x249   :  { %309 = vrot.lane.b32.xlu1 %v241_v31, %s5613_s20  ;;  %483 = vrot.lane.b32.xlu0 %v5820_v35, %s5602_s25 }
 0x24d   :  { %318 = vrot.lane.b32.xlu1 %v241_v31, %s5614_s1  ;;  %330 = vrot.lane.b32.xlu0 %v5820_v35, %s5603_s26 }
 0x251   :  { %339 = vrot.lane.b32.xlu0 %v5820_v35, %s5607_s30  ;;  %465 = vrot.lane.b32.xlu1 %v5820_v35, %s5601_s2 }
 0x255   :  { %348 = vrot.lane.b32.xlu0 %v5820_v35, %s5609_s16  ;;  %474 = vrot.lane.b32.xlu1 %v5820_v35, %s5600_s24 }
 0x259   :  { %357 = vrot.lane.b32.xlu0 %v5820_v35, %s5611_s18  ;;  %492 = vrot.lane.b32.xlu1 %v5820_v35, %s5605_s28 }
 0x25d   :  { %467 = vrot.lane.b32.xlu0 %v5830_v41, %s5601_s2  ;;  %501 = vrot.lane.b32.xlu1 %v5820_v35, %s5604_s27 }
 0x261   :  { %476 = vrot.lane.b32.xlu0 %v5830_v41, %s5600_s24  ;;  %510 = vrot.lane.b32.xlu1 %v5820_v35, %s5606_s29 }
 0x265   :  { %366 = vrot.lane.b32.xlu0 %v5820_v35, %s5612_s19  ;;  %519 = vrot.lane.b32.xlu1 %v5820_v35, %s5608_s15 }
 0x269   :  { %494 = vrot.lane.b32.xlu0 %v5830_v41, %s5605_s28  ;;  %528 = vrot.lane.b32.xlu1 %v5820_v35, %s5610_s17 }
 0x26d   :  { %503 = vrot.lane.b32.xlu0 %v5830_v41, %s5604_s27  ;;  %485 = vrot.lane.b32.xlu1 %v5830_v41, %s5602_s25 }
 0x271   :  { %512 = vrot.lane.b32.xlu0 %v5830_v41, %s5606_s29  ;;  %332 = vrot.lane.b32.xlu1 %v5830_v41, %s5603_s26 }
 0x275   :  { %521 = vrot.lane.b32.xlu0 %v5830_v41, %s5608_s15  ;;  %341 = vrot.lane.b32.xlu1 %v5830_v41, %s5607_s30 }
 0x279   :  { %530 = vrot.lane.b32.xlu0 %v5830_v41, %s5610_s17  ;;  %350 = vrot.lane.b32.xlu1 %v5830_v41, %s5609_s16 }
 0x27d   :  { %375 = vrot.lane.b32.xlu0 %v5820_v35, %s5613_s20  ;;  %359 = vrot.lane.b32.xlu1 %v5830_v41, %s5611_s18 }
 0x281   :  { %384 = vrot.lane.b32.xlu0 %v5820_v35, %s5614_s1  ;;  %368 = vrot.lane.b32.xlu1 %v5830_v41, %s5612_s19 }
 0x283   :  { %v403_v44 = vpop.permute.xlu1 %402  ;;  %v394_v45 = vpop.permute.xlu0 %393 }
 0x284   :  { %409 = vst.msk [vmem:[#allocation2 + $0x110] sm:$0xff] %vm257_vm1, %v403_v44  ;;  %400 = vst.msk [vmem:[#allocation2 + $0x100] sm:$0xff] %vm257_vm1, %v394_v45 }
 0x285   :  { %542 = vrot.lane.b32.xlu0 %v5806_v29, %s5603_s26  ;;  %377 = vrot.lane.b32.xlu1 %v5830_v41, %s5613_s20 }
 0x287   :  { %v412_v46 = vpop.permute.xlu1 %411  ;;  %v263_v47 = vpop.permute.xlu0 %262 }
 0x288   :  { %418 = vst.msk [vmem:[#allocation2 + $0x120] sm:$0xff] %vm257_vm1, %v412_v46  ;;  %269 = vst.msk [vmem:[#allocation2 + $0x10] sm:$0xff] %vm257_vm1, %v263_v47 }
 0x289   :  { %553 = vrot.lane.b32.xlu0 %v5813_v33, %s5607_s30  ;;  %386 = vrot.lane.b32.xlu1 %v5830_v41, %s5614_s1 }
 0x28b   :  { %v430_v48 = vpop.permute.xlu1 %429  ;;  %v421_v49 = vpop.permute.xlu0 %420  ;;  %v737_v1 = vld [vmem:[#allocation2 + $0x100] sm:$0xff]  ;;  %v739_v7 = vld [vmem:[#allocation2 + $0x110] sm:$0xff] }
 0x28c   :  { %436 = vst.msk [vmem:[#allocation2 + $0x140] sm:$0xff] %vm257_vm1, %v430_v48  ;;  %427 = vst.msk [vmem:[#allocation2 + $0x130] sm:$0xff] %vm257_vm1, %v421_v49 }
 0x28d   :  { %560 = vrot.lane.b32.xlu0 %v5806_v29, %s5609_s16  ;;  %544 = vrot.lane.b32.xlu1 %v5813_v33, %s5603_s26 }
 0x28f   :  { %v439_v51 = vpop.permute.xlu1 %438  ;;  %v272_v52 = vpop.permute.xlu0 %271  ;;  %v675_v11 = vld [vmem:[#allocation2 + $0x10] sm:$0xff]  ;;  %v741_v17 = vld [vmem:[#allocation2 + $0x120] sm:$0xff] }
 0x290   :  { %445 = vst.msk [vmem:[#allocation2 + $0x150] sm:$0xff] %vm257_vm1, %v439_v51  ;;  %278 = vst.msk [vmem:[#allocation2 + $0x20] sm:$0xff] %vm257_vm1, %v272_v52  ;;  %v707_v16 = vmul.f32 0.35355338, %v675_v11 }
 0x291   :  { %562 = vrot.lane.b32.xlu0 %v5813_v33, %s5609_s16  ;;  %551 = vrot.lane.b32.xlu1 %v5806_v29, %s5607_s30 }
 0x293   :  { %v448_v53 = vpop.permute.xlu1 %447  ;;  %v281_v54 = vpop.permute.xlu0 %280  ;;  %v743_v21 = vld [vmem:[#allocation2 + $0x130] sm:$0xff]  ;;  %v745_v34 = vld [vmem:[#allocation2 + $0x140] sm:$0xff] }
 0x294   :  { %454 = vst.msk [vmem:[#allocation2 + $0x160] sm:$0xff] %vm257_vm1, %v448_v53  ;;  %287 = vst.msk [vmem:[#allocation2 + $0x30] sm:$0xff] %vm257_vm1, %v281_v54 }
 0x295   :  { %571 = vrot.lane.b32.xlu0 %v5813_v33, %s5611_s18  ;;  %569 = vrot.lane.b32.xlu1 %v5806_v29, %s5611_s18 }
 0x297   :  { %v457_v55 = vpop.permute.xlu1 %456  ;;  %v290_v56 = vpop.permute.xlu0 %289  ;;  %v677_v28 = vld [vmem:[#allocation2 + $0x20] sm:$0xff]  ;;  %v747_v41 = vld [vmem:[#allocation2 + $0x150] sm:$0xff] }
 0x298   :  { %463 = vst.msk [vmem:[#allocation2 + $0x170] sm:$0xff] %vm257_vm1, %v457_v55  ;;  %296 = vst.msk [vmem:[#allocation2 + $0x40] sm:$0xff] %vm257_vm1, %v290_v56 }
 0x299   :  { %578 = vrot.lane.b32.xlu0 %v5806_v29, %s5612_s19  ;;  %587 = vrot.lane.b32.xlu1 %v5806_v29, %s5613_s20 }
 0x29b   :  { %v396_v57 = vpop.permute.xlu1 %395  ;;  %v299_v58 = vpop.permute.xlu0 %298  ;;  %v679_v59 = vld [vmem:[#allocation2 + $0x30] sm:$0xff]  ;;  %v749_v55 = vld [vmem:[#allocation2 + $0x160] sm:$0xff] }
 0x29c   :  { %401 = vst.msk [vmem:[#allocation2 + $0x108] sm:$0xff] %vm257_vm1, %v396_v57  ;;  %305 = vst.msk [vmem:[#allocation2 + $0x50] sm:$0xff] %vm257_vm1, %v299_v58  ;;  %v711_v60 = vmul.f32 0.35355338, %v679_v59 }
 0x29d   :  { %580 = vrot.lane.b32.xlu0 %v5813_v33, %s5612_s19  ;;  %619 = vrot.lane.b32.xlu1 %v5822_v37, %s5607_s30 }
 0x29e   :  { %4907 = vmatprep.mubr.msk.f32.mxu0 %vm257_vm1, %v711_v60 }
 0x29f   :  { %v405_v61 = vpop.permute.xlu1 %404  ;;  %v308_v62 = vpop.permute.xlu0 %307  ;;  %v681_v48 = vld [vmem:[#allocation2 + $0x40] sm:$0xff] }
 0x2a0   :  { %410 = vst.msk [vmem:[#allocation2 + $0x118] sm:$0xff] %vm257_vm1, %v405_v61  ;;  %314 = vst.msk [vmem:[#allocation2 + $0x60] sm:$0xff] %vm257_vm1, %v308_v62  ;;  %v713_v54 = vmul.f32 0.35355338, %v681_v48  ;;  %v751_v61 = vld [vmem:[#allocation2 + $0x170] sm:$0xff] }
 0x2a1   :  { %589 = vrot.lane.b32.xlu0 %v5813_v33, %s5613_s20  ;;  %612 = vrot.lane.b32.xlu1 %v5833_v43, %s5603_s26 }
 0x2a3   :  { %v265_v63 = vpop.permute.xlu1 %264  ;;  %v317_v0 = vpop.permute.xlu0 %316  ;;  %v738_v2 = vld [vmem:[#allocation2 + $0x108] sm:$0xff]  ;;  %v683_v36 = vld [vmem:[#allocation2 + $0x50] sm:$0xff] }
 0x2a4   :  { %270 = vst.msk [vmem:[#allocation2 + $0x18] sm:$0xff] %vm257_vm1, %v265_v63  ;;  %323 = vst.msk [vmem:[#allocation2 + $0x70] sm:$0xff] %vm257_vm1, %v317_v0  ;;  %v5144_v4 = vpack.c.bf16 %v738_v2, %v737_v1  ;;  %v715_v46 = vmul.f32 0.35355338, %v683_v36 }
 0x2a5   :  { %596 = vrot.lane.b32.xlu0 %v5806_v29, %s5614_s1  ;;  %621 = vrot.lane.b32.xlu1 %v5833_v43, %s5607_s30 }
 0x2a6   :  { %5146 = vmatprep.subr.msk.bf16.mxu1 %vm5970_vm2, %v5144_v4 }
 0x2a7   :  { %v423_v5 = vpop.permute.xlu1 %422  ;;  %5149 = vmatpush3.bf16.xpose.msk.msra.mxu1 %vm5970_vm2, %v5144_v4  ;;  %v414_v6 = vpop.permute.xlu0 %413  ;;  %v740_v8 = vld [vmem:[#allocation2 + $0x118] sm:$0xff]  ;;  %v685_v4 = vld [vmem:[#allocation2 + $0x60] sm:$0xff] }
 0x2a8   :  { %428 = vst.msk [vmem:[#allocation2 + $0x138] sm:$0xff] %vm257_vm1, %v423_v5  ;;  %419 = vst.msk [vmem:[#allocation2 + $0x128] sm:$0xff] %vm257_vm1, %v414_v6  ;;  %v5150_v9 = vpack.c.bf16 %v740_v8, %v739_v7  ;;  %v717_v8 = vmul.f32 0.35355338, %v685_v4 }
 0x2a9   :  { %598 = vrot.lane.b32.xlu0 %v5813_v33, %s5614_s1  ;;  %630 = vrot.lane.b32.xlu1 %v5833_v43, %s5609_s16  ;;  %v709_v33 = vmul.f32 0.35355338, %v677_v28 }
 0x2aa   :  { %5152 = vmatprep.subr.msk.bf16.mxu1 %vm5970_vm2, %v5150_v9 }
 0x2ab   :  { %v274_v14 = vpop.permute.xlu1 %273  ;;  %v432_v15 = vpop.permute.xlu0 %431  ;;  %v676_v27 = vld [vmem:[#allocation2 + $0x18] sm:$0xff]  ;;  %v687_v57 = vld [vmem:[#allocation2 + $0x70] sm:$0xff] }
 0x2ac   :  { %279 = vst.msk [vmem:[#allocation2 + $0x28] sm:$0xff] %vm257_vm1, %v274_v14  ;;  %437 = vst.msk [vmem:[#allocation2 + $0x148] sm:$0xff] %vm257_vm1, %v432_v15  ;;  %v708_v32 = vmul.f32 0.35355338, %v676_v27  ;;  %v719_v1 = vmul.f32 0.35355338, %v687_v57 }
 0x2ad   :  { %610 = vrot.lane.b32.xlu0 %v5822_v37, %s5603_s26  ;;  %639 = vrot.lane.b32.xlu1 %v5833_v43, %s5611_s18 }
 0x2ae   :  { %4887 = vmatmul.mubr.msk.f32.vlgmr.msra.gmra.mrb[0].mxu1 %vm257_vm1, %v706_v12 }
 0x2af   :  { %v283_v18 = vpop.permute.xlu1 %282  ;;  %5155 = vmatpush3.bf16.xpose.msk.msra.mxu1 %vm5970_vm2, %v5150_v9  ;;  %4893 = vmatprep.mubr.msk.f32.mxu1 %vm257_vm1, %v707_v16  ;;  %v441_v13 = vpop.permute.xlu0 %440  ;;  %v742_v19 = vld [vmem:[#allocation2 + $0x128] sm:$0xff]  ;;  %v744_v24 = vld [vmem:[#allocation2 + $0x138] sm:$0xff] }
 0x2b0   :  { %288 = vst.msk [vmem:[#allocation2 + $0x38] sm:$0xff] %vm257_vm1, %v283_v18  ;;  %446 = vst.msk [vmem:[#allocation2 + $0x158] sm:$0xff] %vm257_vm1, %v441_v13  ;;  %v5156_v25 = vpack.c.bf16 %v742_v19, %v741_v17  ;;  %v5162_v26 = vpack.c.bf16 %v744_v24, %v743_v21  ;;  %v689_v17 = vld [vmem:[#allocation2 + $0x80] sm:$0xff] }
 0x2b1   :  { %628 = vrot.lane.b32.xlu0 %v5822_v37, %s5609_s16  ;;  %648 = vrot.lane.b32.xlu1 %v5833_v43, %s5612_s19  ;;  %v721_v21 = vmul.f32 0.35355338, %v689_v17 }
 0x2b2   :  { %5158 = vmatprep.subr.msk.bf16.mxu1 %vm5970_vm2, %v5156_v25  ;;  %5164 = vmatprep.subr.msk.bf16.mxu0 %vm5970_vm2, %v5162_v26 }
 0x2b3   :  { %v292_v29 = vpop.permute.xlu1 %291  ;;  %5167 = vmatpush3.bf16.xpose.msk.msra.mxu0 %vm5970_vm2, %v5162_v26  ;;  %v450_v30 = vpop.permute.xlu0 %449  ;;  %v746_v31 = vld [vmem:[#allocation2 + $0x148] sm:$0xff] }
 0x2b4   :  { %297 = vst.msk [vmem:[#allocation2 + $0x48] sm:$0xff] %vm257_vm1, %v292_v29  ;;  %455 = vst.msk [vmem:[#allocation2 + $0x168] sm:$0xff] %vm257_vm1, %v450_v30  ;;  %v5168_v35 = vpack.c.bf16 %v746_v31, %v745_v34  ;;  %v678_v47 = vld [vmem:[#allocation2 + $0x28] sm:$0xff] }
 0x2b5   :  { %637 = vrot.lane.b32.xlu0 %v5822_v37, %s5611_s18  ;;  %v710_v53 = vmul.f32 0.35355338, %v678_v47 }
 0x2b6   :  { %4894 = vmatmul.mubr.msk.f32.vlgmr.msra.gmra.mrb[2].mxu1 %vm257_vm1, %v708_v32 }
 0x2b7   :  { %v301_v38 = vpop.permute.xlu1 %300  ;;  %5161 = vmatpush3.bf16.xpose.msk.msra.mxu1 %vm5970_vm2, %v5156_v25  ;;  %4900 = vmatprep.mubr.msk.f32.mxu1 %vm257_vm1, %v709_v33  ;;  %v459_v39 = vpop.permute.xlu0 %458  ;;  %v680_v40 = vld [vmem:[#allocation2 + $0x38] sm:$0xff] }
 0x2b8   :  { %v748_v42 = vld [vmem:[#allocation2 + $0x158] sm:$0xff]  ;;  %306 = vst.msk [vmem:[#allocation2 + $0x58] sm:$0xff] %vm257_vm1, %v301_v38  ;;  %464 = vst.msk [vmem:[#allocation2 + $0x178] sm:$0xff] %vm257_vm1, %v459_v39  ;;  %5170 = vmatprep.subr.msk.bf16.mxu1 %vm5970_vm2, %v5168_v35  ;;  %v712_v44 = vmul.f32 0.35355338, %v680_v40  ;;  %v690_v39 = vld [vmem:[#allocation2 + $0x88] sm:$0xff] }
 0x2b9   :  { %v5174_v45 = vpack.c.bf16 %v748_v42, %v747_v41  ;;  %646 = vrot.lane.b32.xlu0 %v5822_v37, %s5612_s19 }
 0x2ba   :  { %4908 = vmatmul.mubr.msk.f32.vlgmr.msra.gmra.mrb[8].mxu0 %vm257_vm1, %v712_v44  ;;  %v722_v44 = vmul.f32 0.35355338, %v690_v39 }
 0x2bb   :  { %5176 = vmatprep.subr.msk.bf16.mxu0 %vm5970_vm2, %v5174_v45  ;;  %v310_v49 = vpop.permute.xlu1 %309  ;;  %4921 = vmatprep.mubr.msk.f32.mxu0 %vm257_vm1, %v715_v46  ;;  %v484_v51 = vpop.permute.xlu0 %483  ;;  %v750_v52 = vld [vmem:[#allocation2 + $0x168] sm:$0xff] }
 0x2bc   :  { %5179 = vmatpush3.bf16.xpose.msk.msra.mxu0 %vm5970_vm2, %v5174_v45  ;;  %315 = vst.msk [vmem:[#allocation2 + $0x68] sm:$0xff] %vm257_vm1, %v310_v49  ;;  %490 = vst.msk [vmem:[#allocation2 + $0x1a0] sm:$0xff] %vm257_vm1, %v484_v51  ;;  %v5180_v56 = vpack.c.bf16 %v750_v52, %v749_v55  ;;  %v682_v2 = vld [vmem:[#allocation2 + $0x48] sm:$0xff] }
 0x2bd   :  { %v714_v7 = vmul.f32 0.35355338, %v682_v2 }
 0x2be   :  { %4901 = vmatmul.mubr.msk.f32.vlgmr.msra.gmra.mrb[4].mxu1 %vm257_vm1, %v710_v53 }
 0x2bf   :  { %v319_v58 = vpop.permute.xlu1 %318  ;;  %5173 = vmatpush3.bf16.xpose.msk.msra.mxu1 %vm5970_vm2, %v5168_v35  ;;  %4914 = vmatprep.mubr.msk.f32.mxu1 %vm257_vm1, %v713_v54  ;;  %v331_v59 = vpop.permute.xlu0 %330  ;;  %v684_v60 = vld [vmem:[#allocation2 + $0x58] sm:$0xff] }
 0x2c0   :  { %v752_v62 = vld [vmem:[#allocation2 + $0x178] sm:$0xff]  ;;  %324 = vst.msk [vmem:[#allocation2 + $0x78] sm:$0xff] %vm257_vm1, %v319_v58  ;;  %337 = vst.msk [vmem:[#allocation2 + $0x90] sm:$0xff] %vm257_vm1, %v331_v59  ;;  %5182 = vmatprep.subr.msk.bf16.mxu1 %vm5970_vm2, %v5180_v56  ;;  %v716_v63 = vmul.f32 0.35355338, %v684_v60 }
 0x2c1   :  { %v5186_v0 = vpack.c.bf16 %v752_v62, %v751_v61 }
 0x2c3   :  { %4922 = vmatmul.mubr.msk.f32.vlgmr.msra.gmra.mrb[10].mxu0 %vm257_vm1, %v716_v63  ;;  %5188 = vmatprep.subr.msk.bf16.mxu0 %vm5970_vm2, %v5186_v0  ;;  %v466_v5 = vpop.permute.xlu1 %465  ;;  %v340_v6 = vpop.permute.xlu0 %339  ;;  %v686_v16 = vld [vmem:[#allocation2 + $0x68] sm:$0xff]  ;;  %v757_v54 = vld [vmem:[#allocation2 + $0x1a0] sm:$0xff] }
 0x2c4   :  { %5191 = vmatpush3.bf16.xpose.msk.msra.mxu0 %vm5970_vm2, %v5186_v0  ;;  %4935 = vmatprep.mubr.msk.f32.mxu0 %vm257_vm1, %v719_v1  ;;  %472 = vst.msk [vmem:[#allocation2 + $0x180] sm:$0xff] %vm257_vm1, %v466_v5  ;;  %346 = vst.msk [vmem:[#allocation2 + $0xa0] sm:$0xff] %vm257_vm1, %v340_v6  ;;  %v718_v19 = vmul.f32 0.35355338, %v686_v16 }
 0x2c6   :  { %4915 = vmatmul.mubr.msk.f32.vlgmr.msra.gmra.mrb[6].mxu1 %vm257_vm1, %v714_v7 }
 0x2c7   :  { %v475_v9 = vpop.permute.xlu1 %474  ;;  %5185 = vmatpush3.bf16.xpose.msk.msra.mxu1 %vm5970_vm2, %v5180_v56  ;;  %4928 = vmatprep.mubr.msk.f32.mxu1 %vm257_vm1, %v717_v8  ;;  %v349_v10 = vpop.permute.xlu0 %348  ;;  %v688_v11 = vld [vmem:[#allocation2 + $0x78] sm:$0xff]  ;;  %v691_v14 = vld [vmem:[#allocation2 + $0x90] sm:$0xff] }
 0x2c8   :  { %481 = vst.msk [vmem:[#allocation2 + $0x190] sm:$0xff] %vm257_vm1, %v475_v9  ;;  %355 = vst.msk [vmem:[#allocation2 + $0xb0] sm:$0xff] %vm257_vm1, %v349_v10  ;;  %v720_v15 = vmul.f32 0.35355338, %v688_v11  ;;  %v723_v12 = vmul.f32 0.35355338, %v691_v14 }
 0x2cb   :  { %4936 = vmatmul.mubr.msk.f32.vlgmr.msra.gmra.mrb[12].mxu0 %vm257_vm1, %v720_v15  ;;  %v493_v18 = vpop.permute.xlu1 %492  ;;  %v358_v13 = vpop.permute.xlu0 %357  ;;  %v753_v30 = vld [vmem:[#allocation2 + $0x180] sm:$0xff] }
 0x2cc   :  { %4949 = vmatprep.mubr.msk.f32.mxu0 %vm257_vm1, %v723_v12  ;;  %499 = vst.msk [vmem:[#allocation2 + $0x1b0] sm:$0xff] %vm257_vm1, %v493_v18  ;;  %364 = vst.msk [vmem:[#allocation2 + $0xc0] sm:$0xff] %vm257_vm1, %v358_v13  ;;  %v693_v40 = vld [vmem:[#allocation2 + $0xa0] sm:$0xff] }
 0x2cd   :  { %v725_v45 = vmul.f32 0.35355338, %v693_v40 }
 0x2ce   :  { %4929 = vmatmul.mubr.msk.f32.vlgmr.msra.gmra.mrb[8].mxu1 %vm257_vm1, %v718_v19 }
 0x2cf   :  { %v502_v24 = vpop.permute.xlu1 %501  ;;  %4942 = vmatprep.mubr.msk.f32.mxu1 %vm257_vm1, %v721_v21  ;;  %v468_v25 = vpop.permute.xlu0 %467  ;;  %v755_v35 = vld [vmem:[#allocation2 + $0x190] sm:$0xff] }
 0x2d0   :  { %508 = vst.msk [vmem:[#allocation2 + $0x1c0] sm:$0xff] %vm257_vm1, %v502_v24  ;;  %473 = vst.msk [vmem:[#allocation2 + $0x188] sm:$0xff] %vm257_vm1, %v468_v25  ;;  %v695_v60 = vld [vmem:[#allocation2 + $0xb0] sm:$0xff] }
 0x2d1   :  { %v727_v5 = vmul.f32 0.35355338, %v695_v60 }
 0x2d3   :  { %v511_v26 = vpop.permute.xlu1 %510  ;;  %v477_v27 = vpop.permute.xlu0 %476  ;;  %v759_v48 = vld [vmem:[#allocation2 + $0x1b0] sm:$0xff]  ;;  %v697_v6 = vld [vmem:[#allocation2 + $0xc0] sm:$0xff] }
 0x2d4   :  { %517 = vst.msk [vmem:[#allocation2 + $0x1d0] sm:$0xff] %vm257_vm1, %v511_v26  ;;  %482 = vst.msk [vmem:[#allocation2 + $0x198] sm:$0xff] %vm257_vm1, %v477_v27  ;;  %v729_v14 = vmul.f32 0.35355338, %v697_v6 }
 0x2d7   :  { %v520_v28 = vpop.permute.xlu1 %519  ;;  %v367_v29 = vpop.permute.xlu0 %366  ;;  %v754_v31 = vld [vmem:[#allocation2 + $0x188] sm:$0xff]  ;;  %v761_v58 = vld [vmem:[#allocation2 + $0x1c0] sm:$0xff] }
 0x2d8   :  { %526 = vst.msk [vmem:[#allocation2 + $0x1e0] sm:$0xff] %vm257_vm1, %v520_v28  ;;  %373 = vst.msk [vmem:[#allocation2 + $0xd0] sm:$0xff] %vm257_vm1, %v367_v29  ;;  %v5192_v32 = vpack.c.bf16 %v754_v31, %v753_v30  ;;  %v770_v31 = vld [vmem:[#allocation2 + $0x208] sm:$0xff] }
 0x2da   :  { %5194 = vmatprep.subr.msk.bf16.mxu1 %vm5970_vm2, %v5192_v32 }
 0x2db   :  { %v529_v33 = vpop.permute.xlu1 %528  ;;  %5197 = vmatpush3.bf16.xpose.msk.msra.mxu1 %vm5970_vm2, %v5192_v32  ;;  %v495_v34 = vpop.permute.xlu0 %494  ;;  %v756_v36 = vld [vmem:[#allocation2 + $0x198] sm:$0xff]  ;;  %v763_v0 = vld [vmem:[#allocation2 + $0x1d0] sm:$0xff] }
 0x2dc   :  { %535 = vst.msk [vmem:[#allocation2 + $0x1f0] sm:$0xff] %vm257_vm1, %v529_v33  ;;  %500 = vst.msk [vmem:[#allocation2 + $0x1b8] sm:$0xff] %vm257_vm1, %v495_v34  ;;  %v5198_v38 = vpack.c.bf16 %v756_v36, %v755_v35  ;;  %v769_v34 = vld [vmem:[#allocation2 + $0x200] sm:$0xff] }
 0x2dd   :  { %v5240_v35 = vpack.c.bf16 %v770_v31, %v769_v34 }
 0x2de   :  { %5200 = vmatprep.subr.msk.bf16.mxu0 %vm5970_vm2, %v5198_v38 }
 0x2df   :  { %v486_v41 = vpop.permute.xlu1 %485  ;;  %5203 = vmatpush3.bf16.xpose.msk.msra.mxu0 %vm5970_vm2, %v5198_v38  ;;  %v504_v42 = vpop.permute.xlu0 %503  ;;  %v765_v15 = vld [vmem:[#allocation2 + $0x1e0] sm:$0xff]  ;;  %v699_v16 = vld [vmem:[#allocation2 + $0xd0] sm:$0xff] }
 0x2e0   :  { %491 = vst.msk [vmem:[#allocation2 + $0x1a8] sm:$0xff] %vm257_vm1, %v486_v41  ;;  %509 = vst.msk [vmem:[#allocation2 + $0x1c8] sm:$0xff] %vm257_vm1, %v504_v42  ;;  %v731_v26 = vmul.f32 0.35355338, %v699_v16 }
 0x2e2   :  { %4943 = vmatmul.mubr.msk.f32.vlgmr.msra.gmra.mrb[10].mxu1 %vm257_vm1, %v722_v44 }
 0x2e3   :  { %v333_v46 = vpop.permute.xlu1 %332  ;;  %4956 = vmatprep.mubr.msk.f32.mxu1 %vm257_vm1, %v725_v45  ;;  %v513_v47 = vpop.permute.xlu0 %512  ;;  %v760_v49 = vld [vmem:[#allocation2 + $0x1b8] sm:$0xff]  ;;  %v767_v19 = vld [vmem:[#allocation2 + $0x1f0] sm:$0xff] }
 0x2e4   :  { %338 = vst.msk [vmem:[#allocation2 + $0x98] sm:$0xff] %vm257_vm1, %v333_v46  ;;  %518 = vst.msk [vmem:[#allocation2 + $0x1d8] sm:$0xff] %vm257_vm1, %v513_v47  ;;  %v5210_v51 = vpack.c.bf16 %v760_v49, %v759_v48 }
 0x2e6   :  { %5212 = vmatprep.subr.msk.bf16.mxu0 %vm5970_vm2, %v5210_v51 }
 0x2e7   :  { %v342_v52 = vpop.permute.xlu1 %341  ;;  %v522_v53 = vpop.permute.xlu0 %521  ;;  %v758_v55 = vld [vmem:[#allocation2 + $0x1a8] sm:$0xff] }
 0x2e8   :  { %v762_v56 = vld [vmem:[#allocation2 + $0x1c8] sm:$0xff]  ;;  %347 = vst.msk [vmem:[#allocation2 + $0xa8] sm:$0xff] %vm257_vm1, %v342_v52  ;;  %527 = vst.msk [vmem:[#allocation2 + $0x1e8] sm:$0xff] %vm257_vm1, %v522_v53  ;;  %v5204_v57 = vpack.c.bf16 %v758_v55, %v757_v54 }
 0x2e9   :  { %v5216_v59 = vpack.c.bf16 %v762_v56, %v761_v58 }
 0x2ea   :  { %5206 = vmatprep.subr.msk.bf16.mxu1 %vm5970_vm2, %v5204_v57 }
 0x2eb   :  { %v351_v61 = vpop.permute.xlu1 %350  ;;  %5209 = vmatpush3.bf16.xpose.msk.msra.mxu1 %vm5970_vm2, %v5204_v57  ;;  %v531_v62 = vpop.permute.xlu0 %530  ;;  %v692_v63 = vld [vmem:[#allocation2 + $0x98] sm:$0xff] }
 0x2ec   :  { %v764_v1 = vld [vmem:[#allocation2 + $0x1d8] sm:$0xff]  ;;  %356 = vst.msk [vmem:[#allocation2 + $0xb8] sm:$0xff] %vm257_vm1, %v351_v61  ;;  %536 = vst.msk [vmem:[#allocation2 + $0x1f8] sm:$0xff] %vm257_vm1, %v531_v62  ;;  %5218 = vmatprep.subr.msk.bf16.mxu1 %vm5970_vm2, %v5216_v59  ;;  %v724_v2 = vmul.f32 0.35355338, %v692_v63 }
 0x2ed   :  { %v5222_v4 = vpack.c.bf16 %v764_v1, %v763_v0 }
 0x2ee   :  { %4950 = vmatmul.mubr.msk.f32.vlgmr.msra.gmra.mrb[14].mxu0 %vm257_vm1, %v724_v2 }
 0x2ef   :  { %5215 = vmatpush3.bf16.xpose.msk.msra.mxu0 %vm5970_vm2, %v5210_v51  ;;  %v360_v7 = vpop.permute.xlu1 %359  ;;  %4963 = vmatprep.mubr.msk.f32.mxu0 %vm257_vm1, %v727_v5  ;;  %v376_v8 = vpop.permute.xlu0 %375  ;;  %v694_v9 = vld [vmem:[#allocation2 + $0xa8] sm:$0xff] }
 0x2f0   :  { %v766_v10 = vld [vmem:[#allocation2 + $0x1e8] sm:$0xff]  ;;  %365 = vst.msk [vmem:[#allocation2 + $0xc8] sm:$0xff] %vm257_vm1, %v360_v7  ;;  %5224 = vmatprep.subr.msk.bf16.mxu0 %vm5970_vm2, %v5222_v4  ;;  %382 = vst.msk [vmem:[#allocation2 + $0xe0] sm:$0xff] %vm257_vm1, %v376_v8  ;;  %v726_v11 = vmul.f32 0.35355338, %v694_v9 }
 0x2f1   :  { %v5228_v12 = vpack.c.bf16 %v766_v10, %v765_v15 }
 0x2f2   :  { %4957 = vmatmul.mubr.msk.f32.vlgmr.msra.gmra.mrb[12].mxu1 %vm257_vm1, %v726_v11 }
 0x2f3   :  { %v369_v17 = vpop.permute.xlu1 %368  ;;  %5221 = vmatpush3.bf16.xpose.msk.msra.mxu1 %vm5970_vm2, %v5216_v59  ;;  %4970 = vmatprep.mubr.msk.f32.mxu1 %vm257_vm1, %v729_v14  ;;  %v385_v18 = vpop.permute.xlu0 %384  ;;  %v696_v13 = vld [vmem:[#allocation2 + $0xb8] sm:$0xff] }
 0x2f4   :  { %v768_v21 = vld [vmem:[#allocation2 + $0x1f8] sm:$0xff]  ;;  %374 = vst.msk [vmem:[#allocation2 + $0xd8] sm:$0xff] %vm257_vm1, %v369_v17  ;;  %391 = vst.msk [vmem:[#allocation2 + $0xf0] sm:$0xff] %vm257_vm1, %v385_v18  ;;  %5230 = vmatprep.subr.msk.bf16.mxu1 %vm5970_vm2, %v5228_v12  ;;  %v728_v24 = vmul.f32 0.35355338, %v696_v13 }
 0x2f5   :  { %v5234_v25 = vpack.c.bf16 %v768_v21, %v767_v19 }
 0x2f6   :  { %4964 = vmatmul.mubr.msk.f32.vlgmr.msra.gmra.mrb[16].mxu0 %vm257_vm1, %v728_v24 }
 0x2f7   :  { %5227 = vmatpush3.bf16.xpose.msk.msra.mxu0 %vm5970_vm2, %v5222_v4  ;;  %v378_v27 = vpop.permute.xlu1 %377  ;;  %4977 = vmatprep.mubr.msk.f32.mxu0 %vm257_vm1, %v731_v26  ;;  %v543_v28 = vpop.permute.xlu0 %542  ;;  %v698_v29 = vld [vmem:[#allocation2 + $0xc8] sm:$0xff]  ;;  %v701_v30 = vld [vmem:[#allocation2 + $0xe0] sm:$0xff] }
 0x2f8   :  { %383 = vst.msk [vmem:[#allocation2 + $0xe8] sm:$0xff] %vm257_vm1, %v378_v27  ;;  %5236 = vmatprep.subr.msk.bf16.mxu0 %vm5970_vm2, %v5234_v25  ;;  %549 = vst.msk [vmem:[#allocation2 + $0x210] sm:$0xff] %vm257_vm1, %v543_v28  ;;  %v730_v32 = vmul.f32 0.35355338, %v698_v29  ;;  %v733_v33 = vmul.f32 0.35355338, %v701_v30 }
 0x2fa   :  { %4971 = vmatmul.mubr.msk.f32.vlgmr.msra.gmra.mrb[14].mxu1 %vm257_vm1, %v730_v32 }
 0x2fb   :  { %v387_v36 = vpop.permute.xlu1 %386  ;;  %5233 = vmatpush3.bf16.xpose.msk.msra.mxu1 %vm5970_vm2, %v5228_v12  ;;  %4984 = vmatprep.mubr.msk.f32.mxu1 %vm257_vm1, %v733_v33  ;;  %v554_v38 = vpop.permute.xlu0 %553  ;;  %v700_v39 = vld [vmem:[#allocation2 + $0xd8] sm:$0xff]  ;;  %v703_v40 = vld [vmem:[#allocation2 + $0xf0] sm:$0xff] }
 0x2fc   :  { %392 = vst.msk [vmem:[#allocation2 + $0xf8] sm:$0xff] %vm257_vm1, %v387_v36  ;;  %559 = vst.msk [vmem:[#allocation2 + $0x228] sm:$0xff] %vm257_vm1, %v554_v38  ;;  %5241 = vmatprep.subr.bf16.mxu1 %v5240_v35  ;;  %v732_v41 = vmul.f32 0.35355338, %v700_v39  ;;  %v735_v42 = vmul.f32 0.35355338, %v703_v40 }
 0x2fe   :  { %4978 = vmatmul.mubr.msk.f32.vlgmr.msra.gmra.mrb[18].mxu0 %vm257_vm1, %v732_v41 }
 0x2ff   :  { %5239 = vmatpush3.bf16.xpose.msk.msra.mxu0 %vm5970_vm2, %v5234_v25  ;;  %v545_v44 = vpop.permute.xlu1 %544  ;;  %4991 = vmatprep.mubr.msk.f32.mxu0 %vm257_vm1, %v735_v42  ;;  %v561_v45 = vpop.permute.xlu0 %560  ;;  %v702_v46 = vld [vmem:[#allocation2 + $0xe8] sm:$0xff]  ;;  %v771_v54 = vld [vmem:[#allocation2 + $0x210] sm:$0xff] }
 0x300   :  { %550 = vst.msk [vmem:[#allocation2 + $0x218] sm:$0xff] %vm257_vm1, %v545_v44  ;;  %567 = vst.msk [vmem:[#allocation2 + $0x230] sm:$0xff] %vm257_vm1, %v561_v45  ;;  %v734_v47 = vmul.f32 0.35355338, %v702_v46 }
 0x302   :  { %4985 = vmatmul.mubr.msk.f32.vlgmr.msra.gmra.mrb[16].mxu1 %vm257_vm1, %v734_v47 }
 0x303   :  { %v552_v48 = vpop.permute.xlu1 %551  ;;  %5243 = vmatpush3.bf16.msra.mxu1 %v5240_v35  ;;  %v563_v49 = vpop.permute.xlu0 %562  ;;  %v704_v51 = vld [vmem:[#allocation2 + $0xf8] sm:$0xff]  ;;  %v774_v60 = vld [vmem:[#allocation2 + $0x228] sm:$0xff] }
 0x304   :  { %558 = vst.msk [vmem:[#allocation2 + $0x220] sm:$0xff] %vm257_vm1, %v552_v48  ;;  %568 = vst.msk [vmem:[#allocation2 + $0x238] sm:$0xff] %vm257_vm1, %v563_v49  ;;  %v736_v3 = vmul.f32 0.35355338, %v704_v51 }
 0x306   :  { %4992 = vmatmul.mubr.msk.f32.vlgmr.msra.gmra.mrb[20].mxu0 %vm257_vm1, %v736_v3 }
 0x307   :  { %v570_v52 = vpop.permute.xlu1 %569  ;;  %v572_v53 = vpop.permute.xlu0 %571  ;;  %v772_v55 = vld [vmem:[#allocation2 + $0x218] sm:$0xff] }
 0x308   :  { %576 = vst.msk [vmem:[#allocation2 + $0x240] sm:$0xff] %vm257_vm1, %v570_v52  ;;  %577 = vst.msk [vmem:[#allocation2 + $0x248] sm:$0xff] %vm257_vm1, %v572_v53  ;;  %v6140_v56 = vpack.c.bf16 %v772_v55, %v771_v54 }
 0x30a   :  { %5245 = vmatprep.subr.bf16.mxu1 %v6140_v56 }
 0x30b   :  { %v588_v57 = vpop.permute.xlu1 %587  ;;  %v579_v58 = vpop.permute.xlu0 %578  ;;  %v773_v59 = vld [vmem:[#allocation2 + $0x220] sm:$0xff] }
 0x30c   :  { %594 = vst.msk [vmem:[#allocation2 + $0x260] sm:$0xff] %vm257_vm1, %v588_v57  ;;  %585 = vst.msk [vmem:[#allocation2 + $0x250] sm:$0xff] %vm257_vm1, %v579_v58  ;;  %v5248_v61 = vpack.c.bf16 %v774_v60, %v773_v59 }
 0x30e   :  { %5249 = vmatprep.subr.bf16.mxu0 %v5248_v61 }
 0x30f   :  { %v620_v62 = vpop.permute.xlu1 %619  ;;  %5251 = vmatpush3.bf16.msra.mxu0 %v5248_v61  ;;  %v581_v63 = vpop.permute.xlu0 %580  ;;  %v777_v0 = vld [vmem:[#allocation2 + $0x240] sm:$0xff]  ;;  %v778_v1 = vld [vmem:[#allocation2 + $0x248] sm:$0xff] }
 0x310   :  { %626 = vst.msk [vmem:[#allocation2 + $0x2a0] sm:$0xff] %vm257_vm1, %v620_v62  ;;  %586 = vst.msk [vmem:[#allocation2 + $0x258] sm:$0xff] %vm257_vm1, %v581_v63  ;;  %v6147_v2 = vpack.c.bf16 %v778_v1, %v777_v0 }
 0x312   :  { %5257 = vmatprep.subr.bf16.mxu0 %v6147_v2 }
 0x313   :  { %v613_v4 = vpop.permute.xlu1 %612  ;;  %v590_v5 = vpop.permute.xlu0 %589 }
 0x314   :  { %618 = vst.msk [vmem:[#allocation2 + $0x298] sm:$0xff] %vm257_vm1, %v613_v4  ;;  %595 = vst.msk [vmem:[#allocation2 + $0x268] sm:$0xff] %vm257_vm1, %v590_v5 }
 0x317   :  { %v622_v6 = vpop.permute.xlu1 %621  ;;  %v597_v7 = vpop.permute.xlu0 %596 }
 0x318   :  { %627 = vst.msk [vmem:[#allocation2 + $0x2a8] sm:$0xff] %vm257_vm1, %v622_v6  ;;  %603 = vst.msk [vmem:[#allocation2 + $0x270] sm:$0xff] %vm257_vm1, %v597_v7 }
 0x31b   :  { %v631_v8 = vpop.permute.xlu1 %630  ;;  %v599_v9 = vpop.permute.xlu0 %598 }
 0x31c   :  { %636 = vst.msk [vmem:[#allocation2 + $0x2b8] sm:$0xff] %vm257_vm1, %v631_v8  ;;  %604 = vst.msk [vmem:[#allocation2 + $0x278] sm:$0xff] %vm257_vm1, %v599_v9 }
 0x31f   :  { %v640_v10 = vpop.permute.xlu1 %639  ;;  %v611_v11 = vpop.permute.xlu0 %610 }
 0x320   :  { %645 = vst.msk [vmem:[#allocation2 + $0x2c8] sm:$0xff] %vm257_vm1, %v640_v10  ;;  %617 = vst.msk [vmem:[#allocation2 + $0x290] sm:$0xff] %vm257_vm1, %v611_v11 }
 0x323   :  { %v649_v14 = vpop.permute.xlu1 %648  ;;  %v629_v15 = vpop.permute.xlu0 %628 }
 0x324   :  { %654 = vst.msk [vmem:[#allocation2 + $0x2d8] sm:$0xff] %vm257_vm1, %v649_v14  ;;  %635 = vst.msk [vmem:[#allocation2 + $0x2b0] sm:$0xff] %vm257_vm1, %v629_v15 }
 0x327   :  { %v638_v12 = vpop.permute.xlu0 %637 }
 0x328   :  { %644 = vst.msk [vmem:[#allocation2 + $0x2c0] sm:$0xff] %vm257_vm1, %v638_v12 }
 0x32b   :  { %v647_v16 = vpop.permute.xlu0 %646 }
 0x32c   :  { %653 = vst.msk [vmem:[#allocation2 + $0x2d0] sm:$0xff] %vm257_vm1, %v647_v16 }
 0x381   :  { %v6162_v17 = vpop.f32.mrb[0].mxu1 }
 0x382   :  { %v6164_v18 = vpop.f32.mrb[1].mxu1  ;;  %v2197_v13 = vsel %vm2193_vm3, %v6162_v17, -inf }
 0x383   :  { %2198 = vmax.xlane.f32.xlu1 %v2197_v13  ;;  %v2194_v19 = vsel %vm2193_vm3, %v6164_v18, -inf }
 0x384   :  { %2195 = vmax.xlane.f32.xlu0 %v2194_v19 }
 0x389   :  { %v6170_v21 = vpop.f32.mrb[2].mxu1 }
 0x38a   :  { %v6172_v24 = vpop.f32.mrb[3].mxu1  ;;  %v2203_v31 = vsel %vm2193_vm3, %v6170_v21, -inf }
 0x38b   :  { %v2200_v35 = vsel %vm2193_vm3, %v6172_v24, -inf }
 0x38d   :  { %v6174_v25 = vpop.f32.mrb[8].mxu0 }
 0x38e   :  { %v6176_v26 = vpop.f32.mrb[9].mxu0  ;;  %v2215_v27 = vsel %vm2193_vm3, %v6174_v25, -inf }
 0x38f   :  { %2216 = vmax.xlane.f32.xlu1 %v2215_v27  ;;  %v2212_v28 = vsel %vm2193_vm3, %v6176_v26, -inf }
 0x390   :  { %2213 = vmax.xlane.f32.xlu0 %v2212_v28 }
 0x391   :  { %v6182_v29 = vpop.f32.mrb[4].mxu1 }
 0x392   :  { %v6184_v30 = vpop.f32.mrb[5].mxu1  ;;  %v2209_v39 = vsel %vm2193_vm3, %v6182_v29, -inf }
 0x393   :  { %v2206_v45 = vsel %vm2193_vm3, %v6184_v30, -inf }
 0x394   :  { %2204 = vmax.xlane.f32.xlu0 %v2203_v31 }
 0x396   :  { %v6188_v32 = vpop.f32.mrb[10].mxu0 }
 0x397   :  { %v6190_v33 = vpop.f32.mrb[11].mxu0  ;;  %v2227_v34 = vsel %vm2193_vm3, %v6188_v32, -inf }
 0x398   :  { %2228 = vmax.xlane.f32.xlu1 %v2227_v34  ;;  %2201 = vmax.xlane.f32.xlu0 %v2200_v35  ;;  %v2224_v40 = vsel %vm2193_vm3, %v6190_v33, -inf }
 0x399   :  { %v6196_v36 = vpop.f32.mrb[6].mxu1 }
 0x39a   :  { %v6198_v38 = vpop.f32.mrb[7].mxu1  ;;  %v2221_v48 = vsel %vm2193_vm3, %v6196_v36, -inf }
 0x39b   :  { %v2218_v51 = vsel %vm2193_vm3, %v6198_v38, -inf }
 0x39c   :  { %2210 = vmax.xlane.f32.xlu1 %v2209_v39  ;;  %2225 = vmax.xlane.f32.xlu0 %v2224_v40 }
 0x39e   :  { %v6204_v41 = vpop.f32.mrb[12].mxu0 }
 0x39f   :  { %v6206_v42 = vpop.f32.mrb[13].mxu0  ;;  %v2239_v44 = vsel %vm2193_vm3, %v6204_v41, -inf }
 0x3a0   :  { %2240 = vmax.xlane.f32.xlu1 %v2239_v44  ;;  %2207 = vmax.xlane.f32.xlu0 %v2206_v45  ;;  %v2236_v49 = vsel %vm2193_vm3, %v6206_v42, -inf }
 0x3a1   :  { %v6212_v46 = vpop.f32.mrb[8].mxu1 }
 0x3a2   :  { %v6214_v47 = vpop.f32.mrb[9].mxu1  ;;  %v2233_v60 = vsel %vm2193_vm3, %v6212_v46, -inf }
 0x3a3   :  { %v2230_v61 = vsel %vm2193_vm3, %v6214_v47, -inf }
 0x3a4   :  { %2222 = vmax.xlane.f32.xlu1 %v2221_v48  ;;  %2237 = vmax.xlane.f32.xlu0 %v2236_v49 }
 0x3a8   :  { %2219 = vmax.xlane.f32.xlu0 %v2218_v51 }
 0x3b5   :  { %v6222_v3 = vpop.f32.mrb[10].mxu1 }
 0x3b6   :  { %v6224_v52 = vpop.f32.mrb[11].mxu1  ;;  %v2245_v6 = vsel %vm2193_vm3, %v6222_v3, -inf }
 0x3b7   :  { %v2242_v7 = vsel %vm2193_vm3, %v6224_v52, -inf }
 0x3c1   :  { %v6226_v53 = vpop.f32.mrb[14].mxu0 }
 0x3c2   :  { %v6228_v54 = vpop.f32.mrb[15].mxu0  ;;  %v2251_v55 = vsel %vm2193_vm3, %v6226_v53, -inf }
 0x3c3   :  { %2252 = vmax.xlane.f32.xlu1 %v2251_v55  ;;  %v2248_v57 = vsel %vm2193_vm3, %v6228_v54, -inf }
 0x3c4   :  { %2249 = vmax.xlane.f32.xlu0 %v2248_v57 }
 0x3c5   :  { %v6234_v58 = vpop.f32.mrb[12].mxu1 }
 0x3c6   :  { %v6236_v59 = vpop.f32.mrb[13].mxu1  ;;  %v2257_v12 = vsel %vm2193_vm3, %v6234_v58, -inf }
 0x3c7   :  { %2234 = vmax.xlane.f32.xlu1 %v2233_v60  ;;  %v2254_v16 = vsel %vm2193_vm3, %v6236_v59, -inf }
 0x3c8   :  { %2231 = vmax.xlane.f32.xlu0 %v2230_v61 }
 0x3c9   :  { %v6242_v62 = vpop.f32.mrb[16].mxu0 }
 0x3ca   :  { %v6244_v63 = vpop.f32.mrb[17].mxu0  ;;  %v2263_v0 = vsel %vm2193_vm3, %v6242_v62, -inf }
 0x3cb   :  { %2264 = vmax.xlane.f32.xlu1 %v2263_v0  ;;  %v2260_v1 = vsel %vm2193_vm3, %v6244_v63, -inf }
 0x3cc   :  { %2261 = vmax.xlane.f32.xlu0 %v2260_v1 }
 0x3cd   :  { %v6250_v4 = vpop.f32.mrb[14].mxu1 }
 0x3ce   :  { %v6252_v5 = vpop.f32.mrb[15].mxu1  ;;  %v2269_v31 = vsel %vm2193_vm3, %v6250_v4, -inf }
 0x3cf   :  { %2246 = vmax.xlane.f32.xlu1 %v2245_v6  ;;  %v2266_v34 = vsel %vm2193_vm3, %v6252_v5, -inf }
 0x3d0   :  { %2243 = vmax.xlane.f32.xlu0 %v2242_v7 }
 0x3d1   :  { %v6258_v8 = vpop.f32.mrb[18].mxu0 }
 0x3d2   :  { %v6260_v9 = vpop.f32.mrb[19].mxu0  ;;  %v2275_v10 = vsel %vm2193_vm3, %v6258_v8, -inf }
 0x3d3   :  { %2276 = vmax.xlane.f32.xlu1 %v2275_v10  ;;  %v2272_v11 = vsel %vm2193_vm3, %v6260_v9, -inf }
 0x3d4   :  { %2273 = vmax.xlane.f32.xlu0 %v2272_v11 }
 0x3d5   :  { %v6266_v14 = vpop.f32.mrb[16].mxu1 }
 0x3d6   :  { %v6268_v15 = vpop.f32.mrb[17].mxu1  ;;  %v2281_v35 = vsel %vm2193_vm3, %v6266_v14, -inf }
 0x3d7   :  { %2258 = vmax.xlane.f32.xlu1 %v2257_v12  ;;  %v2278_v39 = vsel %vm2193_vm3, %v6268_v15, -inf }
 0x3d8   :  { %2255 = vmax.xlane.f32.xlu0 %v2254_v16 }
 0x3d9   :  { %v6274_v13 = vpop.f32.mrb[20].mxu0 }
 0x3da   :  { %v6276_v19 = vpop.f32.mrb[21].mxu0  ;;  %v2287_v27 = vsel %vm2193_vm3, %v6274_v13, -inf }
 0x3db   :  { %2288 = vmax.xlane.f32.xlu1 %v2287_v27  ;;  %v2284_v28 = vsel %vm2193_vm3, %v6276_v19, -inf }
 0x3dc   :  { %2285 = vmax.xlane.f32.xlu0 %v2284_v28 }
 0x3df   :  { %2270 = vmax.xlane.f32.xlu1 %v2269_v31 }
 0x3e0   :  { %2267 = vmax.xlane.f32.xlu0 %v2266_v34 }
 0x3e3   :  { %2282 = vmax.xlane.f32.xlu1 %v2281_v35 }
 0x3e4   :  { %2279 = vmax.xlane.f32.xlu0 %v2278_v39 }
 0x3f4   :  { %657 = vrot.lane.b32.xlu1 %v5833_v43, %s5613_s20 }
 0x3fa   :  { %655 = vrot.lane.b32.xlu0 %v5822_v37, %s5613_s20 }
 0x410   :  { %v2199_v40 = vpop.xlane.xlu1 %2198 }
 0x411   :  { %v2291_v44 = vsub.f32 %v6162_v17, %v2199_v40  ;;  %v2196_v45 = vpop.xlane.xlu0 %2195 }
 0x412   :  { %v2290_v48 = vsub.f32 %v6164_v18, %v2196_v45 }
 0x413   :  { %v2324_v49 = vmul.f32 1.442695, %v2291_v44 }
 0x414   :  { %v2322_v51 = vmul.f32 1.442695, %v2290_v48 }
 0x415   :  { %5395 = vpow2.f32 %v2324_v49 }
 0x416   :  { %5397 = vpow2.f32 %v2322_v51 }
 0x41c   :  { %v2217_v55 = vpop.xlane.xlu1 %2216 }
 0x41d   :  { %v2297_v57 = vsub.f32 %v6174_v25, %v2217_v55  ;;  %v2214_v60 = vpop.xlane.xlu0 %2213 }
 0x41e   :  { %v2296_v61 = vsub.f32 %v6176_v26, %v2214_v60 }
 0x41f   :  { %v6298_v0 = vpop.eup %5395  ;;  %v2336_v1 = vmul.f32 1.442695, %v2297_v57 }
 0x420   :  { %v6300_v6 = vpop.eup %5397  ;;  %v2334_v7 = vmul.f32 1.442695, %v2296_v61  ;;  %v2389_v17 = vsel %vm2193_vm3, %v6298_v0, 0.0 }
 0x421   :  { %5399 = vpow2.f32 %v2336_v1  ;;  %2390 = vadd.xlane.f32.xlu1 %v2389_v17  ;;  %v2205_v18 = vpop.xlane.xlu0 %2204  ;;  %v2386_v10 = vsel %vm2193_vm3, %v6300_v6, 0.0 }
 0x422   :  { %5401 = vpow2.f32 %v2334_v7  ;;  %v2293_v25 = vsub.f32 %v6170_v21, %v2205_v18  ;;  %2387 = vadd.xlane.f32.xlu0 %v2386_v10 }
 0x424   :  { %v2328_v26 = vmul.f32 1.442695, %v2293_v25 }
 0x425   :  { %v2229_v11 = vpop.xlane.xlu1 %2228  ;;  %v2202_v16 = vpop.xlane.xlu0 %2201 }
 0x426   :  { %v2301_v12 = vsub.f32 %v6188_v32, %v2229_v11  ;;  %5403 = vpow2.f32 %v2328_v26  ;;  %v2292_v27 = vsub.f32 %v6172_v24, %v2202_v16 }
 0x428   :  { %v2344_v28 = vmul.f32 1.442695, %v2301_v12  ;;  %v2326_v31 = vmul.f32 1.442695, %v2292_v27 }
 0x429   :  { %v2211_v34 = vpop.xlane.xlu1 %2210  ;;  %v2226_v39 = vpop.xlane.xlu0 %2225 }
 0x42a   :  { %5405 = vpow2.f32 %v2344_v28  ;;  %v2295_v35 = vsub.f32 %v6182_v29, %v2211_v34  ;;  %v2300_v40 = vsub.f32 %v6190_v33, %v2226_v39 }
 0x42b   :  { %5407 = vpow2.f32 %v2326_v31  ;;  %v6311_v21 = vpop.eup %5399 }
 0x42c   :  { %v2332_v44 = vmul.f32 1.442695, %v2295_v35  ;;  %v6313_v45 = vpop.eup %5401  ;;  %v2342_v32 = vmul.f32 1.442695, %v2300_v40  ;;  %v2407_v24 = vsel %vm2193_vm3, %v6311_v21, 0.0 }
 0x42d   :  { %v2241_v48 = vpop.xlane.xlu1 %2240  ;;  %2408 = vadd.xlane.f32.xlu1 %v2407_v24  ;;  %v2208_v51 = vpop.xlane.xlu0 %2207  ;;  %v2404_v29 = vsel %vm2193_vm3, %v6313_v45, 0.0 }
 0x42e   :  { %5409 = vpow2.f32 %v2332_v44  ;;  %v2305_v49 = vsub.f32 %v6204_v41, %v2241_v48  ;;  %v2294_v33 = vsub.f32 %v6184_v30, %v2208_v51  ;;  %2405 = vadd.xlane.f32.xlu0 %v2404_v29 }
 0x42f   :  { %5411 = vpow2.f32 %v2342_v32 }
 0x430   :  { %v2352_v55 = vmul.f32 1.442695, %v2305_v49  ;;  %v6321_v57 = vpop.eup %5403  ;;  %v2330_v60 = vmul.f32 1.442695, %v2294_v33 }
 0x431   :  { %v2223_v61 = vpop.xlane.xlu1 %2222  ;;  %v2238_v7 = vpop.xlane.xlu0 %2237  ;;  %v2395_v41 = vsel %vm2193_vm3, %v6321_v57, 0.0 }
 0x432   :  { %5413 = vpow2.f32 %v2352_v55  ;;  %v2299_v1 = vsub.f32 %v6196_v36, %v2223_v61  ;;  %v2304_v17 = vsub.f32 %v6206_v42, %v2238_v7  ;;  %2396 = vadd.xlane.f32.xlu1 %v2395_v41 }
 0x433   :  { %5415 = vpow2.f32 %v2330_v60 }
 0x434   :  { %v6327_v18 = vpop.eup %5405  ;;  %v2340_v30 = vmul.f32 1.442695, %v2299_v1  ;;  %v2350_v25 = vmul.f32 1.442695, %v2304_v17 }
 0x435   :  { %v6329_v10 = vpop.eup %5407  ;;  %v2419_v26 = vsel %vm2193_vm3, %v6327_v18, 0.0  ;;  %v2220_v11 = vpop.xlane.xlu0 %2219 }
 0x436   :  { %5417 = vpow2.f32 %v2340_v30  ;;  %v2392_v36 = vsel %vm2193_vm3, %v6329_v10, 0.0  ;;  %v2298_v12 = vsub.f32 %v6198_v38, %v2220_v11  ;;  %2420 = vadd.xlane.f32.xlu1 %v2419_v26 }
 0x437   :  { %5419 = vpow2.f32 %v2350_v25  ;;  %2393 = vadd.xlane.f32.xlu0 %v2392_v36 }
 0x438   :  { %v6336_v42 = vpop.eup %5409  ;;  %v2338_v27 = vmul.f32 1.442695, %v2298_v12 }
 0x439   :  { %v6338_v16 = vpop.eup %5411  ;;  %v2401_v28 = vsel %vm2193_vm3, %v6336_v42, 0.0 }
 0x43a   :  { %v2416_v31 = vsel %vm2193_vm3, %v6338_v16, 0.0  ;;  %5421 = vpow2.f32 %v2338_v27  ;;  %2402 = vadd.xlane.f32.xlu1 %v2401_v28 }
 0x43b   :  { %2417 = vadd.xlane.f32.xlu0 %v2416_v31 }
 0x43c   :  { %v6344_v34 = vpop.eup %5413 }
 0x43d   :  { %v6346_v35 = vpop.eup %5415  ;;  %v2431_v38 = vsel %vm2193_vm3, %v6344_v34, 0.0 }
 0x43e   :  { %v2398_v39 = vsel %vm2193_vm3, %v6346_v35, 0.0  ;;  %2432 = vadd.xlane.f32.xlu1 %v2431_v38 }
 0x43f   :  { %2399 = vadd.xlane.f32.xlu0 %v2398_v39 }
 0x440   :  { %v6352_v40 = vpop.eup %5417 }
 0x441   :  { %v6354_v44 = vpop.eup %5419  ;;  %v2413_v32 = vsel %vm2193_vm3, %v6352_v40, 0.0 }
 0x442   :  { %v2428_v48 = vsel %vm2193_vm3, %v6354_v44, 0.0  ;;  %2414 = vadd.xlane.f32.xlu1 %v2413_v32 }
 0x443   :  { %2429 = vadd.xlane.f32.xlu0 %v2428_v48 }
 0x444   :  { %v6360_v24 = vpop.eup %5421 }
 0x445   :  { %v2410_v49 = vsel %vm2193_vm3, %v6360_v24, 0.0 }
 0x447   :  { %2411 = vadd.xlane.f32.xlu0 %v2410_v49 }
 0x450   :  { %v2253_v51 = vpop.xlane.xlu1 %2252 }
 0x451   :  { %v2309_v29 = vsub.f32 %v6226_v53, %v2253_v51  ;;  %v2250_v33 = vpop.xlane.xlu0 %2249 }
 0x452   :  { %v2308_v55 = vsub.f32 %v6228_v54, %v2250_v33 }
 0x453   :  { %v2360_v60 = vmul.f32 1.442695, %v2309_v29 }
 0x454   :  { %v2358_v61 = vmul.f32 1.442695, %v2308_v55  ;;  %v2235_v1 = vpop.xlane.xlu1 %2234 }
 0x455   :  { %5423 = vpow2.f32 %v2360_v60  ;;  %v2303_v7 = vsub.f32 %v6212_v46, %v2235_v1  ;;  %v2232_v41 = vpop.xlane.xlu0 %2231 }
 0x456   :  { %5425 = vpow2.f32 %v2358_v61  ;;  %v2302_v17 = vsub.f32 %v6214_v47, %v2232_v41 }
 0x457   :  { %v2348_v30 = vmul.f32 1.442695, %v2303_v7 }
 0x458   :  { %v2346_v25 = vmul.f32 1.442695, %v2302_v17  ;;  %v2265_v26 = vpop.xlane.xlu1 %2264 }
 0x459   :  { %5427 = vpow2.f32 %v2348_v30  ;;  %v2313_v11 = vsub.f32 %v6242_v62, %v2265_v26  ;;  %v2262_v53 = vpop.xlane.xlu0 %2261 }
 0x45a   :  { %5429 = vpow2.f32 %v2346_v25  ;;  %v2312_v54 = vsub.f32 %v6244_v63, %v2262_v53 }
 0x45b   :  { %v2368_v36 = vmul.f32 1.442695, %v2313_v11 }
 0x45c   :  { %v2366_v12 = vmul.f32 1.442695, %v2312_v54  ;;  %v2247_v27 = vpop.xlane.xlu1 %2246 }
 0x45d   :  { %5431 = vpow2.f32 %v2368_v36  ;;  %v2307_v46 = vsub.f32 %v6222_v3, %v2247_v27  ;;  %v2244_v28 = vpop.xlane.xlu0 %2243 }
 0x45e   :  { %5433 = vpow2.f32 %v2366_v12  ;;  %v2306_v38 = vsub.f32 %v6224_v52, %v2244_v28 }
 0x45f   :  { %v6371_v31 = vpop.eup %5423  ;;  %v2356_v47 = vmul.f32 1.442695, %v2307_v46 }
 0x460   :  { %v6374_v39 = vpop.eup %5425  ;;  %v2277_v62 = vpop.xlane.xlu1 %2276  ;;  %v2443_v32 = vsel %vm2193_vm3, %v6371_v31, 0.0  ;;  %v2354_v51 = vmul.f32 1.442695, %v2306_v38 }
 0x461   :  { %5435 = vpow2.f32 %v2356_v47  ;;  %v2317_v63 = vsub.f32 %v6258_v8, %v2277_v62  ;;  %2444 = vadd.xlane.f32.xlu1 %v2443_v32  ;;  %v2274_v48 = vpop.xlane.xlu0 %2273  ;;  %v2440_v3 = vsel %vm2193_vm3, %v6374_v39, 0.0 }
 0x462   :  { %2441 = vadd.xlane.f32.xlu0 %v2440_v3  ;;  %v2316_v52 = vsub.f32 %v6260_v9, %v2274_v48 }
 0x463   :  { %v6381_v49 = vpop.eup %5427  ;;  %v2376_v29 = vmul.f32 1.442695, %v2317_v63 }
 0x464   :  { %v6384_v33 = vpop.eup %5429  ;;  %v2259_v55 = vpop.xlane.xlu1 %2258  ;;  %v2425_v60 = vsel %vm2193_vm3, %v6381_v49, 0.0  ;;  %v2374_v41 = vmul.f32 1.442695, %v2316_v52 }
 0x465   :  { %5437 = vpow2.f32 %v2376_v29  ;;  %2426 = vadd.xlane.f32.xlu1 %v2425_v60  ;;  %v2256_v8 = vpop.xlane.xlu0 %2255  ;;  %v2422_v61 = vsel %vm2193_vm3, %v6384_v33, 0.0  ;;  %v2311_v9 = vsub.f32 %v6234_v58, %v2259_v55 }
 0x466   :  { %v2310_v1 = vsub.f32 %v6236_v59, %v2256_v8  ;;  %2423 = vadd.xlane.f32.xlu0 %v2422_v61  ;;  %5439 = vpow2.f32 %v2354_v51 }
 0x467   :  { %v6391_v7 = vpop.eup %5431  ;;  %v2364_v59 = vmul.f32 1.442695, %v2311_v9 }
 0x468   :  { %v2362_v17 = vmul.f32 1.442695, %v2310_v1  ;;  %v2289_v30 = vpop.xlane.xlu1 %2288  ;;  %v2455_v25 = vsel %vm2193_vm3, %v6391_v7, 0.0  ;;  %v6396_v26 = vpop.eup %5433 }
 0x469   :  { %2456 = vadd.xlane.f32.xlu1 %v2455_v25  ;;  %v2286_v11 = vpop.xlane.xlu0 %2285  ;;  %v2321_v54 = vsub.f32 %v6274_v13, %v2289_v30  ;;  %v2452_v12 = vsel %vm2193_vm3, %v6396_v26, 0.0 }
 0x46a   :  { %5441 = vpow2.f32 %v2362_v17  ;;  %v2320_v38 = vsub.f32 %v6276_v19, %v2286_v11 }
 0x46b   :  { %v6398_v53 = vpop.eup %5435  ;;  %5443 = vpow2.f32 %v2374_v41  ;;  %v2384_v47 = vmul.f32 1.442695, %v2321_v54 }
 0x46c   :  { %v2271_v36 = vpop.xlane.xlu1 %2270  ;;  %v2437_v58 = vsel %vm2193_vm3, %v6398_v53, 0.0  ;;  %5445 = vpow2.f32 %v2364_v59 }
 0x46d   :  { %2438 = vadd.xlane.f32.xlu0 %v2437_v58  ;;  %2453 = vadd.xlane.f32.xlu1 %v2452_v12  ;;  %v2268_v27 = vpop.xlane.xlu0 %2267  ;;  %v2315_v51 = vsub.f32 %v6250_v4, %v2271_v36 }
 0x46e   :  { %v2314_v46 = vsub.f32 %v6252_v5, %v2268_v27  ;;  %v2382_v5 = vmul.f32 1.442695, %v2320_v38 }
 0x46f   :  { %v6406_v28 = vpop.eup %5437  ;;  %v2372_v4 = vmul.f32 1.442695, %v2315_v51 }
 0x470   :  { %v2370_v62 = vmul.f32 1.442695, %v2314_v46  ;;  %v2283_v13 = vpop.xlane.xlu1 %2282  ;;  %v2467_v32 = vsel %vm2193_vm3, %v6406_v28, 0.0  ;;  %v6411_v63 = vpop.eup %5439 }
 0x471   :  { %2468 = vadd.xlane.f32.xlu1 %v2467_v32  ;;  %v2280_v48 = vpop.xlane.xlu0 %2279  ;;  %v2434_v55 = vsel %vm2193_vm3, %v6411_v63, 0.0  ;;  %v2319_v61 = vsub.f32 %v6266_v14, %v2283_v13 }
 0x472   :  { %5447 = vpow2.f32 %v2370_v62  ;;  %v2318_v3 = vsub.f32 %v6268_v15, %v2280_v48 }
 0x473   :  { %5449 = vpow2.f32 %v2384_v47  ;;  %v2380_v9 = vmul.f32 1.442695, %v2319_v61 }
 0x474   :  { %v6415_v29 = vpop.eup %5441  ;;  %v2378_v52 = vmul.f32 1.442695, %v2318_v3  ;;  %v658_v19 = vpop.permute.xlu1 %657 }
 0x475   :  { %v6419_v60 = vpop.eup %5443  ;;  %663 = vst.msk [vmem:[#allocation2 + $0x2e8] sm:$0xff] %vm257_vm1, %v658_v19  ;;  %2435 = vadd.xlane.f32.xlu1 %v2434_v55  ;;  %v656_v8 = vpop.permute.xlu0 %655  ;;  %v2446_v15 = vsel %vm2193_vm3, %v6415_v29, 0.0 }
 0x476   :  { %5451 = vpow2.f32 %v2378_v52  ;;  %662 = vst.msk [vmem:[#allocation2 + $0x2e0] sm:$0xff] %vm257_vm1, %v656_v8  ;;  %2447 = vadd.xlane.f32.xlu0 %v2446_v15  ;;  %v2464_v1 = vsel %vm2193_vm3, %v6419_v60, 0.0  ;;  %v6428_v41 = vpop.eup %5445  ;;  %v776_v52 = vld [vmem:[#allocation2 + $0x238] sm:$0xff] }
 0x477   :  { %5453 = vpow2.f32 %v2382_v5  ;;  %v2449_v30 = vsel %vm2193_vm3, %v6428_v41, 0.0 }
 0x478   :  { %5455 = vpow2.f32 %v2372_v4 }
 0x479   :  { %2465 = vadd.xlane.f32.xlu1 %v2464_v1  ;;  %5457 = vpow2.f32 %v2380_v9 }
 0x47c   :  { %v6430_v17 = vpop.eup %5447 }
 0x47d   :  { %v6434_v25 = vpop.eup %5449  ;;  %2450 = vadd.xlane.f32.xlu1 %v2449_v30  ;;  %v2458_v11 = vsel %vm2193_vm3, %v6430_v17, 0.0 }
 0x47e   :  { %2459 = vadd.xlane.f32.xlu0 %v2458_v11  ;;  %v2479_v59 = vsel %vm2193_vm3, %v6434_v25, 0.0 }
 0x480   :  { %v6438_v14 = vpop.eup %5451 }
 0x481   :  { %v6442_v54 = vpop.eup %5453  ;;  %2480 = vadd.xlane.f32.xlu1 %v2479_v59  ;;  %v2470_v36 = vsel %vm2193_vm3, %v6438_v14, 0.0 }
 0x482   :  { %2471 = vadd.xlane.f32.xlu0 %v2470_v36  ;;  %v2476_v58 = vsel %vm2193_vm3, %v6442_v54, 0.0  ;;  %v6448_v12 = vpop.eup %5455 }
 0x483   :  { %v2461_v27 = vsel %vm2193_vm3, %v6448_v12, 0.0  ;;  %v6452_v46 = vpop.eup %5457 }
 0x484   :  { %v2473_v47 = vsel %vm2193_vm3, %v6452_v46, 0.0 }
 0x485   :  { %2477 = vadd.xlane.f32.xlu1 %v2476_v58 }
 0x489   :  { %2462 = vadd.xlane.f32.xlu1 %v2461_v27 }
 0x48d   :  { %2474 = vadd.xlane.f32.xlu1 %v2473_v47  ;;  %v780_v47 = vld [vmem:[#allocation2 + $0x258] sm:$0xff] }
 0x498   :  { %664 = vrot.lane.b32.xlu0 %v5822_v37, %s5614_s1  ;;  %v775_v37 = vld [vmem:[#allocation2 + $0x230] sm:$0xff] }
 0x49e   :  { %666 = vrot.lane.b32.xlu1 %v5833_v43, %s5614_s1  ;;  %v5252_v43 = vpack.c.bf16 %v776_v52, %v775_v37 }
 0x4ae   :  { %v2391_v38 = vpop.xlane.xlu1 %2390 }
 0x4af   :  { %5459 = vrcp.f32 %v2391_v38  ;;  %v2388_v62 = vpop.xlane.xlu0 %2387  ;;  %v779_v38 = vld [vmem:[#allocation2 + $0x250] sm:$0xff] }
 0x4b0   :  { %5461 = vrcp.f32 %v2388_v62 }
 0x4b9   :  { %v5460_v13 = vpop.eup %5459 }
 0x4ba   :  { %v5462_v32 = vpop.eup %5461  ;;  %v2515_v48 = vmul.f32 %v5460_v13, %v6298_v0  ;;  %v2409_v3 = vpop.xlane.xlu1 %2408 }
 0x4bb   :  { %5463 = vrcp.f32 %v2409_v3  ;;  %v2406_v5 = vpop.xlane.xlu0 %2405  ;;  %v2514_v51 = vmul.f32 %v5462_v32, %v6300_v6 }
 0x4bc   :  { %2547 = vst.msk [vmem:[#allocation6 + $0x8] sm:$0xff] %vm2193_vm3, %v2515_v48  ;;  %5465 = vrcp.f32 %v2406_v5  ;;  %v783_v5 = vld [vmem:[#allocation2 + $0x270] sm:$0xff] }
 0x4bd   :  { %2546 = vst.msk [vmem:[#allocation6] sm:$0xff] %vm2193_vm3, %v2514_v51  ;;  %4998 = vmatprep.mubr.msk.f32.mxu1 %vm2193_vm3, %v2514_v51 }
 0x4be   :  { %4999 = vmatmul.mubr.msk.f32.vlgmr.msra.gmra.mrb[18].mxu1 %vm2193_vm3, %v2515_v48  ;;  %v784_v48 = vld [vmem:[#allocation2 + $0x278] sm:$0xff] }
 0x4bf   :  { %5247 = vmatpush3.bf16.msra.mxu1 %v6140_v56  ;;  %v2397_v0 = vpop.xlane.xlu1 %2396  ;;  %v5268_v52 = vpack.c.bf16 %v784_v48, %v783_v5  ;;  %v790_v48 = vld [vmem:[#allocation2 + $0x2a8] sm:$0xff]  ;;  %v789_v5 = vld [vmem:[#allocation2 + $0x2a0] sm:$0xff] }
 0x4c0   :  { %5467 = vrcp.f32 %v2397_v0  ;;  %5253 = vmatprep.subr.bf16.mxu1 %v5252_v43 }
 0x4c3   :  { %v2421_v19 = vpop.xlane.xlu1 %2420 }
 0x4c4   :  { %v2394_v55 = vpop.xlane.xlu0 %2393  ;;  %5469 = vrcp.f32 %v2421_v19  ;;  %v781_v19 = vld [vmem:[#allocation2 + $0x260] sm:$0xff] }
 0x4c5   :  { %v5464_v6 = vpop.eup %5463  ;;  %5471 = vrcp.f32 %v2394_v55 }
 0x4c6   :  { %v5466_v8 = vpop.eup %5465  ;;  %v2521_v15 = vmul.f32 %v5464_v6, %v6311_v21 }
 0x4c7   :  { %v2403_v4 = vpop.xlane.xlu1 %2402  ;;  %v2520_v1 = vmul.f32 %v5466_v8, %v6313_v45 }
 0x4c8   :  { %v2418_v61 = vpop.xlane.xlu0 %2417  ;;  %2553 = vst.msk [vmem:[#allocation6 + $0x38] sm:$0xff] %vm2193_vm3, %v2521_v15  ;;  %5473 = vrcp.f32 %v2403_v4  ;;  %v791_v4 = vld [vmem:[#allocation2 + $0x2b0] sm:$0xff] }
 0x4c9   :  { %5475 = vrcp.f32 %v2418_v61  ;;  %2552 = vst.msk [vmem:[#allocation6 + $0x30] sm:$0xff] %vm2193_vm3, %v2520_v1 }
 0x4ca   :  { %v5468_v56 = vpop.eup %5467 }
 0x4cb   :  { %v2517_v9 = vmul.f32 %v5468_v56, %v6321_v57  ;;  %v2433_v30 = vpop.xlane.xlu1 %2432 }
 0x4cc   :  { %v2400_v11 = vpop.xlane.xlu0 %2399  ;;  %5477 = vrcp.f32 %v2433_v30 }
 0x4cd   :  { %2549 = vst.msk [vmem:[#allocation6 + $0x18] sm:$0xff] %vm2193_vm3, %v2517_v9  ;;  %5479 = vrcp.f32 %v2400_v11 }
 0x4ce   :  { %v5470_v21 = vpop.eup %5469 }
 0x4cf   :  { %v5472_v59 = vpop.eup %5471  ;;  %v2525_v36 = vmul.f32 %v5470_v21, %v6327_v18  ;;  %v2415_v45 = vpop.xlane.xlu1 %2414  ;;  %v5260_v18 = vpack.c.bf16 %v780_v47, %v779_v38  ;;  %v795_v38 = vld [vmem:[#allocation2 + $0x2d0] sm:$0xff] }
 0x4d0   :  { %v2430_v58 = vpop.xlane.xlu0 %2429  ;;  %5481 = vrcp.f32 %v2415_v45  ;;  %v2516_v27 = vmul.f32 %v5472_v59, %v6329_v10 }
 0x4d1   :  { %2557 = vst.msk [vmem:[#allocation6 + $0x58] sm:$0xff] %vm2193_vm3, %v2525_v36  ;;  %5483 = vrcp.f32 %v2430_v58 }
 0x4d2   :  { %v5474_v57 = vpop.eup %5473  ;;  %2548 = vst.msk [vmem:[#allocation6 + $0x10] sm:$0xff] %vm2193_vm3, %v2516_v27  ;;  %5005 = vmatprep.mubr.msk.f32.mxu1 %vm2193_vm3, %v2516_v27 }
 0x4d3   :  { %v5476_v62 = vpop.eup %5475  ;;  %v2519_v13 = vmul.f32 %v5474_v57, %v6336_v42  ;;  %5006 = vmatmul.mubr.msk.f32.vlgmr.msra.gmra.mrb[20].mxu1 %vm2193_vm3, %v2517_v9 }
 0x4d4   :  { %v2412_v32 = vpop.xlane.xlu0 %2411  ;;  %5255 = vmatpush3.bf16.msra.mxu1 %v5252_v43  ;;  %5019 = vmatprep.mubr.msk.f32.mxu1 %vm2193_vm3, %v2520_v1  ;;  %v2524_v10 = vmul.f32 %v5476_v62, %v6338_v16  ;;  %v782_v16 = vld [vmem:[#allocation2 + $0x268] sm:$0xff]  ;;  %v787_v43 = vld [vmem:[#allocation2 + $0x290] sm:$0xff] }
 0x4d5   :  { %5485 = vrcp.f32 %v2412_v32  ;;  %2551 = vst.msk [vmem:[#allocation6 + $0x28] sm:$0xff] %vm2193_vm3, %v2519_v13  ;;  %5261 = vmatprep.subr.bf16.mxu1 %v5260_v18 }
 0x4d6   :  { %v5478_v3 = vpop.eup %5477  ;;  %2556 = vst.msk [vmem:[#allocation6 + $0x50] sm:$0xff] %vm2193_vm3, %v2524_v10 }
 0x4d7   :  { %v5480_v51 = vpop.eup %5479  ;;  %v2529_v42 = vmul.f32 %v5478_v3, %v6344_v34  ;;  %5020 = vmatmul.mubr.msk.f32.vlgmr.msra.gmra.mrb[22].mxu1 %vm2193_vm3, %v2521_v15  ;;  %v788_v34 = vld [vmem:[#allocation2 + $0x298] sm:$0xff] }
 0x4d8   :  { %5263 = vmatpush3.bf16.msra.mxu1 %v5260_v18  ;;  %5033 = vmatprep.mubr.msk.f32.mxu1 %vm2193_vm3, %v2524_v10  ;;  %v2518_v37 = vmul.f32 %v5480_v51, %v6346_v35  ;;  %v5264_v35 = vpack.c.bf16 %v782_v16, %v781_v19  ;;  %v5276_v8 = vpack.c.bf16 %v788_v34, %v787_v43 }
 0x4d9   :  { %2561 = vst.msk [vmem:[#allocation6 + $0x78] sm:$0xff] %vm2193_vm3, %v2529_v42  ;;  %5269 = vmatprep.subr.bf16.mxu1 %v5268_v52 }
 0x4da   :  { %v5482_v0 = vpop.eup %5481  ;;  %2550 = vst.msk [vmem:[#allocation6 + $0x20] sm:$0xff] %vm2193_vm3, %v2518_v37  ;;  %5012 = vmatprep.mubr.msk.f32.mxu0 %vm2193_vm3, %v2518_v37 }
 0x4db   :  { %v5484_v55 = vpop.eup %5483  ;;  %v2523_v6 = vmul.f32 %v5482_v0, %v6352_v40  ;;  %5013 = vmatmul.mubr.msk.f32.vlgmr.msra.gmra.mrb[22].mxu0 %vm2193_vm3, %v2519_v13  ;;  %5034 = vmatmul.mubr.msk.f32.vlgmr.msra.gmra.mrb[24].mxu1 %vm2193_vm3, %v2525_v36  ;;  %v792_v40 = vld [vmem:[#allocation2 + $0x2b8] sm:$0xff] }
 0x4dc   :  { %5259 = vmatpush3.bf16.msra.mxu0 %v6147_v2  ;;  %5271 = vmatpush3.bf16.msra.mxu1 %v5268_v52  ;;  %v2528_v15 = vmul.f32 %v5484_v55, %v6354_v44  ;;  %v5284_v1 = vpack.c.bf16 %v792_v40, %v791_v4  ;;  %v786_v2 = vld [vmem:[#allocation2 + $0x288] sm:$0xff]  ;;  %v785_v44 = vld [vmem:[#allocation2 + $0x280] sm:$0xff]  ;;  %v796_v13 = vld [vmem:[#allocation2 + $0x2d8] sm:$0xff] }
 0x4dd   :  { %2555 = vst.msk [vmem:[#allocation6 + $0x48] sm:$0xff] %vm2193_vm3, %v2523_v6  ;;  %5265 = vmatprep.subr.bf16.mxu0 %v5264_v35  ;;  %5277 = vmatprep.subr.bf16.mxu1 %v5276_v8  ;;  %v5272_v9 = vpack.c.bf16 %v786_v2, %v785_v44  ;;  %v797_v2 = vld [vmem:[#allocation2 + $0x2e0] sm:$0xff]  ;;  %v798_v44 = vld [vmem:[#allocation2 + $0x2e8] sm:$0xff] }
 0x4de   :  { %2560 = vst.msk [vmem:[#allocation6 + $0x70] sm:$0xff] %vm2193_vm3, %v2528_v15  ;;  %5047 = vmatprep.mubr.msk.f32.mxu1 %vm2193_vm3, %v2528_v15 }
 0x4df   :  { %v5486_v61 = vpop.eup %5485  ;;  %5048 = vmatmul.mubr.msk.f32.vlgmr.msra.gmra.mrb[26].mxu1 %vm2193_vm3, %v2529_v42  ;;  %v5280_v42 = vpack.c.bf16 %v790_v48, %v789_v5 }
 0x4e0   :  { %v2522_v56 = vmul.f32 %v5486_v61, %v6360_v24  ;;  %5279 = vmatpush3.bf16.msra.mxu1 %v5276_v8  ;;  %v793_v8 = vld [vmem:[#allocation2 + $0x2c0] sm:$0xff] }
 0x4e1   :  { %5285 = vmatprep.subr.bf16.mxu1 %v5284_v1 }
 0x4e2   :  { %2554 = vst.msk [vmem:[#allocation6 + $0x40] sm:$0xff] %vm2193_vm3, %v2522_v56  ;;  %5026 = vmatprep.mubr.msk.f32.mxu0 %vm2193_vm3, %v2522_v56 }
 0x4e3   :  { %5027 = vmatmul.mubr.msk.f32.vlgmr.msra.gmra.mrb[24].mxu0 %vm2193_vm3, %v2523_v6 }
 0x4e4   :  { %5267 = vmatpush3.bf16.msra.mxu0 %v5264_v35 }
 0x4e5   :  { %5273 = vmatprep.subr.bf16.mxu0 %v5272_v9 }
 0x4ee   :  { %v2445_v30 = vpop.xlane.xlu1 %2444 }
 0x4ef   :  { %5487 = vrcp.f32 %v2445_v30  ;;  %v2442_v11 = vpop.xlane.xlu0 %2441 }
 0x4f0   :  { %5489 = vrcp.f32 %v2442_v11 }
 0x4f2   :  { %v2427_v21 = vpop.xlane.xlu1 %2426 }
 0x4f3   :  { %5491 = vrcp.f32 %v2427_v21  ;;  %v2424_v24 = vpop.xlane.xlu0 %2423  ;;  %v5296_v21 = vpack.c.bf16 %v798_v44, %v797_v2 }
 0x4f4   :  { %5493 = vrcp.f32 %v2424_v24 }
 0x4f6   :  { %v2457_v59 = vpop.xlane.xlu1 %2456 }
 0x4f7   :  { %5495 = vrcp.f32 %v2457_v59 }
 0x4f9   :  { %v5488_v36 = vpop.eup %5487 }
 0x4fa   :  { %v5490_v45 = vpop.eup %5489  ;;  %v2533_v58 = vmul.f32 %v5488_v36, %v6371_v31  ;;  %v2454_v27 = vpop.xlane.xlu1 %2453  ;;  %v5292_v31 = vpack.c.bf16 %v796_v13, %v795_v38 }
 0x4fb   :  { %v2439_v47 = vpop.xlane.xlu0 %2438  ;;  %5497 = vrcp.f32 %v2454_v27  ;;  %v2532_v57 = vmul.f32 %v5490_v45, %v6374_v39 }
 0x4fc   :  { %2565 = vst.msk [vmem:[#allocation6 + $0x98] sm:$0xff] %vm2193_vm3, %v2533_v58  ;;  %5499 = vrcp.f32 %v2439_v47 }
 0x4fd   :  { %v5492_v62 = vpop.eup %5491  ;;  %2564 = vst.msk [vmem:[#allocation6 + $0x90] sm:$0xff] %vm2193_vm3, %v2532_v57  ;;  %5061 = vmatprep.mubr.msk.f32.mxu1 %vm2193_vm3, %v2532_v57 }
 0x4fe   :  { %v5494_v18 = vpop.eup %5493  ;;  %v2527_v32 = vmul.f32 %v5492_v62, %v6381_v49  ;;  %v2469_v10 = vpop.xlane.xlu1 %2468  ;;  %5062 = vmatmul.mubr.msk.f32.vlgmr.msra.gmra.mrb[28].mxu1 %vm2193_vm3, %v2533_v58 }
 0x4ff   :  { %5501 = vrcp.f32 %v2469_v10  ;;  %5287 = vmatpush3.bf16.msra.mxu1 %v5284_v1  ;;  %v2526_v39 = vmul.f32 %v5494_v18, %v6384_v33 }
 0x500   :  { %2559 = vst.msk [vmem:[#allocation6 + $0x68] sm:$0xff] %vm2193_vm3, %v2527_v32  ;;  %5293 = vmatprep.subr.bf16.mxu1 %v5292_v31 }
 0x501   :  { %v5496_v3 = vpop.eup %5495  ;;  %2558 = vst.msk [vmem:[#allocation6 + $0x60] sm:$0xff] %vm2193_vm3, %v2526_v39  ;;  %5040 = vmatprep.mubr.msk.f32.mxu0 %vm2193_vm3, %v2526_v39 }
 0x502   :  { %v2537_v49 = vmul.f32 %v5496_v3, %v6391_v7  ;;  %v2436_v51 = vpop.xlane.xlu1 %2435  ;;  %5041 = vmatmul.mubr.msk.f32.vlgmr.msra.gmra.mrb[26].mxu0 %vm2193_vm3, %v2527_v32 }
 0x503   :  { %5503 = vrcp.f32 %v2436_v51  ;;  %5275 = vmatpush3.bf16.msra.mxu0 %v5272_v9  ;;  %v2448_v52 = vpop.xlane.xlu0 %2447 }
 0x504   :  { %2569 = vst.msk [vmem:[#allocation6 + $0xb8] sm:$0xff] %vm2193_vm3, %v2537_v49  ;;  %5281 = vmatprep.subr.bf16.mxu0 %v5280_v42  ;;  %5505 = vrcp.f32 %v2448_v52  ;;  %v4029_v52 = vld [vmem:[%s6912_s3] sm:$0xff] }
 0x505   :  { %v5498_v33 = vpop.eup %5497 }
 0x506   :  { %v5500_v37 = vpop.eup %5499  ;;  %v2466_v16 = vpop.xlane.xlu1 %2465  ;;  %v2536_v43 = vmul.f32 %v5498_v33, %v6396_v26  ;;  %v4030_v33 = vld [vmem:[%s6912_s3 + $0x8] sm:$0xff] }
 0x507   :  { %v2531_v0 = vmul.f32 %v5500_v37, %v6398_v53  ;;  %5507 = vrcp.f32 %v2466_v16  ;;  %v5304_v37 = vpack.c.bf16 %v4030_v33, %v4029_v52  ;;  %v4031_v16 = vld [vmem:[%s6912_s3 + $0x10] sm:$0xff] }
 0x508   :  { %2568 = vst.msk [vmem:[#allocation6 + $0xb0] sm:$0xff] %vm2193_vm3, %v2536_v43  ;;  %5075 = vmatprep.mubr.msk.f32.mxu1 %vm2193_vm3, %v2536_v43  ;;  %v4032_v43 = vld [vmem:[%s6912_s3 + $0x18] sm:$0xff] }
 0x509   :  { %v5502_v7 = vpop.eup %5501  ;;  %2563 = vst.msk [vmem:[#allocation6 + $0x88] sm:$0xff] %vm2193_vm3, %v2531_v0  ;;  %5076 = vmatmul.mubr.msk.f32.vlgmr.msra.gmra.mrb[30].mxu1 %vm2193_vm3, %v2537_v49 }
 0x50a   :  { %v2541_v19 = vmul.f32 %v5502_v7, %v6406_v28  ;;  %5295 = vmatpush3.bf16.msra.mxu1 %v5292_v31  ;;  %v2451_v34 = vpop.xlane.xlu1 %2450  ;;  %v794_v28 = vld [vmem:[#allocation2 + $0x2c8] sm:$0xff]  ;;  %v4033_v7 = vld [vmem:[%s6912_s3 + $0x20] sm:$0xff] }
 0x50b   :  { %5509 = vrcp.f32 %v2451_v34  ;;  %v2460_v55 = vpop.xlane.xlu0 %2459  ;;  %v5288_v40 = vpack.c.bf16 %v794_v28, %v793_v8 }
 0x50c   :  { %2573 = vst.msk [vmem:[#allocation6 + $0xd8] sm:$0xff] %vm2193_vm3, %v2541_v19  ;;  %5511 = vrcp.f32 %v2460_v55  ;;  %v4035_v55 = vld [vmem:[%s6912_s3 + $0x30] sm:$0xff] }
 0x50d   :  { %v5504_v26 = vpop.eup %5503 }
 0x50e   :  { %v5506_v53 = vpop.eup %5505  ;;  %v2481_v6 = vpop.xlane.xlu1 %2480  ;;  %v2530_v35 = vmul.f32 %v5504_v26, %v6411_v63  ;;  %v4036_v26 = vld [vmem:[%s6912_s3 + $0x38] sm:$0xff] }
 0x50f   :  { %5513 = vrcp.f32 %v2481_v6  ;;  %v2472_v15 = vpop.xlane.xlu0 %2471  ;;  %v2534_v4 = vmul.f32 %v5506_v53, %v6415_v29  ;;  %v5316_v53 = vpack.c.bf16 %v4036_v26, %v4035_v55  ;;  %v5548_v55 = vld [vmem:[%s6909_s0] sm:$0xff] }
 0x510   :  { %5515 = vrcp.f32 %v2472_v15  ;;  %2562 = vst.msk [vmem:[#allocation6 + $0x80] sm:$0xff] %vm2193_vm3, %v2530_v35  ;;  %5054 = vmatprep.mubr.msk.f32.mxu0 %vm2193_vm3, %v2530_v35 }
 0x511   :  { %v5508_v61 = vpop.eup %5507  ;;  %5055 = vmatmul.mubr.msk.f32.vlgmr.msra.gmra.mrb[28].mxu0 %vm2193_vm3, %v2531_v0  ;;  %2566 = vst.msk [vmem:[#allocation6 + $0xa0] sm:$0xff] %vm2193_vm3, %v2534_v4  ;;  %v5308_v0 = vpack.c.bf16 %v4032_v43, %v4031_v16 }
 0x512   :  { %5283 = vmatpush3.bf16.msra.mxu0 %v5280_v42  ;;  %v2478_v1 = vpop.xlane.xlu1 %2477  ;;  %5068 = vmatprep.mubr.msk.f32.mxu0 %vm2193_vm3, %v2534_v4  ;;  %v2540_v63 = vmul.f32 %v5508_v61, %v6419_v60 }
 0x513   :  { %5517 = vrcp.f32 %v2478_v1  ;;  %5289 = vmatprep.subr.bf16.mxu0 %v5288_v40  ;;  %v665_v29 = vpop.permute.xlu0 %664 }
 0x514   :  { %671 = vst.msk [vmem:[#allocation2 + $0x2f0] sm:$0xff] %vm257_vm1, %v665_v29  ;;  %5089 = vmatprep.mubr.msk.f32.mxu1 %vm2193_vm3, %v2540_v63 }
 0x515   :  { %2572 = vst.msk [vmem:[#allocation6 + $0xd0] sm:$0xff] %vm2193_vm3, %v2540_v63  ;;  %v5510_v56 = vpop.eup %5509  ;;  %5090 = vmatmul.mubr.msk.f32.vlgmr.msra.gmra.mrb[32].mxu1 %vm2193_vm3, %v2541_v19  ;;  %v4034_v19 = vld [vmem:[%s6912_s3 + $0x28] sm:$0xff] }
 0x516   :  { %v5512_v9 = vpop.eup %5511  ;;  %v2535_v30 = vmul.f32 %v5510_v56, %v6428_v41  ;;  %v2463_v11 = vpop.xlane.xlu1 %2462  ;;  %v5312_v34 = vpack.c.bf16 %v4034_v19, %v4033_v7  ;;  %v5547_v19 = vld [vmem:[%s6909_s0 + $0x8] sm:$0xff] }
 0x517   :  { %5519 = vrcp.f32 %v2463_v11  ;;  %v2538_v60 = vmul.f32 %v5512_v9, %v6430_v17 }
 0x518   :  { %2567 = vst.msk [vmem:[#allocation6 + $0xa8] sm:$0xff] %vm2193_vm3, %v2535_v30  ;;  %5069 = vmatmul.mubr.msk.f32.vlgmr.msra.gmra.mrb[30].mxu0 %vm2193_vm3, %v2535_v30 }
 0x519   :  { %v5514_v24 = vpop.eup %5513  ;;  %5291 = vmatpush3.bf16.msra.mxu0 %v5288_v40  ;;  %2570 = vst.msk [vmem:[#allocation6 + $0xc0] sm:$0xff] %vm2193_vm3, %v2538_v60  ;;  %5082 = vmatprep.mubr.msk.f32.mxu0 %vm2193_vm3, %v2538_v60 }
 0x51a   :  { %v5516_v59 = vpop.eup %5515  ;;  %v2545_v36 = vmul.f32 %v5514_v24, %v6434_v25  ;;  %5297 = vmatprep.subr.bf16.mxu0 %v5296_v21  ;;  %v2475_v41 = vpop.xlane.xlu1 %2474 }
 0x51b   :  { %5521 = vrcp.f32 %v2475_v41  ;;  %v2542_v45 = vmul.f32 %v5516_v59, %v6438_v14 }
 0x51c   :  { %2577 = vst.msk [vmem:[#allocation6 + $0xf8] sm:$0xff] %vm2193_vm3, %v2545_v36 }
 0x51d   :  { %v5518_v17 = vpop.eup %5517  ;;  %2574 = vst.msk [vmem:[#allocation6 + $0xe0] sm:$0xff] %vm2193_vm3, %v2542_v45 }
 0x51e   :  { %v667_v58 = vpop.permute.xlu1 %666  ;;  %v2544_v27 = vmul.f32 %v5518_v17, %v6442_v54  ;;  %v799_v54 = vld [vmem:[#allocation2 + $0x2f0] sm:$0xff] }
 0x51f   :  { %672 = vst.msk [vmem:[#allocation2 + $0x2f8] sm:$0xff] %vm257_vm1, %v667_v58 }
 0x520   :  { %2576 = vst.msk [vmem:[#allocation6 + $0xf0] sm:$0xff] %vm2193_vm3, %v2544_v27  ;;  %5103 = vmatprep.mubr.msk.f32.mxu1 %vm2193_vm3, %v2544_v27 }
 0x521   :  { %v5520_v25 = vpop.eup %5519 }
 0x522   :  { %v2539_v47 = vmul.f32 %v5520_v25, %v6448_v12 }
 0x524   :  { %2571 = vst.msk [vmem:[#allocation6 + $0xc8] sm:$0xff] %vm2193_vm3, %v2539_v47  ;;  %5083 = vmatmul.mubr.msk.f32.vlgmr.msra.gmra.mrb[32].mxu0 %vm2193_vm3, %v2539_v47 }
 0x525   :  { %v5522_v14 = vpop.eup %5521  ;;  %5299 = vmatpush3.bf16.msra.mxu0 %v5296_v21  ;;  %5096 = vmatprep.mubr.msk.f32.mxu0 %vm2193_vm3, %v2542_v45 }
 0x526   :  { %v2543_v57 = vmul.f32 %v5522_v14, %v6452_v46  ;;  %v800_v38 = vld [vmem:[#allocation2 + $0x2f8] sm:$0xff] }
 0x527   :  { %v5300_v62 = vpack.c.bf16 %v800_v38, %v799_v54 }
 0x528   :  { %2575 = vst.msk [vmem:[#allocation6 + $0xe8] sm:$0xff] %vm2193_vm3, %v2543_v57  ;;  %5097 = vmatmul.mubr.msk.f32.vlgmr.msra.gmra.mrb[34].mxu0 %vm2193_vm3, %v2543_v57 }
 0x529   :  { %5301 = vmatprep.subr.bf16.mxu1 %v5300_v62 }
 0x52a   :  { %5303 = vmatpush3.bf16.msra.mxu1 %v5300_v62 }
 0x52b   :  { %5305 = vmatprep.subr.bf16.mxu1 %v5304_v37 }
 0x52d   :  { %5104 = vmatmul.mubr.msk.f32.vlgmr.msra.gmra.mrb[34].mxu1 %vm2193_vm3, %v2545_v36 }
 0x52e   :  { %5307 = vmatpush3.bf16.msra.mxu1 %v5304_v37  ;;  %v4686_v37 = vld [vmem:[%s6913_s4] ss:$0 sm:$0xff] }
 0x52f   :  { %5309 = vmatprep.subr.bf16.mxu1 %v5308_v0 }
 0x532   :  { %5311 = vmatpush3.bf16.msra.mxu1 %v5308_v0 }
 0x533   :  { %5313 = vmatprep.subr.bf16.mxu1 %v5312_v34 }
 0x536   :  { %5315 = vmatpush3.bf16.msra.mxu1 %v5312_v34 }
 0x537   :  { %5317 = vmatprep.subr.bf16.mxu1 %v5316_v53 }
 0x53a   :  { %5319 = vmatpush3.bf16.msra.mxu1 %v5316_v53 }
 0x591   :  { %v5000_v12 = vpop.f32.mrb[18].mxu1 }
 0x592   :  { %3875 = vst.msk [vmem:[#allocation3 + $0x8] sm:$0xff] %vm257_vm1, %v5000_v12  ;;  %v2650_v13 = vpop.f32.mrb[19].mxu1 }
 0x593   :  { %3874 = vst.msk [vmem:[#allocation3] sm:$0xff] %vm257_vm1, %v2650_v13 }
 0x5a6   :  { %v5007_v18 = vpop.f32.mrb[20].mxu1 }
 0x5a7   :  { %3880 = vrot.lane.b32.xlu1 %v5007_v18, %s5610_s17  ;;  %v2731_v46 = vpop.f32.mrb[21].mxu1 }
 0x5a8   :  { %3878 = vrot.lane.b32.xlu0 %v2731_v46, %s5610_s17 }
 0x5aa   :  { %v5021_v32 = vpop.f32.mrb[22].mxu1 }
 0x5ab   :  { %3902 = vrot.lane.b32.xlu1 %v5021_v32, %s5606_s29  ;;  %v2893_v10 = vpop.f32.mrb[23].mxu1 }
 0x5ac   :  { %3900 = vrot.lane.b32.xlu0 %v2893_v10, %s5606_s29 }
 0x5ae   :  { %v5014_v31 = vpop.f32.mrb[22].mxu0  ;;  %v5035_v39 = vpop.f32.mrb[24].mxu1 }
 0x5af   :  { %v3055_v48 = vpop.f32.mrb[25].mxu1  ;;  %3891 = vrot.lane.b32.xlu1 %v5014_v31, %s5608_s15  ;;  %v2812_v3 = vpop.f32.mrb[23].mxu0 }
 0x5b0   :  { %3889 = vrot.lane.b32.xlu0 %v2812_v3, %s5608_s15 }
 0x5b2   :  { %v5049_v5 = vpop.f32.mrb[26].mxu1 }
 0x5b3   :  { %3924 = vrot.lane.b32.xlu1 %v5035_v39, %s5605_s28  ;;  %v3217_v49 = vpop.f32.mrb[27].mxu1 }
 0x5b4   :  { %3922 = vrot.lane.b32.xlu0 %v3055_v48, %s5605_s28 }
 0x5b6   :  { %v5028_v51 = vpop.f32.mrb[24].mxu0 }
 0x5b7   :  { %v2974_v42 = vpop.f32.mrb[25].mxu0  ;;  %3946 = vrot.lane.b32.xlu1 %v5049_v5, %s5600_s24 }
 0x5b8   :  { %3944 = vrot.lane.b32.xlu0 %v3217_v49, %s5600_s24 }
 0x5bb   :  { %3913 = vrot.lane.b32.xlu1 %v5028_v51, %s5604_s27 }
 0x5bc   :  { %3911 = vrot.lane.b32.xlu0 %v2974_v42, %s5604_s27 }
 0x5d1   :  { %v5063_v6 = vpop.f32.mrb[28].mxu1 }
 0x5d2   :  { %3959 = vrot.lane.b32.xlu1 %v5063_v6, %s5610_s17  ;;  %v3379_v35 = vpop.f32.mrb[29].mxu1 }
 0x5d3   :  { %3957 = vrot.lane.b32.xlu0 %v3379_v35, %s5610_s17 }
 0x5d5   :  { %v5042_v8 = vpop.f32.mrb[26].mxu0 }
 0x5d6   :  { %3935 = vrot.lane.b32.xlu1 %v5042_v8, %s5602_s25  ;;  %v3136_v15 = vpop.f32.mrb[27].mxu0 }
 0x5d7   :  { %3933 = vrot.lane.b32.xlu0 %v3136_v15, %s5602_s25 }
 0x5dc   :  { %v5077_v4 = vpop.f32.mrb[30].mxu1 }
 0x5dd   :  { %v3541_v28 = vpop.f32.mrb[31].mxu1  ;;  %3979 = vrot.lane.b32.xlu1 %v5077_v4, %s5606_s29 }
 0x5de   :  { %3977 = vrot.lane.b32.xlu0 %v3541_v28, %s5606_s29  ;;  %v5549_v28 = vld [vmem:[%s6909_s0 + $0x10] sm:$0xff] }
 0x5e4   :  { %v5056_v61 = vpop.f32.mrb[28].mxu0 }
 0x5e5   :  { %3954 = vst.msk [vmem:[#allocation3 + $0x18] sm:$0xff] %vm257_vm1, %v5056_v61  ;;  %v3298_v40 = vpop.f32.mrb[29].mxu0 }
 0x5e6   :  { %3953 = vst.msk [vmem:[#allocation3 + $0x10] sm:$0xff] %vm257_vm1, %v3298_v40  ;;  %v5550_v40 = vld [vmem:[%s6909_s0 + $0x18] sm:$0xff] }
 0x5e8   :  { %v5091_v1 = vpop.f32.mrb[32].mxu1 }
 0x5e9   :  { %v3703_v63 = vpop.f32.mrb[33].mxu1  ;;  %3999 = vrot.lane.b32.xlu1 %v5091_v1, %s5605_s28 }
 0x5ea   :  { %3997 = vrot.lane.b32.xlu0 %v3703_v63, %s5605_s28 }
 0x5eb   :  { %v5070_v29 = vpop.f32.mrb[30].mxu0 }
 0x5ec   :  { %v3460_v56 = vpop.f32.mrb[31].mxu0 }
 0x5ed   :  { %3969 = vrot.lane.b32.xlu1 %v5070_v29, %s5608_s15 }
 0x5ee   :  { %3967 = vrot.lane.b32.xlu0 %v3460_v56, %s5608_s15 }
 0x5f7   :  { %v5084_v2 = vpop.f32.mrb[32].mxu0 }
 0x5f8   :  { %3989 = vrot.lane.b32.xlu1 %v5084_v2, %s5604_s27  ;;  %v3622_v44 = vpop.f32.mrb[33].mxu0 }
 0x5f9   :  { %3987 = vrot.lane.b32.xlu0 %v3622_v44, %s5604_s27 }
 0x5fb   :  { %v5098_v9 = vpop.f32.mrb[34].mxu0 }
 0x5fc   :  { %4009 = vrot.lane.b32.xlu1 %v5098_v9, %s5602_s25  ;;  %v3784_v30 = vpop.f32.mrb[35].mxu0 }
 0x5fd   :  { %4007 = vrot.lane.b32.xlu0 %v3784_v30, %s5602_s25 }
 0x600   :  { %v5105_v11 = vpop.f32.mrb[34].mxu1 }
 0x601   :  { %4019 = vrot.lane.b32.xlu1 %v5105_v11, %s5600_s24  ;;  %v3865_v60 = vpop.f32.mrb[35].mxu1 }
 0x602   :  { %4017 = vrot.lane.b32.xlu0 %v3865_v60, %s5600_s24 }
 0x619   :  { %v3881_v21 = vpop.permute.xlu1 %3880 }
 0x61a   :  { %3886 = vst.msk [vmem:[#allocation3 + $0x8] sm:$0xff] %vm3884_vm4, %v3881_v21  ;;  %v3879_v24 = vpop.permute.xlu0 %3878 }
 0x61b   :  { %3885 = vst.msk [vmem:[#allocation3] sm:$0xff] %vm3884_vm4, %v3879_v24 }
 0x61d   :  { %v3903_v59 = vpop.permute.xlu1 %3902 }
 0x61e   :  { %v3901_v36 = vpop.permute.xlu0 %3900 }
 0x621   :  { %v3892_v41 = vpop.permute.xlu1 %3891 }
 0x622   :  { %3897 = vst.msk [vmem:[#allocation3 + $0x8] sm:$0xff] %vm3895_vm5, %v3892_v41  ;;  %v3890_v45 = vpop.permute.xlu0 %3889  ;;  %v4222_v41 = vld [vmem:[%s6918_s9 + $0x18] sm:$0xff] }
 0x623   :  { %3896 = vst.msk [vmem:[#allocation3] sm:$0xff] %vm3895_vm5, %v3890_v45 }
 0x624   :  { %3908 = vst.msk [vmem:[#allocation3 + $0x8] sm:$0xff] %vm3906_vm6, %v3903_v59  ;;  %3907 = vst.msk [vmem:[#allocation3] sm:$0xff] %vm3906_vm6, %v3901_v36  ;;  %v4220_v36 = vld [vmem:[%s6918_s9 + $0x8] sm:$0xff] }
 0x625   :  { %v3925_v17 = vpop.permute.xlu1 %3924  ;;  %v5320_v45 = vpack.c.bf16 %v4222_v41, %v4220_v36 }
 0x626   :  { %v3923_v58 = vpop.permute.xlu0 %3922 }
 0x627   :  { %5321 = vmatprep.subr.bf16.mxu1 %v5320_v45 }
 0x629   :  { %v3947_v27 = vpop.permute.xlu1 %3946 }
 0x62a   :  { %v3945_v25 = vpop.permute.xlu0 %3944 }
 0x62d   :  { %v3914_v47 = vpop.permute.xlu1 %3913 }
 0x62e   :  { %3919 = vst.msk [vmem:[#allocation3 + $0x8] sm:$0xff] %vm3917_vm7, %v3914_v47  ;;  %v3912_v14 = vpop.permute.xlu0 %3911  ;;  %v4226_v47 = vld [vmem:[%s6918_s9 + $0x38] sm:$0xff] }
 0x62f   :  { %3918 = vst.msk [vmem:[#allocation3] sm:$0xff] %vm3917_vm7, %v3912_v14 }
 0x630   :  { %3930 = vst.msk [vmem:[#allocation3 + $0x8] sm:$0xff] %vm3928_vm8, %v3925_v17  ;;  %3929 = vst.msk [vmem:[#allocation3] sm:$0xff] %vm3928_vm8, %v3923_v58  ;;  %v4219_v17 = vld [vmem:[%s6918_s9] sm:$0xff]  ;;  %v4221_v58 = vld [vmem:[%s6918_s9 + $0x10] sm:$0xff] }
 0x644   :  { %v3960_v57 = vpop.permute.xlu1 %3959 }
 0x645   :  { %3964 = vst.msk [vmem:[#allocation3 + $0x18] sm:$0xff] %vm3884_vm4, %v3960_v57  ;;  %v3958_v54 = vpop.permute.xlu0 %3957  ;;  %v4223_v57 = vld [vmem:[%s6918_s9 + $0x20] sm:$0xff] }
 0x646   :  { %3963 = vst.msk [vmem:[#allocation3 + $0x10] sm:$0xff] %vm3884_vm4, %v3958_v54  ;;  %v4225_v54 = vld [vmem:[%s6918_s9 + $0x30] sm:$0xff] }
 0x648   :  { %v3936_v38 = vpop.permute.xlu1 %3935 }
 0x649   :  { %3941 = vst.msk [vmem:[#allocation3 + $0x8] sm:$0xff] %vm3939_vm9, %v3936_v38  ;;  %v3934_v62 = vpop.permute.xlu0 %3933  ;;  %v5326_v38 = vpack.c.bf16 %v4225_v54, %v4223_v57 }
 0x64a   :  { %3952 = vst.msk [vmem:[#allocation3 + $0x8] sm:$0xff] %vm3950_vm10, %v3947_v27  ;;  %v5322_v27 = vpack.c.bf16 %v4221_v58, %v4219_v17 }
 0x64b   :  { %3940 = vst.msk [vmem:[#allocation3] sm:$0xff] %vm3939_vm9, %v3934_v62  ;;  %v4228_v62 = vld [vmem:[%s6918_s9 + $0x48] sm:$0xff] }
 0x64c   :  { %3951 = vst.msk [vmem:[#allocation3] sm:$0xff] %vm3950_vm10, %v3945_v25  ;;  %v4224_v25 = vld [vmem:[%s6918_s9 + $0x28] sm:$0xff] }
 0x64d   :  { %v5324_v14 = vpack.c.bf16 %v4226_v47, %v4224_v25 }
 0x64f   :  { %v3980_v18 = vpop.permute.xlu1 %3979 }
 0x650   :  { %v3978_v46 = vpop.permute.xlu0 %3977 }
 0x651   :  { %v4026_v13 = vld [vmem:[#allocation3 + $0x8] sm:$0xff] }
 0x653   :  { %v4025_v12 = vld [vmem:[#allocation3] sm:$0xff] }
 0x654   :  { %5122 = vmatprep.mubr.msk.f32.mxu1 %vm54_vm0, %v4025_v12  ;;  %v4230_v12 = vld [vmem:[%s6918_s9 + $0x58] sm:$0xff] }
 0x655   :  { %5123 = vmatmul.mubr.msk.f32.vlgmr.msra.gmra.mrb[36].mxu1 %vm54_vm0, %v4026_v13  ;;  %v5328_v13 = vpack.c.bf16 %v4230_v12, %v4228_v62 }
 0x656   :  { %5323 = vmatpush1.bf16.msra.mxu1 %v5322_v27 }
 0x657   :  { %5325 = vmatprep.subr.bf16.mxu1 %v5324_v14 }
 0x65a   :  { %5327 = vmatpush1.bf16.msra.mxu1 %v5326_v38 }
 0x65b   :  { %v4000_v32 = vpop.permute.xlu1 %3999  ;;  %5329 = vmatprep.subr.bf16.mxu1 %v5328_v13  ;;  %v4438_v13 = vld [vmem:[%s6920_s11 + $0x90] sm:$0xff] }
 0x65c   :  { %v3998_v10 = vpop.permute.xlu0 %3997 }
 0x65f   :  { %v3970_v31 = vpop.permute.xlu1 %3969 }
 0x660   :  { %3974 = vst.msk [vmem:[#allocation3 + $0x18] sm:$0xff] %vm3895_vm5, %v3970_v31  ;;  %v3968_v39 = vpop.permute.xlu0 %3967  ;;  %v4234_v31 = vld [vmem:[%s6918_s9 + $0x78] sm:$0xff] }
 0x661   :  { %3984 = vst.msk [vmem:[#allocation3 + $0x18] sm:$0xff] %vm3906_vm6, %v3980_v18  ;;  %v4227_v18 = vld [vmem:[%s6918_s9 + $0x40] sm:$0xff] }
 0x662   :  { %3973 = vst.msk [vmem:[#allocation3 + $0x10] sm:$0xff] %vm3895_vm5, %v3968_v39 }
 0x663   :  { %3983 = vst.msk [vmem:[#allocation3 + $0x10] sm:$0xff] %vm3906_vm6, %v3978_v46  ;;  %v4229_v46 = vld [vmem:[%s6918_s9 + $0x50] sm:$0xff] }
 0x66a   :  { %v3990_v48 = vpop.permute.xlu1 %3989 }
 0x66b   :  { %3994 = vst.msk [vmem:[#allocation3 + $0x18] sm:$0xff] %vm3917_vm7, %v3990_v48  ;;  %v3988_v3 = vpop.permute.xlu0 %3987  ;;  %v4231_v48 = vld [vmem:[%s6918_s9 + $0x60] sm:$0xff] }
 0x66c   :  { %4004 = vst.msk [vmem:[#allocation3 + $0x18] sm:$0xff] %vm3928_vm8, %v4000_v32  ;;  %v5330_v32 = vpack.c.bf16 %v4229_v46, %v4227_v18  ;;  %v4439_v18 = vld [vmem:[%s6920_s11 + $0x98] sm:$0xff] }
 0x66d   :  { %3993 = vst.msk [vmem:[#allocation3 + $0x10] sm:$0xff] %vm3917_vm7, %v3988_v3  ;;  %v4233_v3 = vld [vmem:[%s6918_s9 + $0x70] sm:$0xff]  ;;  %v5340_v46 = vpack.c.bf16 %v4439_v18, %v4438_v13 }
 0x66e   :  { %4003 = vst.msk [vmem:[#allocation3 + $0x10] sm:$0xff] %vm3928_vm8, %v3998_v10  ;;  %v4010_v5 = vpop.permute.xlu1 %4009  ;;  %5331 = vmatpush1.bf16.msra.mxu1 %v5330_v32  ;;  %v4232_v10 = vld [vmem:[%s6918_s9 + $0x68] sm:$0xff]  ;;  %v4422_v32 = vld [vmem:[%s6920_s11 + $0x10] sm:$0xff] }
 0x66f   :  { %4014 = vst.msk [vmem:[#allocation3 + $0x18] sm:$0xff] %vm3939_vm9, %v4010_v5  ;;  %v4008_v49 = vpop.permute.xlu0 %4007  ;;  %v5332_v39 = vpack.c.bf16 %v4234_v31, %v4232_v10  ;;  %v5334_v5 = vpack.c.bf16 %v4233_v3, %v4231_v48  ;;  %v4440_v31 = vld [vmem:[%s6920_s11 + $0xa0] sm:$0xff] }
 0x670   :  { %4013 = vst.msk [vmem:[#allocation3 + $0x10] sm:$0xff] %vm3939_vm9, %v4008_v49  ;;  %v4424_v3 = vld [vmem:[%s6920_s11 + $0x20] sm:$0xff] }
 0x671   :  { %5333 = vmatprep.subr.bf16.mxu1 %v5332_v39  ;;  %v4441_v39 = vld [vmem:[%s6920_s11 + $0xa8] sm:$0xff] }
 0x672   :  { %5335 = vmatpush1.bf16.msra.mxu1 %v5334_v5  ;;  %v5344_v48 = vpack.c.bf16 %v4441_v39, %v4440_v31  ;;  %v4425_v5 = vld [vmem:[%s6920_s11 + $0x28] sm:$0xff] }
 0x673   :  { %v4020_v51 = vpop.permute.xlu1 %4019 }
 0x674   :  { %4024 = vst.msk [vmem:[#allocation3 + $0x18] sm:$0xff] %vm3950_vm10, %v4020_v51  ;;  %v4018_v42 = vpop.permute.xlu0 %4017 }
 0x675   :  { %4023 = vst.msk [vmem:[#allocation3 + $0x10] sm:$0xff] %vm3950_vm10, %v4018_v42 }
 0x67b   :  { %v4028_v33 = vld [vmem:[#allocation3 + $0x18] sm:$0xff] }
 0x67c   :  { %v4027_v52 = vld [vmem:[#allocation3 + $0x10] sm:$0xff] }
 0x67d   :  { %5125 = vmatprep.mubr.msk.f32.mxu1 %vm54_vm0, %v4027_v52 }
 0x67e   :  { %5126 = vmatmul.mubr.msk.f32.gmra.mrb[38].mxu1 %vm54_vm0, %v4028_v33 }
 0x67f   :  { %4323 = vmatprep.mubr.f32.mxu1 %v5599_v50 }
 0x728   :  { %v5124_v16 = vpop.f32.mrb[36].mxu1 }
 0x729   :  { %v4128_v43 = vadd.f32 %v5124_v16, %v4686_v37  ;;  %v4122_v0 = vpop.f32.mrb[37].mxu1 }
 0x72a   :  { %v4123_v7 = vadd.f32 %v4686_v37, %v4122_v0 }
 0x72b   :  { %v6655_v34 = vadd.f32 %v5547_v19, %v4128_v43  ;;  %v4436_v19 = vld [vmem:[%s6920_s11 + $0x80] sm:$0xff] }
 0x72c   :  { %v6660_v26 = vadd.f32 %v5548_v55, %v4123_v7  ;;  %v4437_v55 = vld [vmem:[%s6920_s11 + $0x88] sm:$0xff] }
 0x72d   :  { %v4150_v53 = vsel %vm54_vm0, %v6655_v34, 0.0 }
 0x72e   :  { %4151 = vadd.xlane.f32.xlu1 %v4150_v53  ;;  %v4147_v6 = vsel %vm54_vm0, %v6660_v26, 0.0  ;;  %v4420_v53 = vld [vmem:[%s6920_s11] sm:$0xff] }
 0x72f   :  { %4148 = vadd.xlane.f32.xlu0 %v4147_v6  ;;  %v5336_v6 = vpack.c.bf16 %v4437_v55, %v4436_v19  ;;  %v4429_v19 = vld [vmem:[%s6920_s11 + $0x48] sm:$0xff] }
 0x731   :  { %5337 = vmatprep.subr.bf16.mxu0 %v5336_v6  ;;  %v4447_v6 = vld [vmem:[%s6920_s11 + $0xd8] sm:$0xff] }
 0x751   :  { %v5127_v35 = vpop.f32.mrb[38].mxu1 }
 0x752   :  { %v4132_v8 = vpop.f32.mrb[39].mxu1  ;;  %v4138_v15 = vadd.f32 %v5127_v35, %v4686_v37  ;;  %v4421_v35 = vld [vmem:[%s6920_s11 + $0x8] sm:$0xff] }
 0x753   :  { %v4133_v4 = vadd.f32 %v4686_v37, %v4132_v8  ;;  %v5338_v8 = vpack.c.bf16 %v4421_v35, %v4420_v53  ;;  %v4446_v53 = vld [vmem:[%s6920_s11 + $0xd0] sm:$0xff] }
 0x754   :  { %v6674_v1 = vadd.f32 %v5550_v40, %v4138_v15 }
 0x755   :  { %v6669_v61 = vadd.f32 %v5549_v28, %v4133_v4  ;;  %5339 = vmatpush3.bf16.msra.mxu0 %v5338_v8  ;;  %v5356_v8 = vpack.c.bf16 %v4447_v6, %v4446_v53 }
 0x756   :  { %v4156_v29 = vsel %vm54_vm0, %v6674_v1, 0.0  ;;  %5341 = vmatprep.subr.bf16.mxu0 %v5340_v46 }
 0x757   :  { %v4153_v63 = vsel %vm54_vm0, %v6669_v61, 0.0 }
 0x758   :  { %4154 = vadd.xlane.f32.xlu0 %v4153_v63 }
 0x75c   :  { %4157 = vadd.xlane.f32.xlu0 %v4156_v29 }
 0x7bb   :  { %v4152_v56 = vpop.xlane.xlu1 %4151 }
 0x7bc   :  { %v4160_v2 = vmul.f32 0.015625, %v4152_v56  ;;  %v4149_v44 = vpop.xlane.xlu0 %4148 }
 0x7bd   :  { %v4159_v9 = vmul.f32 0.015625, %v4149_v44  ;;  %v4691_v44 = vld [vmem:[%s6916_s7] ss:$0 sm:$0xff] }
 0x7be   :  { %v6681_v30 = vsub.f32 %v6655_v34, %v4160_v2 }
 0x7bf   :  { %v6684_v11 = vsub.f32 %v6660_v26, %v4159_v9 }
 0x7c0   :  { %v4168_v60 = vmul.f32 %v6681_v30, %v6681_v30 }
 0x7c1   :  { %v4167_v21 = vmul.f32 %v6684_v11, %v6684_v11 }
 0x7c2   :  { %v4174_v24 = vsel %vm54_vm0, %v4168_v60, 0.0 }
 0x7c3   :  { %4175 = vadd.xlane.f32.xlu1 %v4174_v24  ;;  %v4171_v59 = vsel %vm54_vm0, %v4167_v21, 0.0  ;;  %v4692_v21 = vld [vmem:[%s6917_s8] ss:$0 sm:$0xff] }
 0x7c4   :  { %4172 = vadd.xlane.f32.xlu0 %v4171_v59 }
 0x7e5   :  { %v4155_v49 = vpop.xlane.xlu0 %4154 }
 0x7e6   :  { %v4161_v51 = vmul.f32 0.015625, %v4155_v49  ;;  %v5346_v49 = vpack.c.bf16 %v4425_v5, %v4424_v3 }
 0x7e8   :  { %v4165_v42 = vsub.f32 %v6669_v61, %v4161_v51  ;;  %v4442_v51 = vld [vmem:[%s6920_s11 + $0xb0] sm:$0xff] }
 0x7e9   :  { %v4158_v52 = vpop.xlane.xlu0 %4157 }
 0x7ea   :  { %v4162_v33 = vmul.f32 0.015625, %v4158_v52  ;;  %v4169_v37 = vmul.f32 %v4165_v42, %v4165_v42 }
 0x7ec   :  { %v4166_v16 = vsub.f32 %v6674_v1, %v4162_v33  ;;  %v4177_v43 = vsel %vm54_vm0, %v4169_v37, 0.0  ;;  %v4426_v33 = vld [vmem:[%s6920_s11 + $0x30] sm:$0xff]  ;;  %v4427_v37 = vld [vmem:[%s6920_s11 + $0x38] sm:$0xff] }
 0x7ed   :  { %4178 = vadd.xlane.f32.xlu0 %v4177_v43  ;;  %v5350_v43 = vpack.c.bf16 %v4427_v37, %v4426_v33 }
 0x7ee   :  { %v4170_v0 = vmul.f32 %v4166_v16, %v4166_v16 }
 0x7f0   :  { %v4180_v7 = vsel %vm54_vm0, %v4170_v0, 0.0  ;;  %v4445_v0 = vld [vmem:[%s6920_s11 + $0xc8] sm:$0xff] }
 0x7f1   :  { %4181 = vadd.xlane.f32.xlu1 %v4180_v7  ;;  %v4428_v7 = vld [vmem:[%s6920_s11 + $0x40] sm:$0xff] }
 0x7f2   :  { %v5354_v35 = vpack.c.bf16 %v4429_v19, %v4428_v7 }
 0x850   :  { %v4176_v15 = vpop.xlane.xlu1 %4175 }
 0x851   :  { %v4184_v4 = vmul.f32 0.015625, %v4176_v15  ;;  %v4173_v28 = vpop.xlane.xlu0 %4172  ;;  %v4430_v15 = vld [vmem:[%s6920_s11 + $0x50] sm:$0xff] }
 0x852   :  { %v4183_v40 = vmul.f32 0.015625, %v4173_v28  ;;  %v4448_v28 = vld [vmem:[%s6920_s11 + $0xe0] sm:$0xff] }
 0x853   :  { %v4188_v63 = vadd.f32 1e-05, %v4184_v4  ;;  %v4431_v4 = vld [vmem:[%s6920_s11 + $0x58] sm:$0xff] }
 0x854   :  { %v4187_v29 = vadd.f32 1e-05, %v4183_v40  ;;  %v4449_v40 = vld [vmem:[%s6920_s11 + $0xe8] sm:$0xff] }
 0x855   :  { %5523 = vrsqrt.f32 %v4188_v63  ;;  %v5358_v63 = vpack.c.bf16 %v4431_v4, %v4430_v15 }
 0x856   :  { %5525 = vrsqrt.f32 %v4187_v29  ;;  %v5360_v29 = vpack.c.bf16 %v4449_v40, %v4448_v28 }
 0x85f   :  { %v5524_v56 = vpop.eup %5523 }
 0x860   :  { %v5526_v2 = vpop.eup %5525  ;;  %v4196_v60 = vmul.f32 %v5524_v56, %v6681_v30  ;;  %v4432_v56 = vld [vmem:[%s6920_s11 + $0x60] sm:$0xff] }
 0x861   :  { %v4195_v9 = vmul.f32 %v5526_v2, %v6684_v11  ;;  %v4433_v2 = vld [vmem:[%s6920_s11 + $0x68] sm:$0xff] }
 0x862   :  { %v4206_v36 = vmul.f32 %v4691_v44, %v4196_v60  ;;  %v5362_v60 = vpack.c.bf16 %v4433_v2, %v4432_v56 }
 0x863   :  { %v4205_v24 = vmul.f32 %v4691_v44, %v4195_v9  ;;  %v4451_v9 = vld [vmem:[%s6920_s11 + $0xf8] sm:$0xff] }
 0x864   :  { %v4216_v41 = vadd.f32 %v4692_v21, %v4206_v36 }
 0x865   :  { %v4215_v59 = vadd.f32 %v4692_v21, %v4205_v24  ;;  %v4434_v24 = vld [vmem:[%s6920_s11 + $0x70] sm:$0xff] }
 0x867   :  { %4693 = vmatmul.mubr.msk.f32.vlgmr.msra.gmra.mrb[40].mxu1 %vm54_vm0, %v4215_v59  ;;  %v4435_v59 = vld [vmem:[%s6920_s11 + $0x78] sm:$0xff] }
 0x868   :  { %4329 = vmatprep.mubr.f32.mxu1 %v5599_v50  ;;  %v5366_v36 = vpack.c.bf16 %v4435_v59, %v4434_v24 }
 0x86b   :  { %4694 = vmatmul.mubr.msk.f32.gmra.mrb[42].mxu1 %vm54_vm0, %v4216_v41  ;;  %v4235_v41 = vld [vmem:[%s6919_s10] sm:$0x3]  ;;  %s5615_s10 = smov [#allocation6]  }
 0x86c   :  { %4335 = vmatprep.mubr.f32.mxu1 %v5599_v50 }
 0x87a   :  { %v4179_v45 = vpop.xlane.xlu0 %4178 }
 0x87b   :  { %v4185_v11 = vmul.f32 0.015625, %v4179_v45  ;;  %v4240_v45 = vrot.slane %v4235_v41, %v148_v22 }
 0x87d   :  { %v4189_v17 = vadd.f32 1e-05, %v4185_v11  ;;  %v6862_v11 = vrot.slane %v4235_v41, %v152_v23 }
 0x87e   :  { %v4182_v30 = vpop.xlane.xlu1 %4181 }
 0x87f   :  { %5527 = vrsqrt.f32 %v4189_v17  ;;  %v4186_v58 = vmul.f32 0.015625, %v4182_v30 }
 0x881   :  { %v4190_v27 = vadd.f32 1e-05, %v4186_v58 }
 0x883   :  { %5529 = vrsqrt.f32 %v4190_v27 }
 0x889   :  { %v5528_v25 = vpop.eup %5527 }
 0x88a   :  { %v4197_v47 = vmul.f32 %v5528_v25, %v4165_v42  ;;  %v4443_v42 = vld [vmem:[%s6920_s11 + $0xb8] sm:$0xff] }
 0x88b   :  { %v5348_v52 = vpack.c.bf16 %v4443_v42, %v4442_v51 }
 0x88c   :  { %v4207_v14 = vmul.f32 %v4691_v44, %v4197_v47 }
 0x88d   :  { %v5530_v57 = vpop.eup %5529 }
 0x88e   :  { %v4217_v54 = vadd.f32 %v4692_v21, %v4207_v14  ;;  %v4198_v38 = vmul.f32 %v5530_v57, %v4166_v16  ;;  %v4444_v16 = vld [vmem:[%s6920_s11 + $0xc0] sm:$0xff] }
 0x88f   :  { %v5352_v55 = vpack.c.bf16 %v4445_v0, %v4444_v16 }
 0x890   :  { %4695 = vmatmul.mubr.msk.f32.gmra.mrb[44].mxu1 %vm54_vm0, %v4217_v54  ;;  %v4208_v62 = vmul.f32 %v4691_v44, %v4198_v38  ;;  %v4450_v44 = vld [vmem:[%s6920_s11 + $0xf0] sm:$0xff] }
 0x891   :  { %4341 = vmatprep.mubr.f32.mxu1 %v5599_v50  ;;  %v4423_v50 = vld [vmem:[%s6920_s11 + $0x18] sm:$0xff]  ;;  %s4569_s11 = sshll.u32 %s5615_s10, 4  ;;  %s4570_s11 = int_to_ptr.vmem [resolvable:$true] %s4569_s11 }
 0x892   :  { %v4218_v12 = vadd.f32 %v4692_v21, %v4208_v62  ;;  %v5342_v10 = vpack.c.bf16 %v4423_v50, %v4422_v32  ;;  %v5364_v21 = vpack.c.bf16 %v4451_v9, %v4450_v44  ;;  %s5551_s18 = scalar_lea.vmem %s4570_s11, 4096  ;;  %p5556_p1 = scmp.lt.s32.totalorder %s4570_s11, %s4570_s11 }
 0x893   :  { %p5552_p0 = scmp.ne.s32.totalorder %s4570_s11, %s5551_s18  ;;  %p5557_p2 = scmp.lt.s32.totalorder %s5551_s18, %s5551_s18 }
 0x894   :  { %4696 = vmatmul.mubr.msk.f32.gmra.mrb[46].mxu1 %vm54_vm0, %v4218_v12  ;;  %5343 = vmatpush3.bf16.msra.mxu0 %v5342_v10 }
 0x895   :  { %5345 = vmatprep.subr.bf16.mxu0 %v5344_v48  ;;  %p5558_p3 = por %p5557_p2, %p5556_p1 }
 0x897   :  { %p5559_p4 = pnand %p5558_p3, %p5552_p0 }
 0x898   :  { %5347 = vmatpush3.bf16.msra.mxu0 %v5346_v49 }
 0x899   :  { %5349 = vmatprep.subr.bf16.mxu0 %v5348_v52 }
 0x89c   :  { %5351 = vmatpush3.bf16.msra.mxu0 %v5350_v43 }
 0x89d   :  { %5353 = vmatprep.subr.bf16.mxu0 %v5352_v55 }
 0x8a0   :  { %5355 = vmatpush3.bf16.msra.mxu0 %v5354_v35 }
 0x8a1   :  { %5357 = vmatprep.subr.bf16.mxu0 %v5356_v8 }
 0x8a4   :  { %5359 = vmatpush3.bf16.msra.mxu0 %v5358_v63 }
 0x8a5   :  { %5361 = vmatprep.subr.bf16.mxu0 %v5360_v29 }
 0x8a8   :  { %5363 = vmatpush3.bf16.msra.mxu0 %v5362_v60 }
 0x8a9   :  { %5365 = vmatprep.subr.bf16.mxu0 %v5364_v21 }
 0x8ac   :  { %5367 = vmatpush3.bf16.msra.mxu0 %v5366_v36 }
 0x93a   :  { %v4325_v17 = vpop.f32.mrb[40].mxu1 }
 0x93b   :  { %v4326_v30 = vadd.f32 %v4325_v17, %v4240_v45  ;;  %v4327_v58 = vpop.f32.mrb[41].mxu1 }
 0x93c   :  { %v4328_v27 = vadd.f32 %v4327_v58, %v6862_v11 }
 0x93d   :  { %v4356_v25 = vmul.f32 0.044715, %v4326_v30  ;;  %v4348_v43 = vmul.f32 0.5, %v4326_v30 }
 0x93e   :  { %v4357_v47 = vmul.f32 0.044715, %v4328_v27  ;;  %v4331_v14 = vpop.f32.mrb[42].mxu1  ;;  %v4349_v37 = vmul.f32 0.5, %v4328_v27 }
 0x93f   :  { %v4364_v57 = vmul.f32 %v4356_v25, %v4326_v30  ;;  %v4332_v54 = vadd.f32 %v4331_v14, %v4240_v45  ;;  %v4333_v38 = vpop.f32.mrb[43].mxu1 }
 0x940   :  { %v4365_v62 = vmul.f32 %v4357_v47, %v4328_v27  ;;  %v4334_v12 = vadd.f32 %v4333_v38, %v6862_v11 }
 0x941   :  { %v4372_v13 = vmul.f32 %v4364_v57, %v4326_v30  ;;  %v4358_v22 = vmul.f32 0.044715, %v4332_v54  ;;  %v4350_v8 = vmul.f32 0.5, %v4332_v54 }
 0x942   :  { %v4359_v18 = vmul.f32 0.044715, %v4334_v12  ;;  %v4373_v20 = vmul.f32 %v4365_v62, %v4328_v27  ;;  %v4351_v6 = vmul.f32 0.5, %v4334_v12 }
 0x943   :  { %v4380_v23 = vadd.f32 %v4372_v13, %v4326_v30  ;;  %v4366_v46 = vmul.f32 %v4358_v22, %v4332_v54 }
 0x944   :  { %v4367_v32 = vmul.f32 %v4359_v18, %v4334_v12  ;;  %v4381_v50 = vadd.f32 %v4373_v20, %v4328_v27 }
 0x945   :  { %v4388_v10 = vmul.f32 0.7978846, %v4380_v23  ;;  %v4374_v31 = vmul.f32 %v4366_v46, %v4332_v54 }
 0x946   :  { %v4389_v39 = vmul.f32 0.7978846, %v4381_v50  ;;  %v4375_v48 = vmul.f32 %v4367_v32, %v4334_v12 }
 0x947   :  { %5531 = vtanh.f32 %v4388_v10  ;;  %v4382_v3 = vadd.f32 %v4374_v31, %v4332_v54 }
 0x948   :  { %5533 = vtanh.f32 %v4389_v39  ;;  %v4383_v5 = vadd.f32 %v4375_v48, %v4334_v12 }
 0x949   :  { %v4390_v49 = vmul.f32 0.7978846, %v4382_v3 }
 0x94a   :  { %v4391_v51 = vmul.f32 0.7978846, %v4383_v5 }
 0x94b   :  { %5535 = vtanh.f32 %v4390_v49 }
 0x94c   :  { %5537 = vtanh.f32 %v4391_v51 }
 0x951   :  { %v5532_v42 = vpop.eup %5531 }
 0x952   :  { %v5534_v52 = vpop.eup %5533  ;;  %v4404_v33 = vadd.f32 1.0, %v5532_v42 }
 0x953   :  { %v4405_v16 = vadd.f32 1.0, %v5534_v52 }
 0x954   :  { %v4412_v55 = vmul.f32 %v4404_v33, %v4348_v43 }
 0x955   :  { %v5536_v0 = vpop.eup %5535  ;;  %v4413_v7 = vmul.f32 %v4405_v16, %v4349_v37 }
 0x956   :  { %v5538_v19 = vpop.eup %5537  ;;  %v4406_v53 = vadd.f32 1.0, %v5536_v0 }
 0x957   :  { %4523 = vmatprep.mubr.f32.mxu0 %v4413_v7  ;;  %v4407_v35 = vadd.f32 1.0, %v5538_v19 }
 0x958   :  { %4524 = vmatmul.mubr.f32.vlgmr.msra.gmra.mrb[36].mxu0 %v4412_v55  ;;  %v4414_v4 = vmul.f32 %v4406_v53, %v4350_v8 }
 0x959   :  { %v4415_v15 = vmul.f32 %v4407_v35, %v4351_v6 }
 0x95b   :  { %4528 = vmatprep.mubr.f32.mxu0 %v4415_v15 }
 0x95c   :  { %4529 = vmatmul.mubr.f32.gmra.mrb[38].mxu0 %v4414_v4 }
 0x963   :  { %v4337_v28 = vpop.f32.mrb[44].mxu1 }
 0x964   :  { %v4338_v40 = vadd.f32 %v4337_v28, %v4240_v45  ;;  %v4339_v63 = vpop.f32.mrb[45].mxu1 }
 0x965   :  { %v4340_v29 = vadd.f32 %v4339_v63, %v6862_v11 }
 0x966   :  { %v4360_v56 = vmul.f32 0.044715, %v4338_v40  ;;  %v4352_v46 = vmul.f32 0.5, %v4338_v40 }
 0x967   :  { %v4361_v2 = vmul.f32 0.044715, %v4340_v29  ;;  %v4343_v44 = vpop.f32.mrb[46].mxu1  ;;  %v4353_v20 = vmul.f32 0.5, %v4340_v29 }
 0x968   :  { %v4368_v9 = vmul.f32 %v4360_v56, %v4338_v40  ;;  %v4344_v60 = vadd.f32 %v4343_v44, %v4240_v45  ;;  %v4345_v21 = vpop.f32.mrb[47].mxu1 }
 0x969   :  { %v4369_v24 = vmul.f32 %v4361_v2, %v4340_v29  ;;  %v4346_v59 = vadd.f32 %v4345_v21, %v6862_v11 }
 0x96a   :  { %v4362_v36 = vmul.f32 0.044715, %v4344_v60  ;;  %v4376_v41 = vmul.f32 %v4368_v9, %v4338_v40  ;;  %v4354_v5 = vmul.f32 0.5, %v4344_v60 }
 0x96b   :  { %v4363_v17 = vmul.f32 0.044715, %v4346_v59  ;;  %v4377_v30 = vmul.f32 %v4369_v24, %v4340_v29  ;;  %v4355_v48 = vmul.f32 0.5, %v4346_v59 }
 0x96c   :  { %v4370_v58 = vmul.f32 %v4362_v36, %v4344_v60  ;;  %v4384_v27 = vadd.f32 %v4376_v41, %v4338_v40 }
 0x96d   :  { %v4371_v25 = vmul.f32 %v4363_v17, %v4346_v59  ;;  %v4385_v47 = vadd.f32 %v4377_v30, %v4340_v29 }
 0x96e   :  { %v4392_v14 = vmul.f32 0.7978846, %v4384_v27  ;;  %v4378_v57 = vmul.f32 %v4370_v58, %v4344_v60 }
 0x96f   :  { %v4393_v54 = vmul.f32 0.7978846, %v4385_v47  ;;  %v4379_v38 = vmul.f32 %v4371_v25, %v4346_v59 }
 0x970   :  { %5539 = vtanh.f32 %v4392_v14  ;;  %v4386_v62 = vadd.f32 %v4378_v57, %v4344_v60 }
 0x971   :  { %5541 = vtanh.f32 %v4393_v54  ;;  %v4387_v45 = vadd.f32 %v4379_v38, %v4346_v59 }
 0x972   :  { %v4394_v12 = vmul.f32 0.7978846, %v4386_v62 }
 0x973   :  { %v4395_v13 = vmul.f32 0.7978846, %v4387_v45 }
 0x974   :  { %5543 = vtanh.f32 %v4394_v12 }
 0x975   :  { %5545 = vtanh.f32 %v4395_v13 }
 0x97a   :  { %v5540_v11 = vpop.eup %5539 }
 0x97b   :  { %v5542_v22 = vpop.eup %5541  ;;  %v4408_v18 = vadd.f32 1.0, %v5540_v11 }
 0x97c   :  { %v4409_v23 = vadd.f32 1.0, %v5542_v22 }
 0x97d   :  { %v4416_v31 = vmul.f32 %v4408_v18, %v4352_v46 }
 0x97e   :  { %v5544_v32 = vpop.eup %5543  ;;  %v4417_v50 = vmul.f32 %v4409_v23, %v4353_v20 }
 0x97f   :  { %v5546_v10 = vpop.eup %5545  ;;  %v4410_v39 = vadd.f32 1.0, %v5544_v32 }
 0x980   :  { %4533 = vmatprep.mubr.f32.mxu0 %v4417_v50  ;;  %v4411_v3 = vadd.f32 1.0, %v5546_v10 }
 0x981   :  { %4534 = vmatmul.mubr.f32.gmra.mrb[40].mxu0 %v4416_v31  ;;  %v4418_v51 = vmul.f32 %v4410_v39, %v4354_v5 }
 0x982   :  { %v4419_v49 = vmul.f32 %v4411_v3, %v4355_v48 }
 0x984   :  { %4538 = vmatprep.mubr.f32.mxu0 %v4419_v49 }
 0x985   :  { %4539 = vmatmul.mubr.f32.gmra.mrb[42].mxu0 %v4418_v51 }
 0x986   :  { %5562 = shalt.err (!%p5559_p4)
}
 0x987   :  { %s5563_s1 = scalar_lea.hbm %s6923_s14, 4096 }
 0x988   :  { %p5564_p5 = scmp.ne.s32.totalorder %s6923_s14, %s5563_s1  ;;  %p5567_p6 = scmp.lt.u32.totalorder %s5563_s1, %s6923_s14 }
 0x98a   :  { %p5569_p7 = pnand %p5567_p6, %p5564_p5 }
 0x98c   :  { %5572 = shalt.err (!%p5569_p7)
}
 0x98d   :  { %s5616_s3 = smov 128   ;;  %v4697_v52 = vld [vmem:[%s6921_s12] ss:$0 sm:$0xff]  ;;  %s5617_s12 = smov [#allocation4]  }
 0x98e   :  { %4575 = dma.vmem_to_hbm [thread:$0]  %s4570_s11, 4096, %s6923_s14, [#allocation7], %s5616_s3, %s5616_s3, %s5610_s17  }
 0x98f   :  { %s4557_s14 = sshll.u32 %s5617_s12, 4  ;;  %s4558_s14 = int_to_ptr.vmem [resolvable:$true] %s4557_s14 }
 0x990   :  { %s5573_s29 = scalar_lea.vmem %s4558_s14, 512  ;;  %p5578_p9 = scmp.lt.s32.totalorder %s4558_s14, %s4558_s14 }
 0x991   :  { %p5574_p8 = scmp.ne.s32.totalorder %s4558_s14, %s5573_s29  ;;  %p5579_p10 = scmp.lt.s32.totalorder %s5573_s29, %s5573_s29 }
 0x993   :  { %p5580_p11 = por %p5579_p10, %p5578_p9 }
 0x995   :  { %p5581_p12 = pnand %p5580_p11, %p5574_p8 }
 0xa2b   :  { %v4870_v42 = vpop.f32.mrb[36].mxu0 }
 0xa2c   :  { %v4871_v33 = vpop.f32.mrb[37].mxu0 }
 0xa2d   :  { %v4872_v37 = vadd.f32 %v4871_v33, %v4870_v42 }
 0xa2f   :  { %v4526_v16 = vadd.f32 %v4872_v37, %v4697_v52  ;;  %v4873_v43 = vpop.f32.mrb[38].mxu0 }
 0xa30   :  { %v4874_v0 = vpop.f32.mrb[39].mxu0 }
 0xa31   :  { %v4544_v7 = vadd.f32 %v4526_v16, %v6660_v26  ;;  %v4875_v19 = vadd.f32 %v4874_v0, %v4873_v43 }
 0xa33   :  { %4548 = vst.msk [vmem:[#allocation4] sm:$0xff] %vm54_vm0, %v4544_v7  ;;  %v4531_v55 = vadd.f32 %v4875_v19, %v4697_v52 }
 0xa35   :  { %v4545_v53 = vadd.f32 %v4531_v55, %v6655_v34 }
 0xa37   :  { %4549 = vst.msk [vmem:[#allocation4 + $0x8] sm:$0xff] %vm54_vm0, %v4545_v53 }
 0xa54   :  { %v4876_v6 = vpop.f32.mrb[40].mxu0 }
 0xa55   :  { %v4877_v35 = vpop.f32.mrb[41].mxu0 }
 0xa56   :  { %v4878_v8 = vadd.f32 %v4877_v35, %v4876_v6 }
 0xa58   :  { %v4536_v15 = vadd.f32 %v4878_v8, %v4697_v52  ;;  %v4879_v4 = vpop.f32.mrb[42].mxu0 }
 0xa59   :  { %v4880_v28 = vpop.f32.mrb[43].mxu0 }
 0xa5a   :  { %v4546_v40 = vadd.f32 %v4536_v15, %v6669_v61  ;;  %v4881_v63 = vadd.f32 %v4880_v28, %v4879_v4 }
 0xa5c   :  { %4550 = vst.msk [vmem:[#allocation4 + $0x10] sm:$0xff] %vm54_vm0, %v4546_v40  ;;  %v4541_v26 = vadd.f32 %v4881_v63, %v4697_v52 }
 0xa5e   :  { %v4547_v29 = vadd.f32 %v4541_v26, %v6674_v1 }
 0xa60   :  { %4551 = vst.msk [vmem:[#allocation4 + $0x18] sm:$0xff] %vm54_vm0, %v4547_v29 }
 0xa61   :  { %5584 = shalt.err (!%p5581_p12)
}
 0xa62   :  { %s5585_s5 = scalar_lea.hbm %s6922_s13, 512 }
 0xa63   :  { %p5586_p13 = scmp.ne.s32.totalorder %s6922_s13, %s5585_s5  ;;  %p5589_p0 = scmp.lt.u32.totalorder %s5585_s5, %s6922_s13 }
 0xa65   :  { %p5591_p1 = pnand %p5589_p0, %p5586_p13 }
 0xa67   :  { %5594 = shalt.err (!%p5591_p1)
}
 0xa68   :  { %4563 = dma.vmem_to_hbm [thread:$0]  %s4558_s14, 512, %s6922_s13, [#allocation5], %s5616_s3, %s5616_s3, %s5610_s17  }
 0xa69   :  { %5595 = dma.done.wait [#allocation5], 512  }
 0xa6a   :  { %5596 = vsyncadd [#allocation5], 4294966784 }
 0xa6b   :  { %5597 = dma.done.wait [#allocation7], 4096  }
 0xa6c   :  { %5598 = vsyncadd [#allocation7], 4294963200 }
 0xa6d   :  { %4582 = vsyncpa [#allocation5], 1 }
 0xa6e   :  { %4583 = vsyncpa [#allocation7], 1 }

</bundles_post_ra>
